<compile_context>
chip_gen: v7x
topology: tpu7x:2x2x1
jax: 0.10.0
libtpu: 0.0.40
codegen_flags: <defaults>
</compile_context>

<pallas_src>
import functools

import jax
import jax.numpy as jnp
from jax.experimental import pallas as pl
from jax.experimental.pallas import tpu as pltpu


def leaky(x, slope=0.1):                       # nn.LeakyReLU(0.1)
    return jnp.where(x > 0, x, slope * x)


# ----------------------------------------------------------------------------
# Fused DAB kernel.  Feature maps use (H, W, B*C) layout: lane = b*C + c.
# ----------------------------------------------------------------------------
def _dab_kernel(x_ref, d_ref,
                wk1_ref, wk2a_ref, wk2b_ref, wc1_ref, wc2_ref,
                w1a_ref, b1a_ref, w1b_ref, b1b_ref,
                c1w_ref, c1b_ref, c2w_ref, c2b_ref,
                o_ref, wpad_ref, cols_ref, *, H, W, BC, K):
    f32, bf16 = jnp.float32, jnp.bfloat16
    P = (K - 1) // 2
    HW = H * W

    # Zero-halo padded scratch (H+2P, W+2P, BC): zeroed once; every conv stage
    # rewrites exactly the centre block, so the halo stays zero throughout.
    wpad_ref[...] = jnp.zeros(wpad_ref.shape, f32)

    # ---- merged degradation MLPs (both branches in one pass, batch folded
    #      into lanes through block-diagonal weights) -------------------------
    d = d_ref[...]                                                # (8, B*64); rows identical
    hk = leaky(jnp.dot(d, wk1_ref[...], preferred_element_type=f32))   # (8, 2*BC)
    dk1 = jnp.dot(hk[:, :BC].astype(bf16), wk2a_ref[...],
                  preferred_element_type=f32)[0:1]                # (1, K*K*BC)
    dk2 = jnp.dot(hk[:, BC:].astype(bf16), wk2b_ref[...],
                  preferred_element_type=f32)[0:1]                # (1, K*K*BC)
    hc = leaky(jnp.dot(d, wc1_ref[...], preferred_element_type=f32))    # (8, 2*B*C//r)
    att = jax.nn.sigmoid(jnp.dot(hc, wc2_ref[...], preferred_element_type=f32))
    att1 = att[0:1, :BC].reshape(1, 1, BC)                        # CA(x) gates, (b,c) lanes
    att2 = att[0:1, BC:].reshape(1, 1, BC)

    # ---- helpers -------------------------------------------------------------
    def shifted_slabs(x):
        # Refresh the centre of the zero-halo scratch, then pull the K
        # W-shifted, H-padded slabs as values.  The per-tap H offsets below are
        # free outer slices; only these K reads touch the (W+2P) sublane dim.
        wpad_ref[P:P + H, P:P + W, :] = x
        return [wpad_ref[:, kx:kx + W, :] for kx in range(K)]     # each (H+2P, W, BC)

    def da_conv(x, dk, att_v, w1_ref, b1_ref):
        # DA_conv: dynamic per-(b,c) depthwise KxK -> LeakyReLU -> 1x1 conv
        # (+bias) -> + x * channel-attention.
        slabs = shifted_slabs(x)
        acc = None
        for ky in range(K):
            for kx in range(K):
                t = ky * K + kx
                tap = dk[:, t * BC:(t + 1) * BC].reshape(1, 1, BC)
                term = slabs[kx][ky:ky + H] * tap                 # full 128-lane VPU
                acc = term if acc is None else acc + term
        acc = leaky(acc)                                          # (H, W, BC)
        y = jnp.dot(acc.reshape(HW, BC).astype(bf16), w1_ref[...],
                    preferred_element_type=f32)                   # 1x1 conv on MXU
        y = y.reshape(H, W, BC) + b1_ref[...].reshape(1, 1, BC)
        return y + x * att_v                                      # + CA(x)

    def conv3(x, w_ref, b_ref):
        # Dense KxK conv as ONE im2col matmul: (HW, K*K*BC) x (K*K*BC, BC).
        slabs = shifted_slabs(x)
        for ky in range(K):
            for kx in range(K):
                t = ky * K + kx
                cols_ref[:, t * BC:(t + 1) * BC] = (
                    slabs[kx][ky:ky + H].reshape(HW, BC).astype(bf16))
            # lane offsets are multiples of 128 -> aligned, unmasked stores
        y = jnp.dot(cols_ref[...], w_ref[...], preferred_element_type=f32)
        return y.reshape(H, W, BC) + b_ref[...].reshape(1, 1, BC)

    # ---- DAB.forward ---------------------------------------------------------
    x0 = x_ref[...]                                               # (H, W, BC)
    out = leaky(da_conv(x0, dk1, att1, w1a_ref, b1a_ref))         # relu(da_conv1(x))
    out = leaky(conv3(out, c1w_ref, c1b_ref))                     # relu(conv1(out))
    out = leaky(da_conv(out, dk2, att2, w1b_ref, b1b_ref))        # relu(da_conv2([out,d]))
    out = conv3(out, c2w_ref, c2b_ref) + x0                       # conv2(out) + x
    o_ref[...] = out


# ----------------------------------------------------------------------------
# Wrapper: one pallas_call for the whole block
# ----------------------------------------------------------------------------
def dab_forward(x_hwbc, d_rows, kp, *, H, W, BC, K=3):
    P = (K - 1) // 2
    args = [x_hwbc, d_rows,
            kp["wk1"], kp["wk2a"], kp["wk2b"], kp["wc1"], kp["wc2"],
            kp["w1a"], kp["b1a"], kp["w1b"], kp["b1b"],
            kp["c1w"], kp["c1b"], kp["c2w"], kp["c2b"]]

    def full_spec(a):
        return pl.BlockSpec(a.shape, lambda i, _n=a.ndim: (0,) * _n)

    kernel = functools.partial(_dab_kernel, H=H, W=W, BC=BC, K=K)
    return pl.pallas_call(
        kernel,
        out_shape=jax.ShapeDtypeStruct((H, W, BC), jnp.float32),
        grid=(1,),
        in_specs=[full_spec(a) for a in args],
        out_specs=pl.BlockSpec((H, W, BC), lambda i: (0, 0, 0)),
        scratch_shapes=[
            pltpu.VMEM((H + 2 * P, W + 2 * P, BC), jnp.float32),   # zero-halo pad
            pltpu.VMEM((H * W, K * K * BC), jnp.bfloat16),         # im2col patches
        ],
        compiler_params=pltpu.CompilerParams(dimension_semantics=("arbitrary",)),
    )(*args)


# ----------------------------------------------------------------------------
# Synthetic weights in the original PyTorch layouts (f32) + conversion to the
# layouts the kernel consumes.
# ----------------------------------------------------------------------------
def make_torch_params(key, C=64, K=3, reduction=8):
    KK, Cr = K * K, C // reduction
    ks = jax.random.split(key, 16)
    rnd = lambda k, shape, s=0.05: jax.random.normal(k, shape, jnp.float32) * s

    def da_branch(i):
        return dict(
            wk1=rnd(ks[i + 0], (64, 64)),        # Linear(64,64,bias=False).weight (out,in)
            wk2=rnd(ks[i + 1], (64 * KK, 64)),   # Linear(64,64*K*K,bias=False).weight
            wc1=rnd(ks[i + 2], (Cr, C)),         # Conv2d(C,C//r,1,bias=False).weight[...,0,0]
            wc2=rnd(ks[i + 3], (C, Cr)),         # Conv2d(C//r,C,1,bias=False).weight[...,0,0]
            w1=rnd(ks[i + 4], (C, C)),           # Conv2d(C,C,1).weight[...,0,0]
            b1=rnd(ks[i + 5], (C,)),             # Conv2d(C,C,1).bias
        )

    return dict(
        da1=da_branch(0), da2=da_branch(6),
        conv1_w=rnd(ks[12], (C, C, K, K)), conv1_b=rnd(ks[13], (C,)),
        conv2_w=rnd(ks[14], (C, C, K, K)), conv2_b=rnd(ks[15], (C,)),
    )


def convert_params(tp, B, C=64, K=3, reduction=8):
    """Re-arrange PyTorch-layout weights for the kernel (lane = b*C + c)."""
    KK, Cr, BC = K * K, C // reduction, B * C
    bf16 = jnp.bfloat16

    def bdiag(w):                                  # (i, o) -> (B*i, B*o) block-diag over b
        i_, o_ = w.shape
        out = jnp.zeros((B, i_, B, o_), w.dtype)
        for b in range(B):
            out = out.at[b, :, b, :].set(w)
        return out.reshape(B * i_, B * o_)

    def wk2_kernel(w):                             # torch (64*KK, 64) -> (B*64, KK*B*C) bf16
        m = w.T.reshape(64, C, KK).transpose(0, 2, 1)          # (j, t, c); torch out = c*KK+t
        out = jnp.zeros((B, 64, KK, B, C), jnp.float32)
        for b in range(B):
            out = out.at[b, :, :, b, :].set(m)
        return out.reshape(B * 64, KK * BC).astype(bf16)

    def conv3_w(w):                                # torch (Co,Ci,K,K) -> (KK*B*Ci, B*Co) bf16
        m = w.transpose(2, 3, 1, 0).reshape(KK, C, C)          # (t, ci, co)
        out = jnp.zeros((KK, B, C, B, C), jnp.float32)
        for b in range(B):
            out = out.at[:, b, :, b, :].set(m)
        return out.reshape(KK * BC, BC).astype(bf16)

    def tile_bias(b_):                             # (C,) -> (1, B*C)
        return jnp.tile(b_, B).reshape(1, BC)

    da1, da2 = tp["da1"], tp["da2"]
    wk1 = jnp.concatenate([bdiag(da1["wk1"].T), bdiag(da2["wk1"].T)], axis=1)   # (BC, 2BC)
    wc1 = jnp.concatenate([bdiag(da1["wc1"].T), bdiag(da2["wc1"].T)], axis=1)   # (BC, 2B*Cr)
    wc2 = jnp.zeros((2, B * Cr, 2, BC), jnp.float32)
    wc2 = wc2.at[0, :, 0, :].set(bdiag(da1["wc2"].T))
    wc2 = wc2.at[1, :, 1, :].set(bdiag(da2["wc2"].T))
    wc2 = wc2.reshape(2 * B * Cr, 2 * BC)                                       # (2B*Cr, 2BC)

    return dict(
        wk1=wk1,
        wk2a=wk2_kernel(da1["wk2"]), wk2b=wk2_kernel(da2["wk2"]),
        wc1=wc1, wc2=wc2,
        w1a=bdiag(da1["w1"].T).astype(bf16), b1a=tile_bias(da1["b1"]),
        w1b=bdiag(da2["w1"].T).astype(bf16), b1b=tile_bias(da2["b1"]),
        c1w=conv3_w(tp["conv1_w"]), c1b=tile_bias(tp["conv1_b"]),
        c2w=conv3_w(tp["conv2_w"]), c2b=tile_bias(tp["conv2_b"]),
    )


# ----------------------------------------------------------------------------
# Pure-JAX f32 reference mirroring the PyTorch DAB.forward (for verification).
# ----------------------------------------------------------------------------
def dab_reference(x_nchw, d, tp, K=3):
    B, C, H, W = x_nchw.shape
    hp = jax.lax.Precision.HIGHEST
    lk = lambda v: jnp.where(v > 0, v, 0.1 * v)

    def conv2d(x, w, groups=1):
        return jax.lax.conv_general_dilated(
            x, w, window_strides=(1, 1), padding="SAME",
            feature_group_count=groups,
            dimension_numbers=("NCHW", "OIHW", "NCHW"), precision=hp)

    def da_conv(x, p):
        h = lk(jnp.dot(d, p["wk1"].T, precision=hp))                  # (B, 64)
        ker = jnp.dot(h, p["wk2"].T, precision=hp).reshape(B * C, 1, K, K)
        out = lk(conv2d(x.reshape(1, B * C, H, W), ker, groups=B * C)
                 .reshape(B, C, H, W))                                # dynamic depthwise
        out = (jnp.einsum("bihw,oi->bohw", out, p["w1"], precision=hp)
               + p["b1"][None, :, None, None])                        # 1x1 conv + bias
        hc = lk(jnp.dot(d, p["wc1"].T, precision=hp))
        att = jax.nn.sigmoid(jnp.dot(hc, p["wc2"].T, precision=hp))
        return out + x * att[:, :, None, None]                        # + CA(x)

    def conv3(x, w, b):
        return conv2d(x, w) + b[None, :, None, None]

    out = lk(da_conv(x_nchw, tp["da1"]))
    out = lk(conv3(out, tp["conv1_w"], tp["conv1_b"]))
    out = lk(da_conv(out, tp["da2"]))
    return conv3(out, tp["conv2_w"], tp["conv2_b"]) + x_nchw


if __name__ == "__main__":
    # n_feat must be 64: the degradation vector (B,64) feeds both Linear(64,.)
    # and the CA 1x1 convs whose channels_in = n_feat.
    B, C, H, W = 2, 64, 8, 8
    K, reduction = 3, 8
    BC = B * C

    key = jax.random.PRNGKey(0)
    k1, k2, k3 = jax.random.split(key, 3)
    x_nchw = jax.random.normal(k1, (B, C, H, W), jnp.float32)    # PyTorch NCHW input
    d = jax.random.normal(k2, (B, 64), jnp.float32)              # degradation rep, B x 64
    tp = make_torch_params(k3, C=C, K=K, reduction=reduction)
    kp = convert_params(tp, B=B, C=C, K=K, reduction=reduction)

    # Kernel layouts: features (H, W, B*C) with lane = b*C + c; degradation as
    # 8 identical rows of concat(d[0], d[1]) so every MXU LHS is sublane-full.
    x_hwbc = jnp.transpose(x_nchw, (2, 3, 0, 1)).reshape(H, W, BC)
    d_rows = jnp.tile(d.reshape(1, B * 64), (8, 1))

    out_hwbc = dab_forward(x_hwbc, d_rows, kp, H=H, W=W, BC=BC, K=K)
    out_nchw = jnp.transpose(out_hwbc.reshape(H, W, B, C), (2, 3, 1, 0))
    out_nchw = jnp.transpose(out_hwbc.reshape(H, W, B, C), (2, 3, 0, 1))
    jax.block_until_ready(out_nchw)
    assert out_nchw.shape == (B, C, H, W)

    # Reference check (f32 reference vs. kernel using bf16 MXU operands).
    ref = dab_reference(x_nchw, d, tp, K=K)
    err = float(jnp.max(jnp.abs(out_nchw - ref)))
    scale = float(jnp.max(jnp.abs(ref)))
    assert err <= 5e-2 * max(scale, 1.0), f"max|err|={err:.3e} vs ref scale {scale:.3e}"
    print("KERNEL_OK")
</pallas_src>

<mosaic_0001>
module attributes {stable_mosaic.version = 11 : i64} {
  func.func @_dab_kernel(%arg0: i32, %arg1: memref<8x8x128xf32, #tpu.memory_space<vmem>>, %arg2: memref<8x128xf32, #tpu.memory_space<vmem>>, %arg3: memref<128x256xf32, #tpu.memory_space<vmem>>, %arg4: memref<128x1152xbf16, #tpu.memory_space<vmem>>, %arg5: memref<128x1152xbf16, #tpu.memory_space<vmem>>, %arg6: memref<128x32xf32, #tpu.memory_space<vmem>>, %arg7: memref<32x256xf32, #tpu.memory_space<vmem>>, %arg8: memref<128x128xbf16, #tpu.memory_space<vmem>>, %arg9: memref<1x128xf32, #tpu.memory_space<vmem>>, %arg10: memref<128x128xbf16, #tpu.memory_space<vmem>>, %arg11: memref<1x128xf32, #tpu.memory_space<vmem>>, %arg12: memref<1152x128xbf16, #tpu.memory_space<vmem>>, %arg13: memref<1x128xf32, #tpu.memory_space<vmem>>, %arg14: memref<1152x128xbf16, #tpu.memory_space<vmem>>, %arg15: memref<1x128xf32, #tpu.memory_space<vmem>>, %arg16: memref<8x8x128xf32, #tpu.memory_space<vmem>>, %arg17: memref<10x10x128xf32, #tpu.memory_space<vmem>>, %arg18: memref<64x1152xbf16, #tpu.memory_space<vmem>>) attributes {dimension_semantics = [#tpu.dimension_semantics<arbitrary>], iteration_bounds = array<i64: 1>, scalar_prefetch = 0 : i64, scratch_operands = 2 : i64, tpu.core_type = #tpu.core_type<tc>, window_params = [{pipeline_mode = #tpu.pipeline_mode<synchronous>, transform_indices = @transform_0, window_bounds = array<i64: 8, 8, 128>}, {pipeline_mode = #tpu.pipeline_mode<synchronous>, transform_indices = @transform_1, window_bounds = array<i64: 8, 128>}, {pipeline_mode = #tpu.pipeline_mode<synchronous>, transform_indices = @transform_2, window_bounds = array<i64: 128, 256>}, {pipeline_mode = #tpu.pipeline_mode<synchronous>, transform_indices = @transform_3, window_bounds = array<i64: 128, 1152>}, {pipeline_mode = #tpu.pipeline_mode<synchronous>, transform_indices = @transform_4, window_bounds = array<i64: 128, 1152>}, {pipeline_mode = #tpu.pipeline_mode<synchronous>, transform_indices = @transform_5, window_bounds = array<i64: 128, 32>}, {pipeline_mode = #tpu.pipeline_mode<synchronous>, transform_indices = @transform_6, window_bounds = array<i64: 32, 256>}, {pipeline_mode = #tpu.pipeline_mode<synchronous>, transform_indices = @transform_7, window_bounds = array<i64: 128, 128>}, {pipeline_mode = #tpu.pipeline_mode<synchronous>, transform_indices = @transform_8, window_bounds = array<i64: 1, 128>}, {pipeline_mode = #tpu.pipeline_mode<synchronous>, transform_indices = @transform_9, window_bounds = array<i64: 128, 128>}, {pipeline_mode = #tpu.pipeline_mode<synchronous>, transform_indices = @transform_10, window_bounds = array<i64: 1, 128>}, {pipeline_mode = #tpu.pipeline_mode<synchronous>, transform_indices = @transform_11, window_bounds = array<i64: 1152, 128>}, {pipeline_mode = #tpu.pipeline_mode<synchronous>, transform_indices = @transform_12, window_bounds = array<i64: 1, 128>}, {pipeline_mode = #tpu.pipeline_mode<synchronous>, transform_indices = @transform_13, window_bounds = array<i64: 1152, 128>}, {pipeline_mode = #tpu.pipeline_mode<synchronous>, transform_indices = @transform_14, window_bounds = array<i64: 1, 128>}, {pipeline_mode = #tpu.pipeline_mode<synchronous>, transform_indices = @transform_15, window_bounds = array<i64: 8, 8, 128>}]} {
    %cst = arith.constant 0.000000e+00 : f32
    %0 = vector.broadcast %cst : f32 to vector<10x10x128xf32>
    %c0 = arith.constant 0 : index
    %c0_0 = arith.constant 0 : index
    %c0_1 = arith.constant 0 : index
    %1 = vector.load %arg17[%c0, %c0_0, %c0_1] : memref<10x10x128xf32, #tpu.memory_space<vmem>>, vector<10x10x128xf32>
    tpu.vector_store %arg17[%c0, %c0_0, %c0_1], %0 {strides = array<i32>} : memref<10x10x128xf32, #tpu.memory_space<vmem>>, vector<10x10x128xf32>,
    %c0_2 = arith.constant 0 : index
    %c0_3 = arith.constant 0 : index
    %2 = vector.load %arg2[%c0_2, %c0_3] : memref<8x128xf32, #tpu.memory_space<vmem>>, vector<8x128xf32>
    %c0_4 = arith.constant 0 : index
    %c0_5 = arith.constant 0 : index
    %3 = vector.load %arg3[%c0_4, %c0_5] : memref<128x256xf32, #tpu.memory_space<vmem>>, vector<128x256xf32>
    %cst_6 = arith.constant dense<0.000000e+00> : vector<8x256xf32>
    %4 = tpu.matmul %2, %3, %cst_6 {dimension_numbers = #tpu.dot_dimension_numbers<[1], [0], [0], [1], [0, 0, 1, 1], [], []>} : vector<8x128xf32>, vector<128x256xf32>, vector<8x256xf32> -> vector<8x256xf32>
    %cst_7 = arith.constant 0.000000e+00 : f32
    %5 = vector.broadcast %cst_7 : f32 to vector<8x256xf32>
    %6 = arith.cmpf ogt, %4, %5 : vector<8x256xf32>
    %cst_8 = arith.constant 1.000000e-01 : f32
    %7 = vector.broadcast %cst_8 : f32 to vector<8x256xf32>
    %8 = arith.mulf %7, %4 : vector<8x256xf32>
    %9 = arith.select %6, %4, %8 : vector<8x256xi1>, vector<8x256xf32>
    %10 = vector.extract_strided_slice %9 {offsets = [0, 0], sizes = [8, 128], strides = [1, 1]} : vector<8x256xf32> to vector<8x128xf32>
    %11 = arith.truncf %10 : vector<8x128xf32> to vector<8x128xbf16>
    %c0_9 = arith.constant 0 : index
    %c0_10 = arith.constant 0 : index
    %12 = vector.load %arg4[%c0_9, %c0_10] : memref<128x1152xbf16, #tpu.memory_space<vmem>>, vector<128x1152xbf16>
    %cst_11 = arith.constant dense<0.000000e+00> : vector<8x1152xf32>
    %13 = tpu.matmul %11, %12, %cst_11 {dimension_numbers = #tpu.dot_dimension_numbers<[1], [0], [0], [1], [0, 0, 1, 1], [], []>} : vector<8x128xbf16>, vector<128x1152xbf16>, vector<8x1152xf32> -> vector<8x1152xf32>
    %14 = vector.extract_strided_slice %13 {offsets = [0, 0], sizes = [1, 1152], strides = [1, 1]} : vector<8x1152xf32> to vector<1x1152xf32>
    %15 = vector.extract_strided_slice %9 {offsets = [0, 128], sizes = [8, 128], strides = [1, 1]} : vector<8x256xf32> to vector<8x128xf32>
    %16 = arith.truncf %15 : vector<8x128xf32> to vector<8x128xbf16>
    %c0_12 = arith.constant 0 : index
    %c0_13 = arith.constant 0 : index
    %17 = vector.load %arg5[%c0_12, %c0_13] : memref<128x1152xbf16, #tpu.memory_space<vmem>>, vector<128x1152xbf16>
    %cst_14 = arith.constant dense<0.000000e+00> : vector<8x1152xf32>
    %18 = tpu.matmul %16, %17, %cst_14 {dimension_numbers = #tpu.dot_dimension_numbers<[1], [0], [0], [1], [0, 0, 1, 1], [], []>} : vector<8x128xbf16>, vector<128x1152xbf16>, vector<8x1152xf32> -> vector<8x1152xf32>
    %19 = vector.extract_strided_slice %18 {offsets = [0, 0], sizes = [1, 1152], strides = [1, 1]} : vector<8x1152xf32> to vector<1x1152xf32>
    %c0_15 = arith.constant 0 : index
    %c0_16 = arith.constant 0 : index
    %20 = vector.load %arg6[%c0_15, %c0_16] : memref<128x32xf32, #tpu.memory_space<vmem>>, vector<128x32xf32>
    %cst_17 = arith.constant dense<0.000000e+00> : vector<8x32xf32>
    %21 = tpu.matmul %2, %20, %cst_17 {dimension_numbers = #tpu.dot_dimension_numbers<[1], [0], [0], [1], [0, 0, 1, 1], [], []>} : vector<8x128xf32>, vector<128x32xf32>, vector<8x32xf32> -> vector<8x32xf32>
    %cst_18 = arith.constant 0.000000e+00 : f32
    %22 = vector.broadcast %cst_18 : f32 to vector<8x32xf32>
    %23 = arith.cmpf ogt, %21, %22 : vector<8x32xf32>
    %cst_19 = arith.constant 1.000000e-01 : f32
    %24 = vector.broadcast %cst_19 : f32 to vector<8x32xf32>
    %25 = arith.mulf %24, %21 : vector<8x32xf32>
    %26 = arith.select %23, %21, %25 : vector<8x32xi1>, vector<8x32xf32>
    %c0_20 = arith.constant 0 : index
    %c0_21 = arith.constant 0 : index
    %27 = vector.load %arg7[%c0_20, %c0_21] : memref<32x256xf32, #tpu.memory_space<vmem>>, vector<32x256xf32>
    %cst_22 = arith.constant dense<0.000000e+00> : vector<8x256xf32>
    %28 = tpu.matmul %26, %27, %cst_22 {dimension_numbers = #tpu.dot_dimension_numbers<[1], [0], [0], [1], [0, 0, 1, 1], [], []>} : vector<8x32xf32>, vector<32x256xf32>, vector<8x256xf32> -> vector<8x256xf32>
    %29 = arith.negf %28 : vector<8x256xf32>
    %30 = math.exp %29 : vector<8x256xf32>
    %cst_23 = arith.constant 1.000000e+00 : f32
    %31 = vector.broadcast %cst_23 : f32 to vector<8x256xf32>
    %32 = arith.addf %31, %30 : vector<8x256xf32>
    %33 = arith.divf %31, %32 : vector<8x256xf32>
    %34 = vector.extract_strided_slice %33 {offsets = [0, 0], sizes = [1, 128], strides = [1, 1]} : vector<8x256xf32> to vector<1x128xf32>
    %35 = vector.shape_cast %34 : vector<1x128xf32> to vector<1x1x128xf32>
    %36 = vector.extract_strided_slice %33 {offsets = [0, 128], sizes = [1, 128], strides = [1, 1]} : vector<8x256xf32> to vector<1x128xf32>
    %37 = vector.shape_cast %36 : vector<1x128xf32> to vector<1x1x128xf32>
    %c0_24 = arith.constant 0 : index
    %c0_25 = arith.constant 0 : index
    %c0_26 = arith.constant 0 : index
    %38 = vector.load %arg1[%c0_24, %c0_25, %c0_26] : memref<8x8x128xf32, #tpu.memory_space<vmem>>, vector<8x8x128xf32>
    %c1 = arith.constant 1 : index
    %c1_27 = arith.constant 1 : index
    %c0_28 = arith.constant 0 : index
    %39 = vector.load %arg17[%c1, %c1_27, %c0_28] : memref<10x10x128xf32, #tpu.memory_space<vmem>>, vector<8x8x128xf32>
    tpu.vector_store %arg17[%c1, %c1_27, %c0_28], %38 {strides = array<i32>} : memref<10x10x128xf32, #tpu.memory_space<vmem>>, vector<8x8x128xf32>,
    %c0_29 = arith.constant 0 : index
    %c0_30 = arith.constant 0 : index
    %c0_31 = arith.constant 0 : index
    %40 = vector.load %arg17[%c0_29, %c0_30, %c0_31] : memref<10x10x128xf32, #tpu.memory_space<vmem>>, vector<10x8x128xf32>
    %c0_32 = arith.constant 0 : index
    %c1_33 = arith.constant 1 : index
    %c0_34 = arith.constant 0 : index
    %41 = vector.load %arg17[%c0_32, %c1_33, %c0_34] : memref<10x10x128xf32, #tpu.memory_space<vmem>>, vector<10x8x128xf32>
    %c0_35 = arith.constant 0 : index
    %c2 = arith.constant 2 : index
    %c0_36 = arith.constant 0 : index
    %42 = vector.load %arg17[%c0_35, %c2, %c0_36] : memref<10x10x128xf32, #tpu.memory_space<vmem>>, vector<10x8x128xf32>
    %43 = vector.extract_strided_slice %14 {offsets = [0, 0], sizes = [1, 128], strides = [1, 1]} : vector<1x1152xf32> to vector<1x128xf32>
    %44 = vector.shape_cast %43 : vector<1x128xf32> to vector<1x1x128xf32>
    %45 = vector.extract_strided_slice %40 {offsets = [0, 0, 0], sizes = [8, 8, 128], strides = [1, 1, 1]} : vector<10x8x128xf32> to vector<8x8x128xf32>
    %46 = vector.broadcast %44 : vector<1x1x128xf32> to vector<8x8x128xf32>
    %47 = arith.mulf %45, %46 : vector<8x8x128xf32>
    %48 = vector.extract_strided_slice %14 {offsets = [0, 128], sizes = [1, 128], strides = [1, 1]} : vector<1x1152xf32> to vector<1x128xf32>
    %49 = vector.shape_cast %48 : vector<1x128xf32> to vector<1x1x128xf32>
    %50 = vector.extract_strided_slice %41 {offsets = [0, 0, 0], sizes = [8, 8, 128], strides = [1, 1, 1]} : vector<10x8x128xf32> to vector<8x8x128xf32>
    %51 = vector.broadcast %49 : vector<1x1x128xf32> to vector<8x8x128xf32>
    %52 = arith.mulf %50, %51 : vector<8x8x128xf32>
    %53 = arith.addf %47, %52 : vector<8x8x128xf32>
    %54 = vector.extract_strided_slice %14 {offsets = [0, 256], sizes = [1, 128], strides = [1, 1]} : vector<1x1152xf32> to vector<1x128xf32>
    %55 = vector.shape_cast %54 : vector<1x128xf32> to vector<1x1x128xf32>
    %56 = vector.extract_strided_slice %42 {offsets = [0, 0, 0], sizes = [8, 8, 128], strides = [1, 1, 1]} : vector<10x8x128xf32> to vector<8x8x128xf32>
    %57 = vector.broadcast %55 : vector<1x1x128xf32> to vector<8x8x128xf32>
    %58 = arith.mulf %56, %57 : vector<8x8x128xf32>
    %59 = arith.addf %53, %58 : vector<8x8x128xf32>
    %60 = vector.extract_strided_slice %14 {offsets = [0, 384], sizes = [1, 128], strides = [1, 1]} : vector<1x1152xf32> to vector<1x128xf32>
    %61 = vector.shape_cast %60 : vector<1x128xf32> to vector<1x1x128xf32>
    %62 = vector.extract_strided_slice %40 {offsets = [1, 0, 0], sizes = [8, 8, 128], strides = [1, 1, 1]} : vector<10x8x128xf32> to vector<8x8x128xf32>
    %63 = vector.broadcast %61 : vector<1x1x128xf32> to vector<8x8x128xf32>
    %64 = arith.mulf %62, %63 : vector<8x8x128xf32>
    %65 = arith.addf %59, %64 : vector<8x8x128xf32>
    %66 = vector.extract_strided_slice %14 {offsets = [0, 512], sizes = [1, 128], strides = [1, 1]} : vector<1x1152xf32> to vector<1x128xf32>
    %67 = vector.shape_cast %66 : vector<1x128xf32> to vector<1x1x128xf32>
    %68 = vector.extract_strided_slice %41 {offsets = [1, 0, 0], sizes = [8, 8, 128], strides = [1, 1, 1]} : vector<10x8x128xf32> to vector<8x8x128xf32>
    %69 = vector.broadcast %67 : vector<1x1x128xf32> to vector<8x8x128xf32>
    %70 = arith.mulf %68, %69 : vector<8x8x128xf32>
    %71 = arith.addf %65, %70 : vector<8x8x128xf32>
    %72 = vector.extract_strided_slice %14 {offsets = [0, 640], sizes = [1, 128], strides = [1, 1]} : vector<1x1152xf32> to vector<1x128xf32>
    %73 = vector.shape_cast %72 : vector<1x128xf32> to vector<1x1x128xf32>
    %74 = vector.extract_strided_slice %42 {offsets = [1, 0, 0], sizes = [8, 8, 128], strides = [1, 1, 1]} : vector<10x8x128xf32> to vector<8x8x128xf32>
    %75 = vector.broadcast %73 : vector<1x1x128xf32> to vector<8x8x128xf32>
    %76 = arith.mulf %74, %75 : vector<8x8x128xf32>
    %77 = arith.addf %71, %76 : vector<8x8x128xf32>
    %78 = vector.extract_strided_slice %14 {offsets = [0, 768], sizes = [1, 128], strides = [1, 1]} : vector<1x1152xf32> to vector<1x128xf32>
    %79 = vector.shape_cast %78 : vector<1x128xf32> to vector<1x1x128xf32>
    %80 = vector.extract_strided_slice %40 {offsets = [2, 0, 0], sizes = [8, 8, 128], strides = [1, 1, 1]} : vector<10x8x128xf32> to vector<8x8x128xf32>
    %81 = vector.broadcast %79 : vector<1x1x128xf32> to vector<8x8x128xf32>
    %82 = arith.mulf %80, %81 : vector<8x8x128xf32>
    %83 = arith.addf %77, %82 : vector<8x8x128xf32>
    %84 = vector.extract_strided_slice %14 {offsets = [0, 896], sizes = [1, 128], strides = [1, 1]} : vector<1x1152xf32> to vector<1x128xf32>
    %85 = vector.shape_cast %84 : vector<1x128xf32> to vector<1x1x128xf32>
    %86 = vector.extract_strided_slice %41 {offsets = [2, 0, 0], sizes = [8, 8, 128], strides = [1, 1, 1]} : vector<10x8x128xf32> to vector<8x8x128xf32>
    %87 = vector.broadcast %85 : vector<1x1x128xf32> to vector<8x8x128xf32>
    %88 = arith.mulf %86, %87 : vector<8x8x128xf32>
    %89 = arith.addf %83, %88 : vector<8x8x128xf32>
    %90 = vector.extract_strided_slice %14 {offsets = [0, 1024], sizes = [1, 128], strides = [1, 1]} : vector<1x1152xf32> to vector<1x128xf32>
    %91 = vector.shape_cast %90 : vector<1x128xf32> to vector<1x1x128xf32>
    %92 = vector.extract_strided_slice %42 {offsets = [2, 0, 0], sizes = [8, 8, 128], strides = [1, 1, 1]} : vector<10x8x128xf32> to vector<8x8x128xf32>
    %93 = vector.broadcast %91 : vector<1x1x128xf32> to vector<8x8x128xf32>
    %94 = arith.mulf %92, %93 : vector<8x8x128xf32>
    %95 = arith.addf %89, %94 : vector<8x8x128xf32>
    %cst_37 = arith.constant 0.000000e+00 : f32
    %96 = vector.broadcast %cst_37 : f32 to vector<8x8x128xf32>
    %97 = arith.cmpf ogt, %95, %96 : vector<8x8x128xf32>
    %cst_38 = arith.constant 1.000000e-01 : f32
    %98 = vector.broadcast %cst_38 : f32 to vector<8x8x128xf32>
    %99 = arith.mulf %98, %95 : vector<8x8x128xf32>
    %100 = arith.select %97, %95, %99 : vector<8x8x128xi1>, vector<8x8x128xf32>
    %101 = vector.shape_cast %100 : vector<8x8x128xf32> to vector<64x128xf32>
    %102 = arith.truncf %101 : vector<64x128xf32> to vector<64x128xbf16>
    %c0_39 = arith.constant 0 : index
    %c0_40 = arith.constant 0 : index
    %103 = vector.load %arg8[%c0_39, %c0_40] : memref<128x128xbf16, #tpu.memory_space<vmem>>, vector<128x128xbf16>
    %cst_41 = arith.constant dense<0.000000e+00> : vector<64x128xf32>
    %104 = tpu.matmul %102, %103, %cst_41 {dimension_numbers = #tpu.dot_dimension_numbers<[1], [0], [0], [1], [0, 0, 1, 1], [], []>} : vector<64x128xbf16>, vector<128x128xbf16>, vector<64x128xf32> -> vector<64x128xf32>
    %105 = vector.shape_cast %104 : vector<64x128xf32> to vector<8x8x128xf32>
    %c0_42 = arith.constant 0 : index
    %c0_43 = arith.constant 0 : index
    %106 = vector.load %arg9[%c0_42, %c0_43] : memref<1x128xf32, #tpu.memory_space<vmem>>, vector<1x128xf32>
    %107 = vector.shape_cast %106 : vector<1x128xf32> to vector<1x1x128xf32>
    %108 = vector.broadcast %107 : vector<1x1x128xf32> to vector<8x8x128xf32>
    %109 = arith.addf %105, %108 : vector<8x8x128xf32>
    %110 = vector.broadcast %35 : vector<1x1x128xf32> to vector<8x8x128xf32>
    %111 = arith.mulf %38, %110 : vector<8x8x128xf32>
    %112 = arith.addf %109, %111 : vector<8x8x128xf32>
    %cst_44 = arith.constant 0.000000e+00 : f32
    %113 = vector.broadcast %cst_44 : f32 to vector<8x8x128xf32>
    %114 = arith.cmpf ogt, %112, %113 : vector<8x8x128xf32>
    %cst_45 = arith.constant 1.000000e-01 : f32
    %115 = vector.broadcast %cst_45 : f32 to vector<8x8x128xf32>
    %116 = arith.mulf %115, %112 : vector<8x8x128xf32>
    %117 = arith.select %114, %112, %116 : vector<8x8x128xi1>, vector<8x8x128xf32>
    %c1_46 = arith.constant 1 : index
    %c1_47 = arith.constant 1 : index
    %c0_48 = arith.constant 0 : index
    %118 = vector.load %arg17[%c1_46, %c1_47, %c0_48] : memref<10x10x128xf32, #tpu.memory_space<vmem>>, vector<8x8x128xf32>
    tpu.vector_store %arg17[%c1_46, %c1_47, %c0_48], %117 {strides = array<i32>} : memref<10x10x128xf32, #tpu.memory_space<vmem>>, vector<8x8x128xf32>,
    %c0_49 = arith.constant 0 : index
    %c0_50 = arith.constant 0 : index
    %c0_51 = arith.constant 0 : index
    %119 = vector.load %arg17[%c0_49, %c0_50, %c0_51] : memref<10x10x128xf32, #tpu.memory_space<vmem>>, vector<10x8x128xf32>
    %c0_52 = arith.constant 0 : index
    %c1_53 = arith.constant 1 : index
    %c0_54 = arith.constant 0 : index
    %120 = vector.load %arg17[%c0_52, %c1_53, %c0_54] : memref<10x10x128xf32, #tpu.memory_space<vmem>>, vector<10x8x128xf32>
    %c0_55 = arith.constant 0 : index
    %c2_56 = arith.constant 2 : index
    %c0_57 = arith.constant 0 : index
    %121 = vector.load %arg17[%c0_55, %c2_56, %c0_57] : memref<10x10x128xf32, #tpu.memory_space<vmem>>, vector<10x8x128xf32>
    %122 = vector.extract_strided_slice %119 {offsets = [0, 0, 0], sizes = [8, 8, 128], strides = [1, 1, 1]} : vector<10x8x128xf32> to vector<8x8x128xf32>
    %123 = vector.shape_cast %122 : vector<8x8x128xf32> to vector<64x128xf32>
    %124 = arith.truncf %123 : vector<64x128xf32> to vector<64x128xbf16>
    %c0_58 = arith.constant 0 : index
    %c0_59 = arith.constant 0 : index
    %125 = vector.load %arg18[%c0_58, %c0_59] : memref<64x1152xbf16, #tpu.memory_space<vmem>>, vector<64x128xbf16>
    tpu.vector_store %arg18[%c0_58, %c0_59], %124 {strides = array<i32>} : memref<64x1152xbf16, #tpu.memory_space<vmem>>, vector<64x128xbf16>,
    %126 = vector.extract_strided_slice %120 {offsets = [0, 0, 0], sizes = [8, 8, 128], strides = [1, 1, 1]} : vector<10x8x128xf32> to vector<8x8x128xf32>
    %127 = vector.shape_cast %126 : vector<8x8x128xf32> to vector<64x128xf32>
    %128 = arith.truncf %127 : vector<64x128xf32> to vector<64x128xbf16>
    %c0_60 = arith.constant 0 : index
    %c128 = arith.constant 128 : index
    %129 = vector.load %arg18[%c0_60, %c128] : memref<64x1152xbf16, #tpu.memory_space<vmem>>, vector<64x128xbf16>
    tpu.vector_store %arg18[%c0_60, %c128], %128 {strides = array<i32>} : memref<64x1152xbf16, #tpu.memory_space<vmem>>, vector<64x128xbf16>,
    %130 = vector.extract_strided_slice %121 {offsets = [0, 0, 0], sizes = [8, 8, 128], strides = [1, 1, 1]} : vector<10x8x128xf32> to vector<8x8x128xf32>
    %131 = vector.shape_cast %130 : vector<8x8x128xf32> to vector<64x128xf32>
    %132 = arith.truncf %131 : vector<64x128xf32> to vector<64x128xbf16>
    %c0_61 = arith.constant 0 : index
    %c256 = arith.constant 256 : index
    %133 = vector.load %arg18[%c0_61, %c256] : memref<64x1152xbf16, #tpu.memory_space<vmem>>, vector<64x128xbf16>
    tpu.vector_store %arg18[%c0_61, %c256], %132 {strides = array<i32>} : memref<64x1152xbf16, #tpu.memory_space<vmem>>, vector<64x128xbf16>,
    %134 = vector.extract_strided_slice %119 {offsets = [1, 0, 0], sizes = [8, 8, 128], strides = [1, 1, 1]} : vector<10x8x128xf32> to vector<8x8x128xf32>
    %135 = vector.shape_cast %134 : vector<8x8x128xf32> to vector<64x128xf32>
    %136 = arith.truncf %135 : vector<64x128xf32> to vector<64x128xbf16>
    %c0_62 = arith.constant 0 : index
    %c384 = arith.constant 384 : index
    %137 = vector.load %arg18[%c0_62, %c384] : memref<64x1152xbf16, #tpu.memory_space<vmem>>, vector<64x128xbf16>
    tpu.vector_store %arg18[%c0_62, %c384], %136 {strides = array<i32>} : memref<64x1152xbf16, #tpu.memory_space<vmem>>, vector<64x128xbf16>,
    %138 = vector.extract_strided_slice %120 {offsets = [1, 0, 0], sizes = [8, 8, 128], strides = [1, 1, 1]} : vector<10x8x128xf32> to vector<8x8x128xf32>
    %139 = vector.shape_cast %138 : vector<8x8x128xf32> to vector<64x128xf32>
    %140 = arith.truncf %139 : vector<64x128xf32> to vector<64x128xbf16>
    %c0_63 = arith.constant 0 : index
    %c512 = arith.constant 512 : index
    %141 = vector.load %arg18[%c0_63, %c512] : memref<64x1152xbf16, #tpu.memory_space<vmem>>, vector<64x128xbf16>
    tpu.vector_store %arg18[%c0_63, %c512], %140 {strides = array<i32>} : memref<64x1152xbf16, #tpu.memory_space<vmem>>, vector<64x128xbf16>,
    %142 = vector.extract_strided_slice %121 {offsets = [1, 0, 0], sizes = [8, 8, 128], strides = [1, 1, 1]} : vector<10x8x128xf32> to vector<8x8x128xf32>
    %143 = vector.shape_cast %142 : vector<8x8x128xf32> to vector<64x128xf32>
    %144 = arith.truncf %143 : vector<64x128xf32> to vector<64x128xbf16>
    %c0_64 = arith.constant 0 : index
    %c640 = arith.constant 640 : index
    %145 = vector.load %arg18[%c0_64, %c640] : memref<64x1152xbf16, #tpu.memory_space<vmem>>, vector<64x128xbf16>
    tpu.vector_store %arg18[%c0_64, %c640], %144 {strides = array<i32>} : memref<64x1152xbf16, #tpu.memory_space<vmem>>, vector<64x128xbf16>,
    %146 = vector.extract_strided_slice %119 {offsets = [2, 0, 0], sizes = [8, 8, 128], strides = [1, 1, 1]} : vector<10x8x128xf32> to vector<8x8x128xf32>
    %147 = vector.shape_cast %146 : vector<8x8x128xf32> to vector<64x128xf32>
    %148 = arith.truncf %147 : vector<64x128xf32> to vector<64x128xbf16>
    %c0_65 = arith.constant 0 : index
    %c768 = arith.constant 768 : index
    %149 = vector.load %arg18[%c0_65, %c768] : memref<64x1152xbf16, #tpu.memory_space<vmem>>, vector<64x128xbf16>
    tpu.vector_store %arg18[%c0_65, %c768], %148 {strides = array<i32>} : memref<64x1152xbf16, #tpu.memory_space<vmem>>, vector<64x128xbf16>,
    %150 = vector.extract_strided_slice %120 {offsets = [2, 0, 0], sizes = [8, 8, 128], strides = [1, 1, 1]} : vector<10x8x128xf32> to vector<8x8x128xf32>
    %151 = vector.shape_cast %150 : vector<8x8x128xf32> to vector<64x128xf32>
    %152 = arith.truncf %151 : vector<64x128xf32> to vector<64x128xbf16>
    %c0_66 = arith.constant 0 : index
    %c896 = arith.constant 896 : index
    %153 = vector.load %arg18[%c0_66, %c896] : memref<64x1152xbf16, #tpu.memory_space<vmem>>, vector<64x128xbf16>
    tpu.vector_store %arg18[%c0_66, %c896], %152 {strides = array<i32>} : memref<64x1152xbf16, #tpu.memory_space<vmem>>, vector<64x128xbf16>,
    %154 = vector.extract_strided_slice %121 {offsets = [2, 0, 0], sizes = [8, 8, 128], strides = [1, 1, 1]} : vector<10x8x128xf32> to vector<8x8x128xf32>
    %155 = vector.shape_cast %154 : vector<8x8x128xf32> to vector<64x128xf32>
    %156 = arith.truncf %155 : vector<64x128xf32> to vector<64x128xbf16>
    %c0_67 = arith.constant 0 : index
    %c1024 = arith.constant 1024 : index
    %157 = vector.load %arg18[%c0_67, %c1024] : memref<64x1152xbf16, #tpu.memory_space<vmem>>, vector<64x128xbf16>
    tpu.vector_store %arg18[%c0_67, %c1024], %156 {strides = array<i32>} : memref<64x1152xbf16, #tpu.memory_space<vmem>>, vector<64x128xbf16>,
    %c0_68 = arith.constant 0 : index
    %c0_69 = arith.constant 0 : index
    %158 = vector.load %arg18[%c0_68, %c0_69] : memref<64x1152xbf16, #tpu.memory_space<vmem>>, vector<64x1152xbf16>
    %c0_70 = arith.constant 0 : index
    %c0_71 = arith.constant 0 : index
    %159 = vector.load %arg12[%c0_70, %c0_71] : memref<1152x128xbf16, #tpu.memory_space<vmem>>, vector<1152x128xbf16>
    %cst_72 = arith.constant dense<0.000000e+00> : vector<64x128xf32>
    %160 = tpu.matmul %158, %159, %cst_72 {dimension_numbers = #tpu.dot_dimension_numbers<[1], [0], [0], [1], [0, 0, 1, 1], [], []>} : vector<64x1152xbf16>, vector<1152x128xbf16>, vector<64x128xf32> -> vector<64x128xf32>
    %161 = vector.shape_cast %160 : vector<64x128xf32> to vector<8x8x128xf32>
    %c0_73 = arith.constant 0 : index
    %c0_74 = arith.constant 0 : index
    %162 = vector.load %arg13[%c0_73, %c0_74] : memref<1x128xf32, #tpu.memory_space<vmem>>, vector<1x128xf32>
    %163 = vector.shape_cast %162 : vector<1x128xf32> to vector<1x1x128xf32>
    %164 = vector.broadcast %163 : vector<1x1x128xf32> to vector<8x8x128xf32>
    %165 = arith.addf %161, %164 : vector<8x8x128xf32>
    %cst_75 = arith.constant 0.000000e+00 : f32
    %166 = vector.broadcast %cst_75 : f32 to vector<8x8x128xf32>
    %167 = arith.cmpf ogt, %165, %166 : vector<8x8x128xf32>
    %cst_76 = arith.constant 1.000000e-01 : f32
    %168 = vector.broadcast %cst_76 : f32 to vector<8x8x128xf32>
    %169 = arith.mulf %168, %165 : vector<8x8x128xf32>
    %170 = arith.select %167, %165, %169 : vector<8x8x128xi1>, vector<8x8x128xf32>
    %c1_77 = arith.constant 1 : index
    %c1_78 = arith.constant 1 : index
    %c0_79 = arith.constant 0 : index
    %171 = vector.load %arg17[%c1_77, %c1_78, %c0_79] : memref<10x10x128xf32, #tpu.memory_space<vmem>>, vector<8x8x128xf32>
    tpu.vector_store %arg17[%c1_77, %c1_78, %c0_79], %170 {strides = array<i32>} : memref<10x10x128xf32, #tpu.memory_space<vmem>>, vector<8x8x128xf32>,
    %c0_80 = arith.constant 0 : index
    %c0_81 = arith.constant 0 : index
    %c0_82 = arith.constant 0 : index
    %172 = vector.load %arg17[%c0_80, %c0_81, %c0_82] : memref<10x10x128xf32, #tpu.memory_space<vmem>>, vector<10x8x128xf32>
    %c0_83 = arith.constant 0 : index
    %c1_84 = arith.constant 1 : index
    %c0_85 = arith.constant 0 : index
    %173 = vector.load %arg17[%c0_83, %c1_84, %c0_85] : memref<10x10x128xf32, #tpu.memory_space<vmem>>, vector<10x8x128xf32>
    %c0_86 = arith.constant 0 : index
    %c2_87 = arith.constant 2 : index
    %c0_88 = arith.constant 0 : index
    %174 = vector.load %arg17[%c0_86, %c2_87, %c0_88] : memref<10x10x128xf32, #tpu.memory_space<vmem>>, vector<10x8x128xf32>
    %175 = vector.extract_strided_slice %19 {offsets = [0, 0], sizes = [1, 128], strides = [1, 1]} : vector<1x1152xf32> to vector<1x128xf32>
    %176 = vector.shape_cast %175 : vector<1x128xf32> to vector<1x1x128xf32>
    %177 = vector.extract_strided_slice %172 {offsets = [0, 0, 0], sizes = [8, 8, 128], strides = [1, 1, 1]} : vector<10x8x128xf32> to vector<8x8x128xf32>
    %178 = vector.broadcast %176 : vector<1x1x128xf32> to vector<8x8x128xf32>
    %179 = arith.mulf %177, %178 : vector<8x8x128xf32>
    %180 = vector.extract_strided_slice %19 {offsets = [0, 128], sizes = [1, 128], strides = [1, 1]} : vector<1x1152xf32> to vector<1x128xf32>
    %181 = vector.shape_cast %180 : vector<1x128xf32> to vector<1x1x128xf32>
    %182 = vector.extract_strided_slice %173 {offsets = [0, 0, 0], sizes = [8, 8, 128], strides = [1, 1, 1]} : vector<10x8x128xf32> to vector<8x8x128xf32>
    %183 = vector.broadcast %181 : vector<1x1x128xf32> to vector<8x8x128xf32>
    %184 = arith.mulf %182, %183 : vector<8x8x128xf32>
    %185 = arith.addf %179, %184 : vector<8x8x128xf32>
    %186 = vector.extract_strided_slice %19 {offsets = [0, 256], sizes = [1, 128], strides = [1, 1]} : vector<1x1152xf32> to vector<1x128xf32>
    %187 = vector.shape_cast %186 : vector<1x128xf32> to vector<1x1x128xf32>
    %188 = vector.extract_strided_slice %174 {offsets = [0, 0, 0], sizes = [8, 8, 128], strides = [1, 1, 1]} : vector<10x8x128xf32> to vector<8x8x128xf32>
    %189 = vector.broadcast %187 : vector<1x1x128xf32> to vector<8x8x128xf32>
    %190 = arith.mulf %188, %189 : vector<8x8x128xf32>
    %191 = arith.addf %185, %190 : vector<8x8x128xf32>
    %192 = vector.extract_strided_slice %19 {offsets = [0, 384], sizes = [1, 128], strides = [1, 1]} : vector<1x1152xf32> to vector<1x128xf32>
    %193 = vector.shape_cast %192 : vector<1x128xf32> to vector<1x1x128xf32>
    %194 = vector.extract_strided_slice %172 {offsets = [1, 0, 0], sizes = [8, 8, 128], strides = [1, 1, 1]} : vector<10x8x128xf32> to vector<8x8x128xf32>
    %195 = vector.broadcast %193 : vector<1x1x128xf32> to vector<8x8x128xf32>
    %196 = arith.mulf %194, %195 : vector<8x8x128xf32>
    %197 = arith.addf %191, %196 : vector<8x8x128xf32>
    %198 = vector.extract_strided_slice %19 {offsets = [0, 512], sizes = [1, 128], strides = [1, 1]} : vector<1x1152xf32> to vector<1x128xf32>
    %199 = vector.shape_cast %198 : vector<1x128xf32> to vector<1x1x128xf32>
    %200 = vector.extract_strided_slice %173 {offsets = [1, 0, 0], sizes = [8, 8, 128], strides = [1, 1, 1]} : vector<10x8x128xf32> to vector<8x8x128xf32>
    %201 = vector.broadcast %199 : vector<1x1x128xf32> to vector<8x8x128xf32>
    %202 = arith.mulf %200, %201 : vector<8x8x128xf32>
    %203 = arith.addf %197, %202 : vector<8x8x128xf32>
    %204 = vector.extract_strided_slice %19 {offsets = [0, 640], sizes = [1, 128], strides = [1, 1]} : vector<1x1152xf32> to vector<1x128xf32>
    %205 = vector.shape_cast %204 : vector<1x128xf32> to vector<1x1x128xf32>
    %206 = vector.extract_strided_slice %174 {offsets = [1, 0, 0], sizes = [8, 8, 128], strides = [1, 1, 1]} : vector<10x8x128xf32> to vector<8x8x128xf32>
    %207 = vector.broadcast %205 : vector<1x1x128xf32> to vector<8x8x128xf32>
    %208 = arith.mulf %206, %207 : vector<8x8x128xf32>
    %209 = arith.addf %203, %208 : vector<8x8x128xf32>
    %210 = vector.extract_strided_slice %19 {offsets = [0, 768], sizes = [1, 128], strides = [1, 1]} : vector<1x1152xf32> to vector<1x128xf32>
    %211 = vector.shape_cast %210 : vector<1x128xf32> to vector<1x1x128xf32>
    %212 = vector.extract_strided_slice %172 {offsets = [2, 0, 0], sizes = [8, 8, 128], strides = [1, 1, 1]} : vector<10x8x128xf32> to vector<8x8x128xf32>
    %213 = vector.broadcast %211 : vector<1x1x128xf32> to vector<8x8x128xf32>
    %214 = arith.mulf %212, %213 : vector<8x8x128xf32>
    %215 = arith.addf %209, %214 : vector<8x8x128xf32>
    %216 = vector.extract_strided_slice %19 {offsets = [0, 896], sizes = [1, 128], strides = [1, 1]} : vector<1x1152xf32> to vector<1x128xf32>
    %217 = vector.shape_cast %216 : vector<1x128xf32> to vector<1x1x128xf32>
    %218 = vector.extract_strided_slice %173 {offsets = [2, 0, 0], sizes = [8, 8, 128], strides = [1, 1, 1]} : vector<10x8x128xf32> to vector<8x8x128xf32>
    %219 = vector.broadcast %217 : vector<1x1x128xf32> to vector<8x8x128xf32>
    %220 = arith.mulf %218, %219 : vector<8x8x128xf32>
    %221 = arith.addf %215, %220 : vector<8x8x128xf32>
    %222 = vector.extract_strided_slice %19 {offsets = [0, 1024], sizes = [1, 128], strides = [1, 1]} : vector<1x1152xf32> to vector<1x128xf32>
    %223 = vector.shape_cast %222 : vector<1x128xf32> to vector<1x1x128xf32>
    %224 = vector.extract_strided_slice %174 {offsets = [2, 0, 0], sizes = [8, 8, 128], strides = [1, 1, 1]} : vector<10x8x128xf32> to vector<8x8x128xf32>
    %225 = vector.broadcast %223 : vector<1x1x128xf32> to vector<8x8x128xf32>
    %226 = arith.mulf %224, %225 : vector<8x8x128xf32>
    %227 = arith.addf %221, %226 : vector<8x8x128xf32>
    %cst_89 = arith.constant 0.000000e+00 : f32
    %228 = vector.broadcast %cst_89 : f32 to vector<8x8x128xf32>
    %229 = arith.cmpf ogt, %227, %228 : vector<8x8x128xf32>
    %cst_90 = arith.constant 1.000000e-01 : f32
    %230 = vector.broadcast %cst_90 : f32 to vector<8x8x128xf32>
    %231 = arith.mulf %230, %227 : vector<8x8x128xf32>
    %232 = arith.select %229, %227, %231 : vector<8x8x128xi1>, vector<8x8x128xf32>
    %233 = vector.shape_cast %232 : vector<8x8x128xf32> to vector<64x128xf32>
    %234 = arith.truncf %233 : vector<64x128xf32> to vector<64x128xbf16>
    %c0_91 = arith.constant 0 : index
    %c0_92 = arith.constant 0 : index
    %235 = vector.load %arg10[%c0_91, %c0_92] : memref<128x128xbf16, #tpu.memory_space<vmem>>, vector<128x128xbf16>
    %cst_93 = arith.constant dense<0.000000e+00> : vector<64x128xf32>
    %236 = tpu.matmul %234, %235, %cst_93 {dimension_numbers = #tpu.dot_dimension_numbers<[1], [0], [0], [1], [0, 0, 1, 1], [], []>} : vector<64x128xbf16>, vector<128x128xbf16>, vector<64x128xf32> -> vector<64x128xf32>
    %237 = vector.shape_cast %236 : vector<64x128xf32> to vector<8x8x128xf32>
    %c0_94 = arith.constant 0 : index
    %c0_95 = arith.constant 0 : index
    %238 = vector.load %arg11[%c0_94, %c0_95] : memref<1x128xf32, #tpu.memory_space<vmem>>, vector<1x128xf32>
    %239 = vector.shape_cast %238 : vector<1x128xf32> to vector<1x1x128xf32>
    %240 = vector.broadcast %239 : vector<1x1x128xf32> to vector<8x8x128xf32>
    %241 = arith.addf %237, %240 : vector<8x8x128xf32>
    %242 = vector.broadcast %37 : vector<1x1x128xf32> to vector<8x8x128xf32>
    %243 = arith.mulf %170, %242 : vector<8x8x128xf32>
    %244 = arith.addf %241, %243 : vector<8x8x128xf32>
    %cst_96 = arith.constant 0.000000e+00 : f32
    %245 = vector.broadcast %cst_96 : f32 to vector<8x8x128xf32>
    %246 = arith.cmpf ogt, %244, %245 : vector<8x8x128xf32>
    %cst_97 = arith.constant 1.000000e-01 : f32
    %247 = vector.broadcast %cst_97 : f32 to vector<8x8x128xf32>
    %248 = arith.mulf %247, %244 : vector<8x8x128xf32>
    %249 = arith.select %246, %244, %248 : vector<8x8x128xi1>, vector<8x8x128xf32>
    %c1_98 = arith.constant 1 : index
    %c1_99 = arith.constant 1 : index
    %c0_100 = arith.constant 0 : index
    %250 = vector.load %arg17[%c1_98, %c1_99, %c0_100] : memref<10x10x128xf32, #tpu.memory_space<vmem>>, vector<8x8x128xf32>
    tpu.vector_store %arg17[%c1_98, %c1_99, %c0_100], %249 {strides = array<i32>} : memref<10x10x128xf32, #tpu.memory_space<vmem>>, vector<8x8x128xf32>,
    %c0_101 = arith.constant 0 : index
    %c0_102 = arith.constant 0 : index
    %c0_103 = arith.constant 0 : index
    %251 = vector.load %arg17[%c0_101, %c0_102, %c0_103] : memref<10x10x128xf32, #tpu.memory_space<vmem>>, vector<10x8x128xf32>
    %c0_104 = arith.constant 0 : index
    %c1_105 = arith.constant 1 : index
    %c0_106 = arith.constant 0 : index
    %252 = vector.load %arg17[%c0_104, %c1_105, %c0_106] : memref<10x10x128xf32, #tpu.memory_space<vmem>>, vector<10x8x128xf32>
    %c0_107 = arith.constant 0 : index
    %c2_108 = arith.constant 2 : index
    %c0_109 = arith.constant 0 : index
    %253 = vector.load %arg17[%c0_107, %c2_108, %c0_109] : memref<10x10x128xf32, #tpu.memory_space<vmem>>, vector<10x8x128xf32>
    %254 = vector.extract_strided_slice %251 {offsets = [0, 0, 0], sizes = [8, 8, 128], strides = [1, 1, 1]} : vector<10x8x128xf32> to vector<8x8x128xf32>
    %255 = vector.shape_cast %254 : vector<8x8x128xf32> to vector<64x128xf32>
    %256 = arith.truncf %255 : vector<64x128xf32> to vector<64x128xbf16>
    %c0_110 = arith.constant 0 : index
    %c0_111 = arith.constant 0 : index
    %257 = vector.load %arg18[%c0_110, %c0_111] : memref<64x1152xbf16, #tpu.memory_space<vmem>>, vector<64x128xbf16>
    tpu.vector_store %arg18[%c0_110, %c0_111], %256 {strides = array<i32>} : memref<64x1152xbf16, #tpu.memory_space<vmem>>, vector<64x128xbf16>,
    %258 = vector.extract_strided_slice %252 {offsets = [0, 0, 0], sizes = [8, 8, 128], strides = [1, 1, 1]} : vector<10x8x128xf32> to vector<8x8x128xf32>
    %259 = vector.shape_cast %258 : vector<8x8x128xf32> to vector<64x128xf32>
    %260 = arith.truncf %259 : vector<64x128xf32> to vector<64x128xbf16>
    %c0_112 = arith.constant 0 : index
    %c128_113 = arith.constant 128 : index
    %261 = vector.load %arg18[%c0_112, %c128_113] : memref<64x1152xbf16, #tpu.memory_space<vmem>>, vector<64x128xbf16>
    tpu.vector_store %arg18[%c0_112, %c128_113], %260 {strides = array<i32>} : memref<64x1152xbf16, #tpu.memory_space<vmem>>, vector<64x128xbf16>,
    %262 = vector.extract_strided_slice %253 {offsets = [0, 0, 0], sizes = [8, 8, 128], strides = [1, 1, 1]} : vector<10x8x128xf32> to vector<8x8x128xf32>
    %263 = vector.shape_cast %262 : vector<8x8x128xf32> to vector<64x128xf32>
    %264 = arith.truncf %263 : vector<64x128xf32> to vector<64x128xbf16>
    %c0_114 = arith.constant 0 : index
    %c256_115 = arith.constant 256 : index
    %265 = vector.load %arg18[%c0_114, %c256_115] : memref<64x1152xbf16, #tpu.memory_space<vmem>>, vector<64x128xbf16>
    tpu.vector_store %arg18[%c0_114, %c256_115], %264 {strides = array<i32>} : memref<64x1152xbf16, #tpu.memory_space<vmem>>, vector<64x128xbf16>,
    %266 = vector.extract_strided_slice %251 {offsets = [1, 0, 0], sizes = [8, 8, 128], strides = [1, 1, 1]} : vector<10x8x128xf32> to vector<8x8x128xf32>
    %267 = vector.shape_cast %266 : vector<8x8x128xf32> to vector<64x128xf32>
    %268 = arith.truncf %267 : vector<64x128xf32> to vector<64x128xbf16>
    %c0_116 = arith.constant 0 : index
    %c384_117 = arith.constant 384 : index
    %269 = vector.load %arg18[%c0_116, %c384_117] : memref<64x1152xbf16, #tpu.memory_space<vmem>>, vector<64x128xbf16>
    tpu.vector_store %arg18[%c0_116, %c384_117], %268 {strides = array<i32>} : memref<64x1152xbf16, #tpu.memory_space<vmem>>, vector<64x128xbf16>,
    %270 = vector.extract_strided_slice %252 {offsets = [1, 0, 0], sizes = [8, 8, 128], strides = [1, 1, 1]} : vector<10x8x128xf32> to vector<8x8x128xf32>
    %271 = vector.shape_cast %270 : vector<8x8x128xf32> to vector<64x128xf32>
    %272 = arith.truncf %271 : vector<64x128xf32> to vector<64x128xbf16>
    %c0_118 = arith.constant 0 : index
    %c512_119 = arith.constant 512 : index
    %273 = vector.load %arg18[%c0_118, %c512_119] : memref<64x1152xbf16, #tpu.memory_space<vmem>>, vector<64x128xbf16>
    tpu.vector_store %arg18[%c0_118, %c512_119], %272 {strides = array<i32>} : memref<64x1152xbf16, #tpu.memory_space<vmem>>, vector<64x128xbf16>,
    %274 = vector.extract_strided_slice %253 {offsets = [1, 0, 0], sizes = [8, 8, 128], strides = [1, 1, 1]} : vector<10x8x128xf32> to vector<8x8x128xf32>
    %275 = vector.shape_cast %274 : vector<8x8x128xf32> to vector<64x128xf32>
    %276 = arith.truncf %275 : vector<64x128xf32> to vector<64x128xbf16>
    %c0_120 = arith.constant 0 : index
    %c640_121 = arith.constant 640 : index
    %277 = vector.load %arg18[%c0_120, %c640_121] : memref<64x1152xbf16, #tpu.memory_space<vmem>>, vector<64x128xbf16>
    tpu.vector_store %arg18[%c0_120, %c640_121], %276 {strides = array<i32>} : memref<64x1152xbf16, #tpu.memory_space<vmem>>, vector<64x128xbf16>,
    %278 = vector.extract_strided_slice %251 {offsets = [2, 0, 0], sizes = [8, 8, 128], strides = [1, 1, 1]} : vector<10x8x128xf32> to vector<8x8x128xf32>
    %279 = vector.shape_cast %278 : vector<8x8x128xf32> to vector<64x128xf32>
    %280 = arith.truncf %279 : vector<64x128xf32> to vector<64x128xbf16>
    %c0_122 = arith.constant 0 : index
    %c768_123 = arith.constant 768 : index
    %281 = vector.load %arg18[%c0_122, %c768_123] : memref<64x1152xbf16, #tpu.memory_space<vmem>>, vector<64x128xbf16>
    tpu.vector_store %arg18[%c0_122, %c768_123], %280 {strides = array<i32>} : memref<64x1152xbf16, #tpu.memory_space<vmem>>, vector<64x128xbf16>,
    %282 = vector.extract_strided_slice %252 {offsets = [2, 0, 0], sizes = [8, 8, 128], strides = [1, 1, 1]} : vector<10x8x128xf32> to vector<8x8x128xf32>
    %283 = vector.shape_cast %282 : vector<8x8x128xf32> to vector<64x128xf32>
    %284 = arith.truncf %283 : vector<64x128xf32> to vector<64x128xbf16>
    %c0_124 = arith.constant 0 : index
    %c896_125 = arith.constant 896 : index
    %285 = vector.load %arg18[%c0_124, %c896_125] : memref<64x1152xbf16, #tpu.memory_space<vmem>>, vector<64x128xbf16>
    tpu.vector_store %arg18[%c0_124, %c896_125], %284 {strides = array<i32>} : memref<64x1152xbf16, #tpu.memory_space<vmem>>, vector<64x128xbf16>,
    %286 = vector.extract_strided_slice %253 {offsets = [2, 0, 0], sizes = [8, 8, 128], strides = [1, 1, 1]} : vector<10x8x128xf32> to vector<8x8x128xf32>
    %287 = vector.shape_cast %286 : vector<8x8x128xf32> to vector<64x128xf32>
    %288 = arith.truncf %287 : vector<64x128xf32> to vector<64x128xbf16>
    %c0_126 = arith.constant 0 : index
    %c1024_127 = arith.constant 1024 : index
    %289 = vector.load %arg18[%c0_126, %c1024_127] : memref<64x1152xbf16, #tpu.memory_space<vmem>>, vector<64x128xbf16>
    tpu.vector_store %arg18[%c0_126, %c1024_127], %288 {strides = array<i32>} : memref<64x1152xbf16, #tpu.memory_space<vmem>>, vector<64x128xbf16>,
    %c0_128 = arith.constant 0 : index
    %c0_129 = arith.constant 0 : index
    %290 = vector.load %arg18[%c0_128, %c0_129] : memref<64x1152xbf16, #tpu.memory_space<vmem>>, vector<64x1152xbf16>
    %c0_130 = arith.constant 0 : index
    %c0_131 = arith.constant 0 : index
    %291 = vector.load %arg14[%c0_130, %c0_131] : memref<1152x128xbf16, #tpu.memory_space<vmem>>, vector<1152x128xbf16>
    %cst_132 = arith.constant dense<0.000000e+00> : vector<64x128xf32>
    %292 = tpu.matmul %290, %291, %cst_132 {dimension_numbers = #tpu.dot_dimension_numbers<[1], [0], [0], [1], [0, 0, 1, 1], [], []>} : vector<64x1152xbf16>, vector<1152x128xbf16>, vector<64x128xf32> -> vector<64x128xf32>
    %293 = vector.shape_cast %292 : vector<64x128xf32> to vector<8x8x128xf32>
    %c0_133 = arith.constant 0 : index
    %c0_134 = arith.constant 0 : index
    %294 = vector.load %arg15[%c0_133, %c0_134] : memref<1x128xf32, #tpu.memory_space<vmem>>, vector<1x128xf32>
    %295 = vector.shape_cast %294 : vector<1x128xf32> to vector<1x1x128xf32>
    %296 = vector.broadcast %295 : vector<1x1x128xf32> to vector<8x8x128xf32>
    %297 = arith.addf %293, %296 : vector<8x8x128xf32>
    %298 = arith.addf %297, %38 : vector<8x8x128xf32>
    %c0_135 = arith.constant 0 : index
    %c0_136 = arith.constant 0 : index
    %c0_137 = arith.constant 0 : index
    %299 = vector.load %arg16[%c0_135, %c0_136, %c0_137] : memref<8x8x128xf32, #tpu.memory_space<vmem>>, vector<8x8x128xf32>
    tpu.vector_store %arg16[%c0_135, %c0_136, %c0_137], %298 {strides = array<i32>} : memref<8x8x128xf32, #tpu.memory_space<vmem>>, vector<8x8x128xf32>,
    return
  }
  func.func @transform_0(%arg0: i32) -> (i32, i32, i32) {
    %c0_i32 = arith.constant 0 : i32
    %c0_i32_0 = arith.constant 0 : i32
    %c0_i32_1 = arith.constant 0 : i32
    %c0_i32_2 = arith.constant 0 : i32
    return %c0_i32, %c0_i32_0, %c0_i32_1 : i32, i32, i32
  }
  func.func @transform_1(%arg0: i32) -> (i32, i32) {
    %c0_i32 = arith.constant 0 : i32
    %c0_i32_0 = arith.constant 0 : i32
    %c0_i32_1 = arith.constant 0 : i32
    return %c0_i32, %c0_i32_0 : i32, i32
  }
  func.func @transform_2(%arg0: i32) -> (i32, i32) {
    %c0_i32 = arith.constant 0 : i32
    %c0_i32_0 = arith.constant 0 : i32
    %c0_i32_1 = arith.constant 0 : i32
    return %c0_i32, %c0_i32_0 : i32, i32
  }
  func.func @transform_3(%arg0: i32) -> (i32, i32) {
    %c0_i32 = arith.constant 0 : i32
    %c0_i32_0 = arith.constant 0 : i32
    %c0_i32_1 = arith.constant 0 : i32
    return %c0_i32, %c0_i32_0 : i32, i32
  }
  func.func @transform_4(%arg0: i32) -> (i32, i32) {
    %c0_i32 = arith.constant 0 : i32
    %c0_i32_0 = arith.constant 0 : i32
    %c0_i32_1 = arith.constant 0 : i32
    return %c0_i32, %c0_i32_0 : i32, i32
  }
  func.func @transform_5(%arg0: i32) -> (i32, i32) {
    %c0_i32 = arith.constant 0 : i32
    %c0_i32_0 = arith.constant 0 : i32
    %c0_i32_1 = arith.constant 0 : i32
    return %c0_i32, %c0_i32_0 : i32, i32
  }
  func.func @transform_6(%arg0: i32) -> (i32, i32) {
    %c0_i32 = arith.constant 0 : i32
    %c0_i32_0 = arith.constant 0 : i32
    %c0_i32_1 = arith.constant 0 : i32
    return %c0_i32, %c0_i32_0 : i32, i32
  }
  func.func @transform_7(%arg0: i32) -> (i32, i32) {
    %c0_i32 = arith.constant 0 : i32
    %c0_i32_0 = arith.constant 0 : i32
    %c0_i32_1 = arith.constant 0 : i32
    return %c0_i32, %c0_i32_0 : i32, i32
  }
  func.func @transform_8(%arg0: i32) -> (i32, i32) {
    %c0_i32 = arith.constant 0 : i32
    %c0_i32_0 = arith.constant 0 : i32
    %c0_i32_1 = arith.constant 0 : i32
    return %c0_i32, %c0_i32_0 : i32, i32
  }
  func.func @transform_9(%arg0: i32) -> (i32, i32) {
    %c0_i32 = arith.constant 0 : i32
    %c0_i32_0 = arith.constant 0 : i32
    %c0_i32_1 = arith.constant 0 : i32
    return %c0_i32, %c0_i32_0 : i32, i32
  }
  func.func @transform_10(%arg0: i32) -> (i32, i32) {
    %c0_i32 = arith.constant 0 : i32
    %c0_i32_0 = arith.constant 0 : i32
    %c0_i32_1 = arith.constant 0 : i32
    return %c0_i32, %c0_i32_0 : i32, i32
  }
  func.func @transform_11(%arg0: i32) -> (i32, i32) {
    %c0_i32 = arith.constant 0 : i32
    %c0_i32_0 = arith.constant 0 : i32
    %c0_i32_1 = arith.constant 0 : i32
    return %c0_i32, %c0_i32_0 : i32, i32
  }
  func.func @transform_12(%arg0: i32) -> (i32, i32) {
    %c0_i32 = arith.constant 0 : i32
    %c0_i32_0 = arith.constant 0 : i32
    %c0_i32_1 = arith.constant 0 : i32
    return %c0_i32, %c0_i32_0 : i32, i32
  }
  func.func @transform_13(%arg0: i32) -> (i32, i32) {
    %c0_i32 = arith.constant 0 : i32
    %c0_i32_0 = arith.constant 0 : i32
    %c0_i32_1 = arith.constant 0 : i32
    return %c0_i32, %c0_i32_0 : i32, i32
  }
  func.func @transform_14(%arg0: i32) -> (i32, i32) {
    %c0_i32 = arith.constant 0 : i32
    %c0_i32_0 = arith.constant 0 : i32
    %c0_i32_1 = arith.constant 0 : i32
    return %c0_i32, %c0_i32_0 : i32, i32
  }
  func.func @transform_15(%arg0: i32) -> (i32, i32, i32) {
    %c0_i32 = arith.constant 0 : i32
    %c0_i32_0 = arith.constant 0 : i32
    %c0_i32_1 = arith.constant 0 : i32
    %c0_i32_2 = arith.constant 0 : i32
    return %c0_i32, %c0_i32_0, %c0_i32_1 : i32, i32, i32
  }
}

</mosaic_0001>

<bundles_post_ra>
// kernel: tpu_custom_call.1
= control target key start
LH: loop header
LB: loop body
LE: loop exit
PB: predicated region body
PF: predicated region fallthrough
CT: control target
= control target key end

     0   :  { %20 = vsyncpa [#allocation5], 0  ;;  %s7450_s0 = inlined_call_operand.vmem [shape: f32[8,8,128], index: 0, kind: input, shape index: {}]   ;;  %s7451_s1 = inlined_call_operand.hbm [shape: f32[8,128], index: 1, kind: input, shape index: {}]   ;;  %s7452_s2 = inlined_call_operand.hbm [shape: f32[128,256], index: 2, kind: input, shape index: {}]   ;;  %s7453_s3 = inlined_call_operand.hbm [shape: bf16[128,1152], index: 3, kind: input, shape index: {}]   ;;  %s7454_s4 = inlined_call_operand.hbm [shape: bf16[128,1152], index: 4, kind: input, shape index: {}]   ;;  %s7455_s5 = inlined_call_operand.vmem [shape: f32[128,32], index: 5, kind: input, shape index: {}]   ;;  %s7456_s6 = inlined_call_operand.vmem [shape: f32[32,256], index: 6, kind: input, shape index: {}]   ;;  %s7457_s7 = inlined_call_operand.hbm [shape: bf16[128,128], index: 7, kind: input, shape index: {}]   ;;  %s7458_s8 = inlined_call_operand.vmem [shape: f32[1,128], index: 8, kind: input, shape index: {}]   ;;  %s7459_s9 = inlined_call_operand.vmem [shape: bf16[128,128], index: 9, kind: input, shape index: {}]   ;;  %s7460_s10 = inlined_call_operand.vmem [shape: f32[1,128], index: 10, kind: input, shape index: {}]   ;;  %s7461_s11 = inlined_call_operand.hbm [shape: bf16[1152,128], index: 11, kind: input, shape index: {}]   ;;  %s7462_s12 = inlined_call_operand.vmem [shape: f32[1,128], index: 12, kind: input, shape index: {}]   ;;  %s7463_s13 = inlined_call_operand.hbm [shape: bf16[1152,128], index: 13, kind: input, shape index: {}]   ;;  %s7464_s14 = inlined_call_operand.vmem [shape: f32[1,128], index: 14, kind: input, shape index: {}]   ;;  %s7465_s15 = inlined_call_operand.hbm [shape: f32[8,8,128], index: 15, kind: output, shape index: {}]  }
   0x1   :  { %21 = vsyncpa [#allocation8], 0 }
   0x2   :  { %22 = vsyncpa [#allocation11], 0 }
   0x3   :  { %23 = vsyncpa [#allocation14], 0 }
   0x4   :  { %24 = vsyncpa [#allocation6], 0  ;;  %s6336_s18 = smov [#allocation7]   ;;  %s6150_s22 = scalar_lea.hbm %s7452_s2, 4096 }
   0x5   :  { %s42_s19 = sshll.u32 %s6336_s18, 4  ;;  %p6151_p0 = scmp.ne.s32.totalorder %s7452_s2, %s6150_s22  ;;  %s43_s19 = int_to_ptr.vmem [resolvable:$true] %s42_s19 }
   0x6   :  { %p6154_p1 = scmp.lt.u32.totalorder %s6150_s22, %s7452_s2 }
   0x8   :  { %p6156_p2 = pnand %p6154_p1, %p6151_p0 }
   0xa   :  { %6159 = shalt.err (!%p6156_p2)
}
   0xb   :  { %s6160_s27 = scalar_lea.vmem %s43_s19, 4096  ;;  %p6165_p4 = scmp.lt.s32.totalorder %s43_s19, %s43_s19 }
   0xc   :  { %p6161_p3 = scmp.ne.s32.totalorder %s43_s19, %s6160_s27  ;;  %p6166_p5 = scmp.lt.s32.totalorder %s6160_s27, %s6160_s27 }
   0xe   :  { %p6167_p6 = por %p6166_p5, %p6165_p4 }
  0x10   :  { %p6168_p7 = pnand %p6167_p6, %p6161_p3 }
  0x12   :  { %6171 = shalt.err (!%p6168_p7)
}
  0x13   :  { %s6337_s28 = smov 256   ;;  %s6338_s29 = smov 16  }
  0x14   :  { %48 = dma.hbm_to_vmem [thread:$0]  %s7452_s2, 4096, %s43_s19, [#allocation8], %s6337_s28, %s6337_s28, %s6338_s29  }
  0x15   :  { %s6339_s17 = smov [#allocation10]   ;;  %s6172_s22 = scalar_lea.hbm %s7454_s4, 9216 }
  0x16   :  { %s66_s18 = sshll.u32 %s6339_s17, 4  ;;  %p6173_p8 = scmp.ne.s32.totalorder %s7454_s4, %s6172_s22  ;;  %s67_s18 = int_to_ptr.vmem [resolvable:$true] %s66_s18 }
  0x17   :  { %p6176_p9 = scmp.lt.u32.totalorder %s6172_s22, %s7454_s4 }
  0x19   :  { %p6178_p10 = pnand %p6176_p9, %p6173_p8 }
  0x1b   :  { %6181 = shalt.err (!%p6178_p10)
}
  0x1c   :  { %s6182_s27 = scalar_lea.vmem %s67_s18, 9216  ;;  %p6187_p12 = scmp.lt.s32.totalorder %s67_s18, %s67_s18 }
  0x1d   :  { %p6183_p11 = scmp.ne.s32.totalorder %s67_s18, %s6182_s27  ;;  %p6188_p13 = scmp.lt.s32.totalorder %s6182_s27, %s6182_s27 }
  0x1f   :  { %p6189_p0 = por %p6188_p13, %p6187_p12 }
  0x21   :  { %p6190_p1 = pnand %p6189_p0, %p6183_p11 }
  0x23   :  { %6193 = shalt.err (!%p6190_p1)
}
  0x24   :  { %s6340_s2 = smov 576   ;;  %s6341_s19 = smov 36  }
  0x25   :  { %72 = dma.hbm_to_vmem [thread:$0]  %s7454_s4, 9216, %s67_s18, [#allocation11], %s6340_s2, %s6340_s2, %s6341_s19  }
  0x26   :  { %s6342_s30 = smov [#allocation13]   ;;  %s6343_s17 = smov [#allocation4]  }
  0x27   :  { %s100_s16 = sshll.u32 %s6342_s30, 4  ;;  %s33_s20 = sshll.u32 %s6343_s17, 4  ;;  %s101_s16 = int_to_ptr.vmem [resolvable:$true] %s100_s16  ;;  %s34_s20 = int_to_ptr.vmem [resolvable:$true] %s33_s20 }
  0x28   :  { %s6194_s23 = scalar_lea.hbm %s7461_s11, 9216 }
  0x29   :  { %p6195_p2 = scmp.ne.s32.totalorder %s7461_s11, %s6194_s23  ;;  %p6198_p3 = scmp.lt.u32.totalorder %s6194_s23, %s7461_s11 }
  0x2b   :  { %p6200_p4 = pnand %p6198_p3, %p6195_p2 }
  0x2d   :  { %6203 = shalt.err (!%p6200_p4)
}
  0x2e   :  { %s6204_s4 = scalar_lea.vmem %s101_s16, 9216  ;;  %p6209_p6 = scmp.lt.s32.totalorder %s101_s16, %s101_s16 }
  0x2f   :  { %p6205_p5 = scmp.ne.s32.totalorder %s101_s16, %s6204_s4  ;;  %p6210_p7 = scmp.lt.s32.totalorder %s6204_s4, %s6204_s4 }
  0x31   :  { %p6211_p8 = por %p6210_p7, %p6209_p6 }
  0x33   :  { %p6212_p9 = pnand %p6211_p8, %p6205_p5 }
  0x35   :  { %6215 = shalt.err (!%p6212_p9)
}
  0x36   :  { %s6344_s18 = smov 64   ;;  %s6345_s28 = smov 4  }
  0x37   :  { %106 = dma.hbm_to_vmem [thread:$0]  %s7461_s11, 9216, %s101_s16, [#allocation14], %s6344_s18, %s6344_s18, %s6345_s28  }
  0x38   :  { %s6216_s22 = scalar_lea.hbm %s7451_s1, 128 }
  0x39   :  { %p6217_p10 = scmp.ne.s32.totalorder %s7451_s1, %s6216_s22  ;;  %p6220_p11 = scmp.lt.u32.totalorder %s6216_s22, %s7451_s1 }
  0x3b   :  { %p6222_p12 = pnand %p6220_p11, %p6217_p10 }
  0x3d   :  { %6225 = shalt.err (!%p6222_p12)
}
  0x3e   :  { %s6226_s27 = scalar_lea.vmem %s34_s20, 128  ;;  %p6231_p0 = scmp.lt.s32.totalorder %s34_s20, %s34_s20 }
  0x3f   :  { %p6227_p13 = scmp.ne.s32.totalorder %s34_s20, %s6226_s27  ;;  %p6232_p1 = scmp.lt.s32.totalorder %s6226_s27, %s6226_s27 }
  0x41   :  { %p6233_p2 = por %p6232_p1, %p6231_p0 }
  0x43   :  { %p6234_p3 = pnand %p6233_p2, %p6227_p13 }
  0x45   :  { %6237 = shalt.err (!%p6234_p3)
}
  0x46   :  { %36 = dma.hbm_to_vmem [thread:$0]  %s7451_s1, 128, %s34_s20, [#allocation5]  }
  0x47   :  { %s6346_s4 = smov [#allocation9]   ;;  %s6347_s30 = smov [#allocation12]  }
  0x48   :  { %s54_s29 = sshll.u32 %s6346_s4, 4  ;;  %s82_s17 = sshll.u32 %s6347_s30, 4  ;;  %s55_s29 = int_to_ptr.vmem [resolvable:$true] %s54_s29  ;;  %s6490_s17 = int_to_ptr.vmem [resolvable:$true] %s82_s17 }
  0x49   :  { %s6238_s23 = scalar_lea.hbm %s7453_s3, 9216 }
  0x4a   :  { %p6239_p4 = scmp.ne.s32.totalorder %s7453_s3, %s6238_s23  ;;  %p6242_p5 = scmp.lt.u32.totalorder %s6238_s23, %s7453_s3 }
  0x4c   :  { %p6244_p6 = pnand %p6242_p5, %p6239_p4 }
  0x4e   :  { %6247 = shalt.err (!%p6244_p6)
}
  0x4f   :  { %s6248_s1 = scalar_lea.vmem %s55_s29, 9216  ;;  %p6253_p8 = scmp.lt.s32.totalorder %s55_s29, %s55_s29 }
  0x50   :  { %p6249_p7 = scmp.ne.s32.totalorder %s55_s29, %s6248_s1  ;;  %p6254_p9 = scmp.lt.s32.totalorder %s6248_s1, %s6248_s1 }
  0x52   :  { %p6255_p10 = por %p6254_p9, %p6253_p8 }
  0x54   :  { %p6256_p11 = pnand %p6255_p10, %p6249_p7 }
  0x56   :  { %6259 = shalt.err (!%p6256_p11)
}
  0x57   :  { %60 = dma.hbm_to_vmem [thread:$0]  %s7453_s3, 9216, %s55_s29, [#allocation8], %s6340_s2, %s6340_s2, %s6341_s19  }
  0x58   :  { %s6260_s30 = scalar_lea.hbm %s7457_s7, 1024 }
  0x59   :  { %p6261_p12 = scmp.ne.s32.totalorder %s7457_s7, %s6260_s30  ;;  %p6264_p13 = scmp.lt.u32.totalorder %s6260_s30, %s7457_s7 }
  0x5b   :  { %p6266_p0 = pnand %p6264_p13, %p6261_p12 }
  0x5d   :  { %6269 = shalt.err (!%p6266_p0)
}
  0x5e   :  { %s6270_s25 = scalar_lea.vmem %s6490_s17, 1024  ;;  %p6275_p2 = scmp.lt.s32.totalorder %s6490_s17, %s6490_s17 }
  0x5f   :  { %p6271_p1 = scmp.ne.s32.totalorder %s6490_s17, %s6270_s25  ;;  %p6276_p3 = scmp.lt.s32.totalorder %s6270_s25, %s6270_s25 }
  0x61   :  { %p6277_p4 = por %p6276_p3, %p6275_p2 }
  0x63   :  { %p6278_p5 = pnand %p6277_p4, %p6271_p1 }
  0x65   :  { %6281 = shalt.err (!%p6278_p5)
}
  0x66   :  { %88 = dma.hbm_to_vmem [thread:$0]  %s7457_s7, 1024, %s6490_s17, [#allocation11], %s6344_s18, %s6344_s18, %s6345_s28  }
  0x67   :  { %s6348_s19 = smov [#allocation15]   ;;  %s6282_s1 = scalar_lea.hbm %s7463_s13, 9216 }
  0x68   :  { %s114_s29 = sshll.u32 %s6348_s19, 4  ;;  %p6283_p6 = scmp.ne.s32.totalorder %s7463_s13, %s6282_s1  ;;  %s115_s29 = int_to_ptr.vmem [resolvable:$true] %s114_s29 }
  0x69   :  { %p6286_p7 = scmp.lt.u32.totalorder %s6282_s1, %s7463_s13 }
  0x6b   :  { %p6288_p8 = pnand %p6286_p7, %p6283_p6 }
  0x6d   :  { %6291 = shalt.err (!%p6288_p8)
}
  0x6e   :  { %s6292_s30 = scalar_lea.vmem %s115_s29, 9216  ;;  %p6297_p10 = scmp.lt.s32.totalorder %s115_s29, %s115_s29 }
  0x6f   :  { %p6293_p9 = scmp.ne.s32.totalorder %s115_s29, %s6292_s30  ;;  %p6298_p11 = scmp.lt.s32.totalorder %s6292_s30, %s6292_s30 }
  0x71   :  { %p6299_p12 = por %p6298_p11, %p6297_p10 }
  0x73   :  { %p6300_p13 = pnand %p6299_p12, %p6293_p9 }
  0x75   :  { %6303 = shalt.err (!%p6300_p13)
}
  0x76   :  { %120 = dma.hbm_to_vmem [thread:$0]  %s7463_s13, 9216, %s115_s29, [#allocation14], %s6344_s18, %s6344_s18, %s6345_s28  }
  0x77   :  { %6326 = dma.done.wait [#allocation5], 128  }
  0x78   :  { %6327 = vsyncadd [#allocation5], 4294967168 }
  0x79   :  { %6328 = dma.done.wait [#allocation8], 13312  }
  0x7a   :  { %6329 = vsyncadd [#allocation8], 4294953984 }
  0x7b   :  { %6330 = dma.done.wait [#allocation11], 10240  }
  0x7c   :  { %6331 = vsyncadd [#allocation11], 4294957056 }
  0x7d   :  { %6332 = dma.done.wait [#allocation14], 18432  }
  0x7e   :  { %6333 = vsyncadd [#allocation14], 4294948864  ;;  %v6349_v0 = vmov 0.0   ;;  %v167_v1 = vld [vmem:[#allocation7 + $0x8] sm:$0xff]  ;;  %v169_v2 = vld [vmem:[#allocation7 + $0x18] sm:$0xff]  ;;  %vm6351_vm1 = vmmov 0  }
  0x7f   :  { %262 = vmatprep.mubr.f32.mxu0 %v6349_v0  ;;  %145 = vst [vmem:[#allocation2] sm:$0xff] %v6349_v0  ;;  %146 = vst [vmem:[#allocation2 + $0x8] sm:$0x3] %v6349_v0  ;;  %v166_v3 = vld [vmem:[#allocation7] sm:$0xff]  ;;  %v5677_v4 = vpack.c.bf16 %v169_v2, %v167_v1  ;;  %v168_v5 = vld [vmem:[#allocation7 + $0x10] sm:$0xff]  ;;  %vm1678_vm12 = vcmask 261120  }
  0x80   :  { %147 = vst [vmem:[#allocation2 + $0x10] sm:$0xff] %v6349_v0  ;;  %148 = vst [vmem:[#allocation2 + $0x18] sm:$0x3] %v6349_v0  ;;  %v171_v6 = vld [vmem:[#allocation7 + $0x28] sm:$0xff]  ;;  %v173_v7 = vld [vmem:[#allocation7 + $0x38] sm:$0xff]  ;;  %v5679_v8 = vpack.c.bf16 %v168_v5, %v166_v3 }
  0x81   :  { %149 = vst [vmem:[#allocation2 + $0x20] sm:$0xff] %v6349_v0  ;;  %150 = vst [vmem:[#allocation2 + $0x28] sm:$0x3] %v6349_v0  ;;  %v5681_v9 = vpack.c.bf16 %v173_v7, %v171_v6  ;;  %v170_v10 = vld [vmem:[#allocation7 + $0x20] sm:$0xff]  ;;  %v172_v11 = vld [vmem:[#allocation7 + $0x30] sm:$0xff]  ;;  %5678 = vmatprep.subr.bf16.mxu0 %v5677_v4 }
  0x82   :  { %151 = vst [vmem:[#allocation2 + $0x30] sm:$0xff] %v6349_v0  ;;  %152 = vst [vmem:[#allocation2 + $0x38] sm:$0x3] %v6349_v0  ;;  %v175_v12 = vld [vmem:[#allocation7 + $0x48] sm:$0xff]  ;;  %v177_v13 = vld [vmem:[#allocation7 + $0x58] sm:$0xff]  ;;  %5680 = vmatpush1.bf16.msra.mxu0 %v5679_v8  ;;  %v5683_v14 = vpack.c.bf16 %v172_v11, %v170_v10 }
  0x83   :  { %153 = vst [vmem:[#allocation2 + $0x40] sm:$0xff] %v6349_v0  ;;  %154 = vst [vmem:[#allocation2 + $0x48] sm:$0x3] %v6349_v0  ;;  %5682 = vmatprep.subr.bf16.mxu0 %v5681_v9  ;;  %v5685_v15 = vpack.c.bf16 %v177_v13, %v175_v12  ;;  %v174_v16 = vld [vmem:[#allocation7 + $0x40] sm:$0xff]  ;;  %v176_v17 = vld [vmem:[#allocation7 + $0x50] sm:$0xff] }
  0x84   :  { %155 = vst [vmem:[#allocation2 + $0x50] sm:$0xff] %v6349_v0  ;;  %156 = vst [vmem:[#allocation2 + $0x58] sm:$0x3] %v6349_v0  ;;  %v179_v18 = vld [vmem:[#allocation7 + $0x68] sm:$0xff]  ;;  %v181_v19 = vld [vmem:[#allocation7 + $0x78] sm:$0xff]  ;;  %v5687_v20 = vpack.c.bf16 %v176_v17, %v174_v16 }
  0x85   :  { %157 = vst [vmem:[#allocation2 + $0x60] sm:$0xff] %v6349_v0  ;;  %158 = vst [vmem:[#allocation2 + $0x68] sm:$0x3] %v6349_v0  ;;  %v5689_v21 = vpack.c.bf16 %v181_v19, %v179_v18  ;;  %v178_v22 = vld [vmem:[#allocation7 + $0x60] sm:$0xff]  ;;  %v180_v23 = vld [vmem:[#allocation7 + $0x70] sm:$0xff] }
  0x86   :  { %159 = vst [vmem:[#allocation2 + $0x70] sm:$0xff] %v6349_v0  ;;  %160 = vst [vmem:[#allocation2 + $0x78] sm:$0x3] %v6349_v0  ;;  %5684 = vmatpush1.bf16.msra.mxu0 %v5683_v14  ;;  %v183_v24 = vld [vmem:[#allocation7 + $0x88] sm:$0xff]  ;;  %v185_v25 = vld [vmem:[#allocation7 + $0x98] sm:$0xff]  ;;  %v5691_v29 = vpack.c.bf16 %v180_v23, %v178_v22 }
  0x87   :  { %161 = vst [vmem:[#allocation2 + $0x80] sm:$0xff] %v6349_v0  ;;  %162 = vst [vmem:[#allocation2 + $0x88] sm:$0x3] %v6349_v0  ;;  %5686 = vmatprep.subr.bf16.mxu0 %v5685_v15  ;;  %v182_v26 = vld [vmem:[#allocation7 + $0x80] sm:$0xff]  ;;  %v184_v27 = vld [vmem:[#allocation7 + $0x90] sm:$0xff]  ;;  %v5693_v31 = vpack.c.bf16 %v185_v25, %v183_v24 }
  0x88   :  { %163 = vst [vmem:[#allocation2 + $0x90] sm:$0xff] %v6349_v0  ;;  %164 = vst [vmem:[#allocation2 + $0x98] sm:$0x3] %v6349_v0  ;;  %v5761_v28 = vld [vmem:[#allocation9 + $0x4] ss:$36 sps:$4 sm:$0xff]   ;;  %v189_v32 = vld [vmem:[#allocation7 + $0xb8] sm:$0xff]  ;;  %v5695_v37 = vpack.c.bf16 %v184_v27, %v182_v26 }
  0x89   :  { %v187_v30 = vld [vmem:[#allocation7 + $0xa8] sm:$0xff]  ;;  %724 = vmatprep.subr.bf16.mxu1 %v5761_v28  ;;  %v5766_v33 = vld [vmem:[#allocation9] ss:$36 sps:$4 sm:$0xff]   ;;  %v188_v36 = vld [vmem:[#allocation7 + $0xb0] sm:$0xff] }
  0x8a   :  { %5688 = vmatpush1.bf16.msra.mxu0 %v5687_v20  ;;  %v5767_v34 = vld [vmem:[#allocation9 + $0x4c] ss:$36 sps:$4 sm:$0xff]   ;;  %v186_v35 = vld [vmem:[#allocation7 + $0xa0] sm:$0xff]  ;;  %725 = vmatpush1.bf16.msra.mxu1 %v5766_v33  ;;  %v5697_v39 = vpack.c.bf16 %v189_v32, %v187_v30  ;;  %v5773_v40 = vld [vmem:[#allocation9 + $0x94] ss:$36 sps:$4 sm:$0xff]   ;;  %v6350_v20 = vmov 0  }
  0x8b   :  { %5690 = vmatprep.subr.bf16.mxu0 %v5689_v21  ;;  %726 = vmatprep.subr.bf16.mxu1 %v5767_v34  ;;  %v5772_v38 = vld [vmem:[#allocation9 + $0x48] ss:$36 sps:$4 sm:$0xff]   ;;  %v193_v42 = vld [vmem:[#allocation7 + $0xd8] sm:$0xff]  ;;  %v190_v43 = vld [vmem:[#allocation7 + $0xc0] sm:$0xff]  ;;  %v5699_v45 = vpack.c.bf16 %v188_v36, %v186_v35 }
  0x8c   :  { %v191_v41 = vld [vmem:[#allocation7 + $0xc8] sm:$0xff]  ;;  %v5778_v44 = vld [vmem:[#allocation9 + $0x90] ss:$36 sps:$4 sm:$0xff]   ;;  %v5779_v46 = vld [vmem:[#allocation9 + $0xdc] ss:$36 sps:$4 sm:$0xff]   ;;  %756 = vmatprep.mubr.bf16.mxu1 %v6350_v20 }
  0x8d   :  { %v5701_v47 = vpack.c.bf16 %v193_v42, %v191_v41  ;;  %v192_v48 = vld [vmem:[#allocation7 + $0xd0] sm:$0xff]  ;;  %v195_v49 = vld [vmem:[#allocation7 + $0xe8] sm:$0xff]  ;;  %v197_v50 = vld [vmem:[#allocation7 + $0xf8] sm:$0xff] }
  0x8e   :  { %5692 = vmatpush1.bf16.msra.mxu0 %v5691_v29  ;;  %727 = vmatpush1.bf16.msra.mxu1 %v5772_v38  ;;  %v194_v51 = vld [vmem:[#allocation7 + $0xe0] sm:$0xff]  ;;  %v5784_v52 = vld [vmem:[#allocation9 + $0xd8] ss:$36 sps:$4 sm:$0xff]   ;;  %v5703_v53 = vpack.c.bf16 %v192_v48, %v190_v43  ;;  %v5705_v55 = vpack.c.bf16 %v197_v50, %v195_v49  ;;  %v196_v56 = vld [vmem:[#allocation7 + $0xf0] sm:$0xff] }
  0x8f   :  { %5694 = vmatprep.subr.bf16.mxu0 %v5693_v31  ;;  %728 = vmatprep.subr.bf16.mxu1 %v5773_v40  ;;  %v5785_v54 = vld [vmem:[#allocation9 + $0x124] ss:$36 sps:$4 sm:$0xff]   ;;  %v5707_v58 = vpack.c.bf16 %v196_v56, %v194_v51  ;;  %v5791_v59 = vld [vmem:[#allocation9 + $0x16c] ss:$36 sps:$4 sm:$0xff]   ;;  %v165_v62 = vld [vmem:[#allocation4] sm:$0xff] }
  0x90   :  { %v5790_v57 = vld [vmem:[#allocation9 + $0x120] ss:$36 sps:$4 sm:$0xff]   ;;  %v5765_v60 = vld [vmem:[#allocation9 + $0xc] ss:$36 sps:$4 sm:$0xff]   ;;  %v5797_v0 = vld [vmem:[#allocation9 + $0x1b4] ss:$36 sps:$4 sm:$0xff]  }
  0x91   :  { %v5796_v61 = vld [vmem:[#allocation9 + $0x168] ss:$36 sps:$4 sm:$0xff]   ;;  %v5771_v1 = vld [vmem:[#allocation9 + $0x54] ss:$36 sps:$4 sm:$0xff]   ;;  %v5777_v4 = vld [vmem:[#allocation9 + $0x9c] ss:$36 sps:$4 sm:$0xff]  }
  0x92   :  { %5696 = vmatpush1.bf16.msra.mxu0 %v5695_v37  ;;  %729 = vmatpush1.bf16.msra.mxu1 %v5778_v44  ;;  %v5763_v63 = vld [vmem:[#allocation9 + $0x8] ss:$36 sps:$4 sm:$0xff]   ;;  %v5802_v2 = vld [vmem:[#allocation9 + $0x1b0] ss:$36 sps:$4 sm:$0xff]   ;;  %v5775_v5 = vld [vmem:[#allocation9 + $0x98] ss:$36 sps:$4 sm:$0xff]  }
  0x93   :  { %5698 = vmatprep.subr.bf16.mxu0 %v5697_v39  ;;  %730 = vmatprep.subr.bf16.mxu1 %v5779_v46  ;;  %v5769_v3 = vld [vmem:[#allocation9 + $0x50] ss:$36 sps:$4 sm:$0xff]   ;;  %v5783_v6 = vld [vmem:[#allocation9 + $0xe4] ss:$36 sps:$4 sm:$0xff]   ;;  %v5801_v12 = vld [vmem:[#allocation9 + $0x1bc] ss:$36 sps:$4 sm:$0xff]  }
  0x94   :  { %v5781_v7 = vld [vmem:[#allocation9 + $0xe0] ss:$36 sps:$4 sm:$0xff]   ;;  %v5789_v8 = vld [vmem:[#allocation9 + $0x12c] ss:$36 sps:$4 sm:$0xff]   ;;  %v5795_v10 = vld [vmem:[#allocation9 + $0x174] ss:$36 sps:$4 sm:$0xff]  }
  0x95   :  { %v5787_v9 = vld [vmem:[#allocation9 + $0x128] ss:$36 sps:$4 sm:$0xff]   ;;  %v5793_v11 = vld [vmem:[#allocation9 + $0x170] ss:$36 sps:$4 sm:$0xff]   ;;  %v5799_v13 = vld [vmem:[#allocation9 + $0x1b8] ss:$36 sps:$4 sm:$0xff]  }
  0x96   :  { %5700 = vmatpush1.bf16.msra.mxu0 %v5699_v45  ;;  %731 = vmatpush1.bf16.msra.mxu1 %v5784_v52  ;;  %v5803_v14 = vld [vmem:[#allocation9 + $0x1fc] ss:$36 sps:$4 sm:$0xff]   ;;  %v5807_v15 = vld [vmem:[#allocation9 + $0x204] ss:$36 sps:$4 sm:$0xff]   ;;  %v5811_v18 = vld [vmem:[#allocation9 + $0x14] ss:$36 sps:$4 sm:$0xff]  }
  0x97   :  { %5702 = vmatprep.subr.bf16.mxu0 %v5701_v47  ;;  %732 = vmatprep.subr.bf16.mxu1 %v5785_v54  ;;  %v5805_v16 = vld [vmem:[#allocation9 + $0x200] ss:$36 sps:$4 sm:$0xff]   ;;  %v5808_v17 = vld [vmem:[#allocation9 + $0x1f8] ss:$36 sps:$4 sm:$0xff]   ;;  %v5809_v25 = vld [vmem:[#allocation9 + $0x10] ss:$36 sps:$4 sm:$0xff]  }
  0x98   :  { %v5814_v19 = vld [vmem:[#allocation9 + $0x1c] ss:$36 sps:$4 sm:$0xff]   ;;  %v5820_v29 = vld [vmem:[#allocation9 + $0x64] ss:$36 sps:$4 sm:$0xff]   ;;  %v5826_v33 = vld [vmem:[#allocation9 + $0xac] ss:$36 sps:$4 sm:$0xff]  }
  0x99   :  { %v5812_v26 = vld [vmem:[#allocation9 + $0x18] ss:$36 sps:$4 sm:$0xff]   ;;  %v5818_v31 = vld [vmem:[#allocation9 + $0x60] ss:$36 sps:$4 sm:$0xff]   ;;  %v5824_v35 = vld [vmem:[#allocation9 + $0xa8] ss:$36 sps:$4 sm:$0xff]  }
  0x9a   :  { %5704 = vmatpush1.bf16.msra.mxu0 %v5703_v53  ;;  %733 = vmatpush1.bf16.msra.mxu1 %v5790_v57  ;;  %v5817_v28 = vld [vmem:[#allocation9 + $0x5c] ss:$36 sps:$4 sm:$0xff]   ;;  %v5823_v32 = vld [vmem:[#allocation9 + $0xa4] ss:$36 sps:$4 sm:$0xff]   ;;  %v5829_v36 = vld [vmem:[#allocation9 + $0xec] ss:$36 sps:$4 sm:$0xff]  }
  0x9b   :  { %5706 = vmatprep.subr.bf16.mxu0 %v5705_v55  ;;  %734 = vmatprep.subr.bf16.mxu1 %v5791_v59  ;;  %v5815_v30 = vld [vmem:[#allocation9 + $0x58] ss:$36 sps:$4 sm:$0xff]   ;;  %v5821_v34 = vld [vmem:[#allocation9 + $0xa0] ss:$36 sps:$4 sm:$0xff]   ;;  %v5827_v38 = vld [vmem:[#allocation9 + $0xe8] ss:$36 sps:$4 sm:$0xff]  }
  0x9c   :  { %v5832_v37 = vld [vmem:[#allocation9 + $0xf4] ss:$36 sps:$4 sm:$0xff]   ;;  %v5838_v41 = vld [vmem:[#allocation9 + $0x13c] ss:$36 sps:$4 sm:$0xff]   ;;  %v5844_v45 = vld [vmem:[#allocation9 + $0x184] ss:$36 sps:$4 sm:$0xff]  }
  0x9d   :  { %v5830_v39 = vld [vmem:[#allocation9 + $0xf0] ss:$36 sps:$4 sm:$0xff]   ;;  %v5836_v43 = vld [vmem:[#allocation9 + $0x138] ss:$36 sps:$4 sm:$0xff]   ;;  %v5842_v47 = vld [vmem:[#allocation9 + $0x180] ss:$36 sps:$4 sm:$0xff]  }
  0x9e   :  { %5708 = vmatpush1.bf16.msra.mxu0 %v5707_v58  ;;  %735 = vmatpush1.bf16.msra.mxu1 %v5796_v61  ;;  %v5835_v40 = vld [vmem:[#allocation9 + $0x134] ss:$36 sps:$4 sm:$0xff]   ;;  %v5841_v44 = vld [vmem:[#allocation9 + $0x17c] ss:$36 sps:$4 sm:$0xff]   ;;  %v5847_v48 = vld [vmem:[#allocation9 + $0x1c4] ss:$36 sps:$4 sm:$0xff]  }
  0x9f   :  { %765 = vmatprep.subr.bf16.mxu0 %v5765_v60  ;;  %736 = vmatprep.subr.bf16.mxu1 %v5797_v0  ;;  %v5833_v42 = vld [vmem:[#allocation9 + $0x130] ss:$36 sps:$4 sm:$0xff]   ;;  %v5839_v46 = vld [vmem:[#allocation9 + $0x178] ss:$36 sps:$4 sm:$0xff]   ;;  %v5845_v50 = vld [vmem:[#allocation9 + $0x1c0] ss:$36 sps:$4 sm:$0xff]  }
  0xa0   :  { %v5850_v49 = vld [vmem:[#allocation9 + $0x1cc] ss:$36 sps:$4 sm:$0xff]   ;;  %v5856_v53 = vld [vmem:[#allocation9 + $0x214] ss:$36 sps:$4 sm:$0xff]   ;;  %v5859_v56 = vld [vmem:[#allocation10 + $0x4] ss:$36 sps:$4 sm:$0xff]  }
  0xa1   :  { %263 = vmatmul.mubr.f32.vlgmr.msra.gmra.mrb[0].mxu0 %v165_v62  ;;  %v5848_v51 = vld [vmem:[#allocation9 + $0x1c8] ss:$36 sps:$4 sm:$0xff]   ;;  %v5854_v55 = vld [vmem:[#allocation9 + $0x210] ss:$36 sps:$4 sm:$0xff]   ;;  %v5857_v57 = vld [vmem:[#allocation10] ss:$36 sps:$4 sm:$0xff]  }
  0xa2   :  { %766 = vmatpush1.bf16.msra.mxu0 %v5763_v63  ;;  %737 = vmatpush1.bf16.msra.mxu1 %v5802_v2  ;;  %v5853_v52 = vld [vmem:[#allocation9 + $0x20c] ss:$36 sps:$4 sm:$0xff]   ;;  %v5860_v58 = vld [vmem:[#allocation9 + $0x20] ss:$36 sps:$4 sm:$0xff]   ;;  %v6552_v59 = vld [vmem:[#allocation2] sm:$0xff] }
  0xa3   :  { %767 = vmatprep.subr.bf16.mxu0 %v5771_v1  ;;  %738 = vmatprep.subr.bf16.mxu1 %v5803_v14  ;;  %v5851_v54 = vld [vmem:[#allocation9 + $0x208] ss:$36 sps:$4 sm:$0xff]   ;;  %v5867_v63 = vld [vmem:[#allocation10 + $0x94] ss:$36 sps:$4 sm:$0xff]   ;;  %v5871_v2 = vld [vmem:[#allocation10 + $0xdc] ss:$36 sps:$4 sm:$0xff]  }
  0xa4   :  { %797 = vmatprep.mubr.bf16.mxu0 %v6350_v20  ;;  %v5863_v60 = vld [vmem:[#allocation10 + $0x4c] ss:$36 sps:$4 sm:$0xff]   ;;  %v5887_v14 = vld [vmem:[#allocation10 + $0x1fc] ss:$36 sps:$4 sm:$0xff]  }
  0xa5   :  { %v5861_v61 = vld [vmem:[#allocation10 + $0x48] ss:$36 sps:$4 sm:$0xff]   ;;  %v5865_v0 = vld [vmem:[#allocation10 + $0x90] ss:$36 sps:$4 sm:$0xff]  }
  0xa6   :  { %768 = vmatpush1.bf16.msra.mxu0 %v5769_v3  ;;  %739 = vmatpush1.bf16.msra.mxu1 %v5808_v17  ;;  %v5864_v62 = vld [vmem:[#allocation9 + $0x68] ss:$36 sps:$4 sm:$0xff]   ;;  %v5868_v1 = vld [vmem:[#allocation9 + $0xb0] ss:$36 sps:$4 sm:$0xff]   ;;  %v5869_v3 = vld [vmem:[#allocation10 + $0xd8] ss:$36 sps:$4 sm:$0xff]  }
  0xa7   :  { %769 = vmatprep.subr.bf16.mxu0 %v5777_v4  ;;  %806 = vmatprep.subr.bf16.mxu1 %v5811_v18  ;;  %v5872_v4 = vld [vmem:[#allocation9 + $0xf8] ss:$36 sps:$4 sm:$0xff]   ;;  %v5891_v18 = vld [vmem:[#allocation10 + $0xc] ss:$36 sps:$4 sm:$0xff]  }
  0xa8   :  { %v5888_v17 = vld [vmem:[#allocation9 + $0x218] ss:$36 sps:$4 sm:$0xff]  }
  0xaa   :  { %770 = vmatpush1.bf16.msra.mxu0 %v5775_v5  ;;  %v5875_v5 = vld [vmem:[#allocation10 + $0x124] ss:$36 sps:$4 sm:$0xff]  }
  0xab   :  { %771 = vmatprep.subr.bf16.mxu0 %v5783_v6  ;;  %v5873_v6 = vld [vmem:[#allocation10 + $0x120] ss:$36 sps:$4 sm:$0xff]  }
  0xae   :  { %772 = vmatpush1.bf16.msra.mxu0 %v5781_v7  ;;  %v5876_v7 = vld [vmem:[#allocation9 + $0x140] ss:$36 sps:$4 sm:$0xff]  }
  0xaf   :  { %773 = vmatprep.subr.bf16.mxu0 %v5789_v8  ;;  %v5879_v8 = vld [vmem:[#allocation10 + $0x16c] ss:$36 sps:$4 sm:$0xff]  }
  0xb2   :  { %774 = vmatpush1.bf16.msra.mxu0 %v5787_v9  ;;  %v5877_v9 = vld [vmem:[#allocation10 + $0x168] ss:$36 sps:$4 sm:$0xff]  }
  0xb3   :  { %775 = vmatprep.subr.bf16.mxu0 %v5795_v10  ;;  %v5880_v10 = vld [vmem:[#allocation9 + $0x188] ss:$36 sps:$4 sm:$0xff]  }
  0xb6   :  { %776 = vmatpush1.bf16.msra.mxu0 %v5793_v11  ;;  %v5883_v11 = vld [vmem:[#allocation10 + $0x1b4] ss:$36 sps:$4 sm:$0xff]  }
  0xb7   :  { %777 = vmatprep.subr.bf16.mxu0 %v5801_v12  ;;  %v5881_v12 = vld [vmem:[#allocation10 + $0x1b0] ss:$36 sps:$4 sm:$0xff]  }
  0xba   :  { %778 = vmatpush1.bf16.msra.mxu0 %v5799_v13  ;;  %v5884_v13 = vld [vmem:[#allocation9 + $0x1d0] ss:$36 sps:$4 sm:$0xff]  }
  0xbb   :  { %779 = vmatprep.subr.bf16.mxu0 %v5807_v15 }
  0xbe   :  { %780 = vmatpush1.bf16.msra.mxu0 %v5805_v16  ;;  %v5885_v16 = vld [vmem:[#allocation10 + $0x1f8] ss:$36 sps:$4 sm:$0xff]  }
  0xbf   :  { %847 = vmatprep.subr.bf16.mxu0 %v5814_v19  ;;  %v5894_v19 = vld [vmem:[#allocation10 + $0x14] ss:$36 sps:$4 sm:$0xff]  }
 0x174   :  { %v264_v21 = vpop.f32.mrb[0].mxu0 }
 0x175   :  { %vm269_vm0 = vcmp.gt.f32.partialorder %v264_v21, 0.0  ;;  %v271_v22 = vmul.f32 0.1, %v264_v21  ;;  %v6544_v23 = vpop.f32.mrb[1].mxu0 }
 0x176   :  { %v272_v15 = vmul.f32 0.1, %v6544_v23  ;;  %vm270_vm2 = vcmp.gt.f32.partialorder %v6544_v23, 0.0 }
 0x177   :  { %v273_v24 = vsel %vm269_vm0, %v264_v21, %v271_v22  ;;  %v5889_v22 = vld [vmem:[#allocation10 + $0x8] ss:$36 sps:$4 sm:$0xff]  }
 0x178   :  { %v6546_v27 = vpack.c.bf16 %v273_v24, %v273_v24  ;;  %v274_v21 = vsel %vm270_vm2, %v6544_v23, %v272_v15  ;;  %v5892_v24 = vld [vmem:[#allocation10 + $0x10] ss:$36 sps:$4 sm:$0xff]   ;;  %v5903_v23 = vld [vmem:[#allocation10 + $0x9c] ss:$36 sps:$4 sm:$0xff]  }
 0x179   :  { %v5963_v15 = vld [vmem:[#allocation10 + $0x1cc] ss:$36 sps:$4 sm:$0xff]  }
 0x17a   :  { %757 = vmatmul.mubr.bf16.vlgmr.msra.gmra.mrb[0].mxu1 %v6546_v27  ;;  %798 = vmatmul.mubr.bf16.vlgmr.msra.gmra.mrb[4].mxu0 %v6546_v27 }
 0x17b   :  { %807 = vmatpush1.bf16.msra.mxu1 %v5809_v25  ;;  %848 = vmatpush1.bf16.msra.mxu0 %v5812_v26  ;;  %v6570_v25 = vpack.c.bf16 %v274_v21, %v274_v21  ;;  %v5897_v26 = vld [vmem:[#allocation10 + $0x54] ss:$36 sps:$4 sm:$0xff]  }
 0x17c   :  { %808 = vmatprep.subr.bf16.mxu1 %v5817_v28  ;;  %849 = vmatprep.subr.bf16.mxu0 %v5820_v29  ;;  %v5900_v28 = vld [vmem:[#allocation10 + $0x5c] ss:$36 sps:$4 sm:$0xff]   ;;  %v5895_v29 = vld [vmem:[#allocation10 + $0x50] ss:$36 sps:$4 sm:$0xff]  }
 0x17d   :  { %838 = vmatprep.mubr.bf16.mxu1 %v6350_v20  ;;  %879 = vmatprep.mubr.bf16.mxu0 %v6350_v20  ;;  %v5968_v21 = vld [vmem:[#allocation10 + $0x218] ss:$36 sps:$4 sm:$0xff]  }
 0x17f   :  { %809 = vmatpush1.bf16.msra.mxu1 %v5815_v30  ;;  %850 = vmatpush1.bf16.msra.mxu0 %v5818_v31  ;;  %v5898_v30 = vld [vmem:[#allocation10 + $0x58] ss:$36 sps:$4 sm:$0xff]   ;;  %v5906_v31 = vld [vmem:[#allocation10 + $0xa4] ss:$36 sps:$4 sm:$0xff]  }
 0x180   :  { %810 = vmatprep.subr.bf16.mxu1 %v5823_v32  ;;  %851 = vmatprep.subr.bf16.mxu0 %v5826_v33  ;;  %v5901_v32 = vld [vmem:[#allocation10 + $0x98] ss:$36 sps:$4 sm:$0xff]   ;;  %v5904_v33 = vld [vmem:[#allocation10 + $0xa0] ss:$36 sps:$4 sm:$0xff]  }
 0x183   :  { %811 = vmatpush1.bf16.msra.mxu1 %v5821_v34  ;;  %852 = vmatpush1.bf16.msra.mxu0 %v5824_v35  ;;  %v5912_v34 = vld [vmem:[#allocation10 + $0xec] ss:$36 sps:$4 sm:$0xff]   ;;  %v5907_v35 = vld [vmem:[#allocation10 + $0xe0] ss:$36 sps:$4 sm:$0xff]  }
 0x184   :  { %812 = vmatprep.subr.bf16.mxu1 %v5829_v36  ;;  %853 = vmatprep.subr.bf16.mxu0 %v5832_v37  ;;  %v5910_v36 = vld [vmem:[#allocation10 + $0xe8] ss:$36 sps:$4 sm:$0xff]  }
 0x185   :  { %v5915_v37 = vld [vmem:[#allocation10 + $0x12c] ss:$36 sps:$4 sm:$0xff]  }
 0x187   :  { %813 = vmatpush1.bf16.msra.mxu1 %v5827_v38  ;;  %854 = vmatpush1.bf16.msra.mxu0 %v5830_v39  ;;  %v5918_v38 = vld [vmem:[#allocation10 + $0x134] ss:$36 sps:$4 sm:$0xff]   ;;  %v5913_v39 = vld [vmem:[#allocation10 + $0x128] ss:$36 sps:$4 sm:$0xff]  }
 0x188   :  { %814 = vmatprep.subr.bf16.mxu1 %v5835_v40  ;;  %855 = vmatprep.subr.bf16.mxu0 %v5838_v41  ;;  %v5916_v40 = vld [vmem:[#allocation10 + $0x130] ss:$36 sps:$4 sm:$0xff]  }
 0x189   :  { %v5921_v41 = vld [vmem:[#allocation10 + $0x174] ss:$36 sps:$4 sm:$0xff]  }
 0x18b   :  { %815 = vmatpush1.bf16.msra.mxu1 %v5833_v42  ;;  %856 = vmatpush1.bf16.msra.mxu0 %v5836_v43  ;;  %v5924_v42 = vld [vmem:[#allocation10 + $0x17c] ss:$36 sps:$4 sm:$0xff]  }
 0x18c   :  { %816 = vmatprep.subr.bf16.mxu1 %v5841_v44  ;;  %857 = vmatprep.subr.bf16.mxu0 %v5844_v45  ;;  %v6579_v43 = vld [vmem:[%s7450_s0] sm:$0xff]  ;;  %v6584_v44 = vld [vmem:[%s7450_s0 + $0x8] sm:$0xff]  ;;  %v6589_v45 = vld [vmem:[%s7450_s0 + $0x10] sm:$0xff] }
 0x18d   :  { %1774 = vst [vmem:[#allocation2 + $0x11] sm:$0xff] %v6579_v43  ;;  %1775 = vst [vmem:[#allocation2 + $0x21] sm:$0xff] %v6584_v44 }
 0x18e   :  { %1776 = vst [vmem:[#allocation2 + $0x31] sm:$0xff] %v6589_v45 }
 0x18f   :  { %817 = vmatpush1.bf16.msra.mxu1 %v5839_v46  ;;  %858 = vmatpush1.bf16.msra.mxu0 %v5842_v47  ;;  %v6597_v46 = vld [vmem:[%s7450_s0 + $0x18] sm:$0xff]  ;;  %v6602_v47 = vld [vmem:[%s7450_s0 + $0x20] sm:$0xff] }
 0x190   :  { %818 = vmatprep.subr.bf16.mxu1 %v5847_v48  ;;  %859 = vmatprep.subr.bf16.mxu0 %v5850_v49  ;;  %1777 = vst [vmem:[#allocation2 + $0x41] sm:$0xff] %v6597_v46  ;;  %1778 = vst [vmem:[#allocation2 + $0x51] sm:$0xff] %v6602_v47  ;;  %v5919_v48 = vld [vmem:[#allocation10 + $0x170] ss:$36 sps:$4 sm:$0xff]   ;;  %v5922_v49 = vld [vmem:[#allocation10 + $0x178] ss:$36 sps:$4 sm:$0xff]  }
 0x193   :  { %819 = vmatpush1.bf16.msra.mxu1 %v5845_v50  ;;  %860 = vmatpush1.bf16.msra.mxu0 %v5848_v51  ;;  %v5927_v50 = vld [vmem:[#allocation10 + $0x1bc] ss:$36 sps:$4 sm:$0xff]   ;;  %v5930_v51 = vld [vmem:[#allocation10 + $0x1c4] ss:$36 sps:$4 sm:$0xff]  }
 0x194   :  { %820 = vmatprep.subr.bf16.mxu1 %v5853_v52  ;;  %861 = vmatprep.subr.bf16.mxu0 %v5856_v53  ;;  %v6609_v52 = vld [vmem:[%s7450_s0 + $0x28] sm:$0xff]  ;;  %v6614_v53 = vld [vmem:[%s7450_s0 + $0x30] sm:$0xff] }
 0x195   :  { %1779 = vst [vmem:[#allocation2 + $0x61] sm:$0xff] %v6609_v52  ;;  %1780 = vst [vmem:[#allocation2 + $0x71] sm:$0xff] %v6614_v53 }
 0x197   :  { %821 = vmatpush1.bf16.msra.mxu1 %v5851_v54  ;;  %862 = vmatpush1.bf16.msra.mxu0 %v5854_v55  ;;  %v5925_v54 = vld [vmem:[#allocation10 + $0x1b8] ss:$36 sps:$4 sm:$0xff]   ;;  %v5928_v55 = vld [vmem:[#allocation10 + $0x1c0] ss:$36 sps:$4 sm:$0xff]  }
 0x198   :  { %5506 = vmatprep.subr.bf16.mxu1 %v6552_v59  ;;  %1377 = vmatprep.subr.bf16.mxu0 %v5859_v56  ;;  %v5933_v56 = vld [vmem:[#allocation10 + $0x204] ss:$36 sps:$4 sm:$0xff]  }
 0x19a   :  { %839 = vmatmul.mubr.bf16.vlgmr.msra.gmra.mrb[4].mxu1 %v6546_v27  ;;  %880 = vmatmul.mubr.bf16.vlgmr.msra.gmra.mrb[8].mxu0 %v6546_v27 }
 0x19b   :  { %5507 = vmatpush3.bf16.msra.mxu1 %v5860_v58  ;;  %1378 = vmatpush1.bf16.msra.mxu0 %v5857_v57  ;;  %v5936_v57 = vld [vmem:[#allocation10 + $0x20c] ss:$36 sps:$4 sm:$0xff]   ;;  %v5931_v58 = vld [vmem:[#allocation10 + $0x200] ss:$36 sps:$4 sm:$0xff]  }
 0x19c   :  { %5508 = vmatprep.subr.bf16.mxu1 %v6552_v59  ;;  %1379 = vmatprep.subr.bf16.mxu0 %v5863_v60  ;;  %v5934_v60 = vld [vmem:[#allocation10 + $0x208] ss:$36 sps:$4 sm:$0xff]  }
 0x19d   :  { %5522 = vmatprep.mubr.msk.bf16.mxu1 %vm6351_vm1, %v6552_v59  ;;  %1409 = vmatprep.mubr.bf16.mxu0 %v6350_v20 }
 0x19f   :  { %5509 = vmatpush3.bf16.msra.mxu1 %v5864_v62  ;;  %1380 = vmatpush1.bf16.msra.mxu0 %v5861_v61  ;;  %v5939_v61 = vld [vmem:[#allocation10 + $0x1c] ss:$36 sps:$4 sm:$0xff]   ;;  %v6621_v62 = vld [vmem:[%s7450_s0 + $0x38] sm:$0xff] }
 0x1a0   :  { %5510 = vmatprep.subr.bf16.mxu1 %v6552_v59  ;;  %1381 = vmatprep.subr.bf16.mxu0 %v5867_v63  ;;  %7468 = vst [vmem:[#allocation22_spill] sm:$0xff] %v6621_v62  ;;  %1781 = vst [vmem:[#allocation2 + $0x81] sm:$0xff] %v6621_v62  ;;  %v5937_v63 = vld [vmem:[#allocation10 + $0x18] ss:$36 sps:$4 sm:$0xff]  }
 0x1a3   :  { %5511 = vmatpush3.bf16.msra.mxu1 %v5868_v1  ;;  %1382 = vmatpush1.bf16.msra.mxu0 %v5865_v0  ;;  %v5940_v0 = vld [vmem:[#allocation10 + $0x20] ss:$36 sps:$4 sm:$0xff]  }
 0x1a4   :  { %5512 = vmatprep.subr.bf16.mxu1 %v6552_v59  ;;  %1383 = vmatprep.subr.bf16.mxu0 %v5871_v2  ;;  %v5943_v1 = vld [vmem:[#allocation10 + $0x64] ss:$36 sps:$4 sm:$0xff]  }
 0x1a5   :  { %v5941_v2 = vld [vmem:[#allocation10 + $0x60] ss:$36 sps:$4 sm:$0xff]  }
 0x1a7   :  { %5513 = vmatpush3.bf16.msra.mxu1 %v5872_v4  ;;  %1384 = vmatpush1.bf16.msra.mxu0 %v5869_v3  ;;  %v5944_v3 = vld [vmem:[#allocation10 + $0x68] ss:$36 sps:$4 sm:$0xff]  }
 0x1a8   :  { %5514 = vmatprep.subr.bf16.mxu1 %v6552_v59  ;;  %1385 = vmatprep.subr.bf16.mxu0 %v5875_v5  ;;  %v5947_v4 = vld [vmem:[#allocation10 + $0xac] ss:$36 sps:$4 sm:$0xff]  }
 0x1a9   :  { %v5945_v5 = vld [vmem:[#allocation10 + $0xa8] ss:$36 sps:$4 sm:$0xff]  }
 0x1ab   :  { %5515 = vmatpush3.bf16.msra.mxu1 %v5876_v7  ;;  %1386 = vmatpush1.bf16.msra.mxu0 %v5873_v6  ;;  %v5948_v6 = vld [vmem:[#allocation10 + $0xb0] ss:$36 sps:$4 sm:$0xff]  }
 0x1ac   :  { %5516 = vmatprep.subr.bf16.mxu1 %v6552_v59  ;;  %1387 = vmatprep.subr.bf16.mxu0 %v5879_v8  ;;  %v5951_v7 = vld [vmem:[#allocation10 + $0xf4] ss:$36 sps:$4 sm:$0xff]  }
 0x1ad   :  { %v5949_v8 = vld [vmem:[#allocation10 + $0xf0] ss:$36 sps:$4 sm:$0xff]  }
 0x1af   :  { %5517 = vmatpush3.bf16.msra.mxu1 %v5880_v10  ;;  %1388 = vmatpush1.bf16.msra.mxu0 %v5877_v9  ;;  %v5952_v9 = vld [vmem:[#allocation10 + $0xf8] ss:$36 sps:$4 sm:$0xff]  }
 0x1b0   :  { %5518 = vmatprep.subr.bf16.mxu1 %v6552_v59  ;;  %1389 = vmatprep.subr.bf16.mxu0 %v5883_v11  ;;  %v5955_v10 = vld [vmem:[#allocation10 + $0x13c] ss:$36 sps:$4 sm:$0xff]  }
 0x1b1   :  { %v5956_v11 = vld [vmem:[#allocation10 + $0x140] ss:$36 sps:$4 sm:$0xff]  }
 0x1b3   :  { %5519 = vmatpush3.bf16.msra.mxu1 %v5884_v13  ;;  %1390 = vmatpush1.bf16.msra.mxu0 %v5881_v12  ;;  %v5959_v12 = vld [vmem:[#allocation10 + $0x184] ss:$36 sps:$4 sm:$0xff]  }
 0x1b4   :  { %5520 = vmatprep.subr.bf16.mxu1 %v6552_v59  ;;  %1391 = vmatprep.subr.bf16.mxu0 %v5887_v14  ;;  %v5957_v13 = vld [vmem:[#allocation10 + $0x180] ss:$36 sps:$4 sm:$0xff]   ;;  %v5960_v14 = vld [vmem:[#allocation10 + $0x188] ss:$36 sps:$4 sm:$0xff]  }
 0x1b7   :  { %5521 = vmatpush3.bf16.msra.mxu1 %v5888_v17  ;;  %1392 = vmatpush1.bf16.msra.mxu0 %v5885_v16  ;;  %v5961_v16 = vld [vmem:[#allocation10 + $0x1c8] ss:$36 sps:$4 sm:$0xff]   ;;  %v5964_v17 = vld [vmem:[#allocation10 + $0x1d0] ss:$36 sps:$4 sm:$0xff]  }
 0x1b8   :  { %1418 = vmatprep.subr.bf16.mxu1 %v5891_v18  ;;  %1459 = vmatprep.subr.bf16.mxu0 %v5894_v19  ;;  %v5967_v18 = vld [vmem:[#allocation10 + $0x214] ss:$36 sps:$4 sm:$0xff]  }
 0x1b9   :  { %v5965_v19 = vld [vmem:[#allocation10 + $0x210] ss:$36 sps:$4 sm:$0xff]  }
 0x1ba   :  { %5523 = vmatmul.mubr.bf16.vlgmr.msra.gmra.mrb[8].mxu1 %v6546_v27  ;;  %1410 = vmatmul.mubr.bf16.vlgmr.msra.gmra.mrb[12].mxu0 %v6570_v25  ;;  %v5909_v27 = vld [vmem:[#allocation10 + $0xe4] ss:$36 sps:$4 sm:$0xff]  }
 0x1bb   :  { %1419 = vmatpush1.bf16.msra.mxu1 %v5889_v22  ;;  %1460 = vmatpush1.bf16.msra.mxu0 %v5892_v24  ;;  %v1581_v22 = vld [vmem:[%s7455_s5] sm:$0xff]  ;;  %v1582_v24 = vld [vmem:[%s7455_s5 + $0x8] sm:$0xff] }
 0x1bc   :  { %1420 = vmatprep.subr.bf16.mxu1 %v5897_v26  ;;  %1461 = vmatprep.subr.bf16.mxu0 %v5900_v28  ;;  %v5710_v26 = vpack.c.bf16 %v1582_v24, %v1581_v22  ;;  %v6352_v28 = vmov 0.0|0.0  }
 0x1bd   :  { %1450 = vmatprep.mubr.bf16.mxu1 %v6350_v20  ;;  %1491 = vmatprep.mubr.bf16.mxu0 %v6350_v20 }
 0x1bf   :  { %1421 = vmatpush1.bf16.msra.mxu1 %v5895_v29  ;;  %1462 = vmatpush1.bf16.msra.mxu0 %v5898_v30  ;;  %v1583_v29 = vld [vmem:[%s7455_s5 + $0x10] sm:$0xff]  ;;  %v1584_v30 = vld [vmem:[%s7455_s5 + $0x18] sm:$0xff] }
 0x1c0   :  { %1422 = vmatprep.subr.bf16.mxu1 %v5903_v23  ;;  %1463 = vmatprep.subr.bf16.mxu0 %v5906_v31  ;;  %v5713_v23 = vpack.c.bf16 %v1584_v30, %v1583_v29  ;;  %v1585_v31 = vld [vmem:[%s7455_s5 + $0x20] sm:$0xff]  ;;  %v6721_v30 = vld [vmem:[#allocation2 + $0x32] sm:$0xff] }
 0x1c1   :  { %v6719_v29 = vld [vmem:[#allocation2 + $0x22] sm:$0xff] }
 0x1c3   :  { %1423 = vmatpush1.bf16.msra.mxu1 %v5901_v32  ;;  %1464 = vmatpush1.bf16.msra.mxu0 %v5904_v33  ;;  %v1586_v32 = vld [vmem:[%s7455_s5 + $0x28] sm:$0xff] }
 0x1c4   :  { %1424 = vmatprep.subr.bf16.mxu1 %v5909_v27  ;;  %1465 = vmatprep.subr.bf16.mxu0 %v5912_v34  ;;  %v5716_v33 = vpack.c.bf16 %v1586_v32, %v1585_v31  ;;  %v1588_v27 = vld [vmem:[%s7455_s5 + $0x38] sm:$0xff] }
 0x1c7   :  { %1425 = vmatpush1.bf16.msra.mxu1 %v5907_v35  ;;  %1466 = vmatpush1.bf16.msra.mxu0 %v5910_v36  ;;  %v1589_v35 = vld [vmem:[%s7455_s5 + $0x40] sm:$0xff]  ;;  %v1590_v36 = vld [vmem:[%s7455_s5 + $0x48] sm:$0xff] }
 0x1c8   :  { %1426 = vmatprep.subr.bf16.mxu1 %v5915_v37  ;;  %1467 = vmatprep.subr.bf16.mxu0 %v5918_v38  ;;  %v5722_v37 = vpack.c.bf16 %v1590_v36, %v1589_v35  ;;  %v1591_v38 = vld [vmem:[%s7455_s5 + $0x50] sm:$0xff]  ;;  %v6734_v36 = vld [vmem:[#allocation2 + $0x40] sm:$0xff] }
 0x1cb   :  { %1427 = vmatpush1.bf16.msra.mxu1 %v5913_v39  ;;  %1468 = vmatpush1.bf16.msra.mxu0 %v5916_v40  ;;  %v1592_v39 = vld [vmem:[%s7455_s5 + $0x58] sm:$0xff] }
 0x1cc   :  { %1428 = vmatprep.subr.bf16.mxu1 %v5921_v41  ;;  %1469 = vmatprep.subr.bf16.mxu0 %v5924_v42  ;;  %v5725_v40 = vpack.c.bf16 %v1592_v39, %v1591_v38  ;;  %v1593_v41 = vld [vmem:[%s7455_s5 + $0x60] sm:$0xff]  ;;  %v1594_v42 = vld [vmem:[%s7455_s5 + $0x68] sm:$0xff] }
 0x1cf   :  { %1429 = vmatpush1.bf16.msra.mxu1 %v5919_v48  ;;  %1470 = vmatpush1.bf16.msra.mxu0 %v5922_v49  ;;  %v5728_v48 = vpack.c.bf16 %v1594_v42, %v1593_v41  ;;  %v1595_v49 = vld [vmem:[%s7455_s5 + $0x70] sm:$0xff] }
 0x1d0   :  { %1430 = vmatprep.subr.bf16.mxu1 %v5927_v50  ;;  %1471 = vmatprep.subr.bf16.mxu0 %v5930_v51  ;;  %v1596_v50 = vld [vmem:[%s7455_s5 + $0x78] sm:$0xff]  ;;  %v6736_v41 = vld [vmem:[#allocation2 + $0x50] sm:$0xff] }
 0x1d1   :  { %v5731_v51 = vpack.c.bf16 %v1596_v50, %v1595_v49 }
 0x1d3   :  { %1431 = vmatpush1.bf16.msra.mxu1 %v5925_v54  ;;  %1472 = vmatpush1.bf16.msra.mxu0 %v5928_v55  ;;  %v5969_v54 = vld [vmem:[#allocation12] sm:$0xff]   ;;  %v5970_v55 = vld [vmem:[#allocation12 + $0x8] sm:$0xff]  }
 0x1d4   :  { %1432 = vmatprep.subr.bf16.mxu1 %v5933_v56  ;;  %1473 = vmatprep.subr.bf16.mxu0 %v5936_v57  ;;  %v6138_v56 = vld [vmem:[#allocation4] sm:$0xff]  ;;  %v5971_v57 = vld [vmem:[#allocation12 + $0x10] sm:$0xff]  }
 0x1d7   :  { %1433 = vmatpush1.bf16.msra.mxu1 %v5931_v58  ;;  %1474 = vmatpush1.bf16.msra.mxu0 %v5934_v60  ;;  %v5972_v58 = vld [vmem:[#allocation12 + $0x18] sm:$0xff]   ;;  %v5973_v60 = vld [vmem:[#allocation12 + $0x20] sm:$0xff]  }
 0x1d8   :  { %1500 = vmatprep.subr.bf16.mxu1 %v5939_v61  ;;  %5526 = vmatprep.subr.bf16.mxu0 %v6552_v59  ;;  %v5974_v61 = vld [vmem:[#allocation12 + $0x28] sm:$0xff]  }
 0x1da   :  { %1451 = vmatmul.mubr.bf16.vlgmr.msra.gmra.mrb[12].mxu1 %v6570_v25  ;;  %1492 = vmatmul.mubr.bf16.vlgmr.msra.gmra.mrb[16].mxu0 %v6570_v25 }
 0x1db   :  { %1501 = vmatpush1.bf16.msra.mxu1 %v5937_v63  ;;  %5527 = vmatpush3.bf16.msra.mxu0 %v5940_v0  ;;  %v5975_v63 = vld [vmem:[#allocation12 + $0x30] sm:$0xff]   ;;  %v5976_v0 = vld [vmem:[#allocation12 + $0x38] sm:$0xff]  }
 0x1dc   :  { %1502 = vmatprep.subr.bf16.mxu1 %v5943_v1  ;;  %5528 = vmatprep.subr.bf16.mxu0 %v6552_v59  ;;  %v1812_v1 = vlaneseq }
 0x1dd   :  { %1532 = vmatprep.mubr.bf16.mxu1 %v6350_v20  ;;  %5542 = vmatprep.mubr.msk.bf16.mxu0 %vm6351_vm1, %v6552_v59  ;;  %v5953_v20 = vld [vmem:[#allocation10 + $0x138] ss:$36 sps:$4 sm:$0xff]  }
 0x1df   :  { %1503 = vmatpush1.bf16.msra.mxu1 %v5941_v2  ;;  %5529 = vmatpush3.bf16.msra.mxu0 %v5944_v3  ;;  %v1813_v2 = vshrl.u32 %v1812_v1, 7 }
 0x1e0   :  { %1504 = vmatprep.subr.bf16.mxu1 %v5947_v4  ;;  %5530 = vmatprep.subr.bf16.mxu0 %v6552_v59 }
 0x1e1   :  { %v6690_v3 = vsub.s32 0, %v1813_v2 }
 0x1e3   :  { %1505 = vmatpush1.bf16.msra.mxu1 %v5945_v5  ;;  %5531 = vmatpush3.bf16.msra.mxu0 %v5948_v6  ;;  %v1783_v6 = vld [vmem:[#allocation2 + $0x10] sm:$0xff] }
 0x1e4   :  { %1506 = vmatprep.subr.bf16.mxu1 %v5951_v7  ;;  %5532 = vmatprep.subr.bf16.mxu0 %v6552_v59  ;;  %v6692_v7 = vld [vmem:[#allocation2 + $0x20] sm:$0xff] }
 0x1e7   :  { %1507 = vmatpush1.bf16.msra.mxu1 %v5949_v8  ;;  %5533 = vmatpush3.bf16.msra.mxu0 %v5952_v9  ;;  %v6694_v8 = vld [vmem:[#allocation2 + $0x30] sm:$0xff] }
 0x1e8   :  { %1508 = vmatprep.subr.bf16.mxu1 %v5955_v10  ;;  %5534 = vmatprep.subr.bf16.mxu0 %v6552_v59 }
 0x1eb   :  { %1509 = vmatpush1.bf16.msra.mxu1 %v5953_v20  ;;  %5535 = vmatpush3.bf16.msra.mxu0 %v5956_v11 }
 0x1ec   :  { %1510 = vmatprep.subr.bf16.mxu1 %v5959_v12  ;;  %5536 = vmatprep.subr.bf16.mxu0 %v6552_v59  ;;  %v6702_v12 = vld [vmem:[#allocation2 + $0x1] sm:$0xff] }
 0x1ef   :  { %1511 = vmatpush1.bf16.msra.mxu1 %v5957_v13  ;;  %5537 = vmatpush3.bf16.msra.mxu0 %v5960_v14 }
 0x1f0   :  { %1512 = vmatprep.subr.bf16.mxu1 %v5963_v15  ;;  %5538 = vmatprep.subr.bf16.mxu0 %v6552_v59 }
 0x1f3   :  { %1513 = vmatpush1.bf16.msra.mxu1 %v5961_v16  ;;  %5539 = vmatpush3.bf16.msra.mxu0 %v5964_v17  ;;  %v6708_v17 = vld [vmem:[#allocation2 + $0x2] sm:$0xff] }
 0x1f4   :  { %1514 = vmatprep.subr.bf16.mxu1 %v5967_v18  ;;  %5540 = vmatprep.subr.bf16.mxu0 %v6552_v59  ;;  %v6710_v18 = vld [vmem:[#allocation2 + $0x12] sm:$0xff] }
 0x1f7   :  { %1515 = vmatpush1.bf16.msra.mxu1 %v5965_v19  ;;  %5541 = vmatpush3.bf16.msra.mxu0 %v5968_v21 }
 0x1f8   :  { %5709 = vmatprep.subr.bf16.mxu1 %v6352_v28 }
 0x1fa   :  { %1533 = vmatmul.mubr.bf16.vlgmr.msra.gmra.mrb[16].mxu1 %v6570_v25  ;;  %5543 = vmatmul.mubr.bf16.vlgmr.msra.gmra.mrb[20].mxu0 %v6570_v25  ;;  %v1587_v25 = vld [vmem:[%s7455_s5 + $0x30] sm:$0xff] }
 0x1fb   :  { %5711 = vmatpush3.bf16.msra.mxu1 %v5710_v26  ;;  %5578 = vmatprep.mubr.msk.f32.mxu1 %vm6351_vm1, %v6552_v59  ;;  %v5719_v34 = vpack.c.bf16 %v1588_v27, %v1587_v25 }
 0x1fc   :  { %5712 = vmatprep.subr.bf16.mxu1 %v6352_v28  ;;  %1746 = vmatprep.mubr.f32.mxu0 %v6552_v59 }
 0x1ff   :  { %5714 = vmatpush3.bf16.msra.mxu1 %v5713_v23 }
 0x200   :  { %5715 = vmatprep.subr.bf16.mxu1 %v6352_v28 }
 0x203   :  { %5717 = vmatpush3.bf16.msra.mxu1 %v5716_v33 }
 0x204   :  { %5718 = vmatprep.subr.bf16.mxu1 %v6352_v28 }
 0x207   :  { %5720 = vmatpush3.bf16.msra.mxu1 %v5719_v34 }
 0x208   :  { %5721 = vmatprep.subr.bf16.mxu1 %v6352_v28 }
 0x20b   :  { %5723 = vmatpush3.bf16.msra.mxu1 %v5722_v37 }
 0x20c   :  { %5724 = vmatprep.subr.bf16.mxu1 %v6352_v28 }
 0x20f   :  { %5726 = vmatpush3.bf16.msra.mxu1 %v5725_v40 }
 0x210   :  { %5727 = vmatprep.subr.bf16.mxu1 %v6352_v28 }
 0x213   :  { %5729 = vmatpush3.bf16.msra.mxu1 %v5728_v48 }
 0x214   :  { %5730 = vmatprep.subr.bf16.mxu1 %v6352_v28 }
 0x217   :  { %5732 = vmatpush3.bf16.msra.mxu1 %v5731_v51 }
 0x218   :  { %5581 = vmatprep.subr.bf16.mxu1 %v5969_v54 }
 0x21a   :  { %5579 = vmatmul.mubr.f32.vlgmr.msra.gmra.mrb[20].mxu1 %v6138_v56 }
 0x21b   :  { %5582 = vmatpush3.bf16.msra.mxu1 %v5969_v54 }
 0x21c   :  { %5583 = vmatprep.subr.bf16.mxu1 %v5970_v55 }
 0x21f   :  { %5584 = vmatpush3.bf16.msra.mxu1 %v5970_v55 }
 0x220   :  { %5585 = vmatprep.subr.bf16.mxu1 %v5971_v57 }
 0x223   :  { %5586 = vmatpush3.bf16.msra.mxu1 %v5971_v57  ;;  %v6748_v57 = vld [vmem:[#allocation2 + $0x42] sm:$0xff] }
 0x224   :  { %5587 = vmatprep.subr.bf16.mxu1 %v5972_v58 }
 0x227   :  { %5588 = vmatpush3.bf16.msra.mxu1 %v5972_v58  ;;  %v6750_v58 = vld [vmem:[#allocation2 + $0x52] sm:$0xff] }
 0x228   :  { %5589 = vmatprep.subr.bf16.mxu1 %v5973_v60 }
 0x22b   :  { %5590 = vmatpush3.bf16.msra.mxu1 %v5973_v60 }
 0x22c   :  { %5591 = vmatprep.subr.bf16.mxu1 %v5974_v61 }
 0x22f   :  { %5592 = vmatpush3.bf16.msra.mxu1 %v5974_v61 }
 0x230   :  { %5593 = vmatprep.subr.bf16.mxu1 %v5975_v63 }
 0x233   :  { %5594 = vmatpush3.bf16.msra.mxu1 %v5975_v63 }
 0x234   :  { %5595 = vmatprep.subr.bf16.mxu1 %v5976_v0 }
 0x237   :  { %5596 = vmatpush3.bf16.msra.mxu1 %v5976_v0 }
 0x24d   :  { %v758_v4 = vpop.f32.mrb[0].mxu1  ;;  %v799_v5 = vpop.f32.mrb[4].mxu0 }
 0x24e   :  { %v6697_v9 = vrot.slane %v758_v4, %v6690_v3  ;;  %v6700_v10 = vrot.slane %v799_v5, %v6690_v3  ;;  %v760_v20 = vpop.f32.mrb[1].mxu1  ;;  %v801_v11 = vpop.f32.mrb[5].mxu0  ;;  %v6760_v4 = vld [vmem:[#allocation2 + $0x60] sm:$0xff]  ;;  %v6762_v5 = vld [vmem:[#allocation2 + $0x70] sm:$0xff] }
 0x24f   :  { %v1827_v13 = vrot.slane %v760_v20, %v6690_v3  ;;  %v6706_v14 = vrot.slane %v801_v11, %v6690_v3  ;;  %v762_v15 = vpop.f32.mrb[2].mxu1  ;;  %v803_v16 = vpop.f32.mrb[6].mxu0 }
 0x250   :  { %v763_v19 = vpop.f32.mrb[3].mxu1  ;;  %v804_v21 = vpop.f32.mrb[7].mxu0  ;;  %v1816_v22 = vmul.f32 %v6552_v59, %v6697_v9  ;;  %v1817_v24 = vmul.f32 %v6697_v9, %v1783_v6  ;;  %v1818_v26 = vmul.f32 %v6697_v9, %v6692_v7  ;;  %v1819_v28 = vmul.f32 %v6697_v9, %v6694_v8  ;;  %v6770_v16 = vld [vmem:[#allocation2 + $0x62] sm:$0xff] }
 0x251   :  { %v1828_v23 = vmul.f32 %v1827_v13, %v6702_v12  ;;  %v1829_v31 = vmul.f32 %v1827_v13, %v6579_v43  ;;  %v1830_v32 = vmul.f32 %v1827_v13, %v6584_v44  ;;  %v1831_v33 = vmul.f32 %v1827_v13, %v6589_v45  ;;  %v6772_v19 = vld [vmem:[#allocation2 + $0x72] sm:$0xff] }
 0x252   :  { %v1848_v25 = vmul.f32 %v6700_v10, %v6708_v17  ;;  %v1849_v27 = vmul.f32 %v6700_v10, %v6710_v18  ;;  %v1868_v34 = vmul.f32 %v6706_v14, %v1783_v6  ;;  %v1869_v35 = vmul.f32 %v6706_v14, %v6692_v7 }
 0x253   :  { %v1836_v37 = vadd.f32 %v1828_v23, %v1816_v22  ;;  %v1837_v38 = vadd.f32 %v1829_v31, %v1817_v24  ;;  %v1838_v39 = vadd.f32 %v1830_v32, %v1818_v26  ;;  %v1839_v40 = vadd.f32 %v1831_v33, %v1819_v28  ;;  %v1671_v24 = vld [vmem:[%s7456_s6 + $0x8] sm:$0xff]  ;;  %v1673_v28 = vld [vmem:[%s7456_s6 + $0x18] sm:$0xff]  ;;  %v1670_v23 = vld [vmem:[%s7456_s6] sm:$0xff] }
 0x254   :  { %v1832_v42 = vmul.f32 %v1827_v13, %v6597_v46  ;;  %v1833_v48 = vmul.f32 %v1827_v13, %v6602_v47  ;;  %v1850_v49 = vmul.f32 %v6700_v10, %v6719_v29  ;;  %v1851_v50 = vmul.f32 %v6700_v10, %v6721_v30  ;;  %v1672_v31 = vld [vmem:[%s7456_s6 + $0x10] sm:$0xff] }
 0x255   :  { %v1856_v51 = vadd.f32 %v1848_v25, %v1836_v37  ;;  %v1857_v54 = vadd.f32 %v1849_v27, %v1837_v38  ;;  %v1870_v55 = vmul.f32 %v6706_v14, %v6694_v8  ;;  %v1871_v56 = vmul.f32 %v6706_v14, %v6734_v36 }
 0x256   :  { %v1858_v60 = vadd.f32 %v1850_v49, %v1838_v39  ;;  %v1859_v61 = vadd.f32 %v1851_v50, %v1839_v40  ;;  %v1820_v63 = vmul.f32 %v6697_v9, %v6734_v36  ;;  %v1821_v0 = vmul.f32 %v6697_v9, %v6736_v41  ;;  %v6804_v39 = vld [vmem:[#allocation2 + $0x80] sm:$0xff] }
 0x257   :  { %v6756_v1 = vadd.f32 %v1868_v34, %v1856_v51  ;;  %v6758_v2 = vadd.f32 %v1869_v35, %v1857_v54  ;;  %v1834_v6 = vmul.f32 %v1827_v13, %v6609_v52  ;;  %v1835_v20 = vmul.f32 %v1827_v13, %v6614_v53  ;;  %v1675_v34 = vld [vmem:[%s7456_s6 + $0x28] sm:$0xff]  ;;  %v1677_v35 = vld [vmem:[%s7456_s6 + $0x38] sm:$0xff] }
 0x258   :  { %v6766_v11 = vadd.f32 %v1870_v55, %v1858_v60  ;;  %v6768_v15 = vadd.f32 %v1871_v56, %v1859_v61  ;;  %v1840_v21 = vadd.f32 %v1832_v42, %v1820_v63  ;;  %v1841_v22 = vadd.f32 %v1833_v48, %v1821_v0 }
 0x259   :  { %v1852_v26 = vmul.f32 %v6700_v10, %v6748_v57  ;;  %v1853_v13 = vmul.f32 %v6700_v10, %v6750_v58  ;;  %v1872_v32 = vmul.f32 %v6706_v14, %v6736_v41  ;;  %v1873_v33 = vmul.f32 %v6706_v14, %v6760_v4 }
 0x25a   :  { %v1822_v25 = vmul.f32 %v6697_v9, %v6760_v4  ;;  %v1823_v27 = vmul.f32 %v6697_v9, %v6762_v5  ;;  %v1854_v40 = vmul.f32 %v6700_v10, %v6770_v16  ;;  %v1855_v42 = vmul.f32 %v6700_v10, %v6772_v19 }
 0x25b   :  { %v1860_v37 = vadd.f32 %v1852_v26, %v1840_v21  ;;  %v1861_v38 = vadd.f32 %v1853_v13, %v1841_v22  ;;  %v5733_v49 = vpack.c.bf16 %v1673_v28, %v1671_v24  ;;  %v5735_v50 = vpack.c.bf16 %v1672_v31, %v1670_v23 }
 0x25c   :  { %v1842_v48 = vadd.f32 %v1834_v6, %v1822_v25  ;;  %v1843_v9 = vadd.f32 %v1835_v20, %v1823_v27  ;;  %v5737_v55 = vpack.c.bf16 %v1677_v35, %v1675_v34  ;;  %v1874_v61 = vmul.f32 %v6706_v14, %v6762_v5 }
 0x25d   :  { %v1880_v51 = vadd.f32 %v1872_v32, %v1860_v37  ;;  %v1881_v54 = vadd.f32 %v1873_v33, %v1861_v38  ;;  %v1875_v63 = vmul.f32 %v6706_v14, %v6804_v39  ;;  %5734 = vmatprep.subr.bf16.mxu0 %v5733_v49 }
 0x25e   :  { %v1862_v56 = vadd.f32 %v1854_v40, %v1842_v48  ;;  %v1863_v60 = vadd.f32 %v1855_v42, %v1843_v9  ;;  %5736 = vmatpush1.bf16.msra.mxu0 %v5735_v50 }
 0x25f   :  { %5738 = vmatprep.subr.bf16.mxu0 %v5737_v55 }
 0x260   :  { %v6814_v0 = vadd.f32 %v1874_v61, %v1862_v56  ;;  %v6816_v10 = vadd.f32 %v1875_v63, %v1863_v60 }
 0x26d   :  { %v840_v6 = vpop.f32.mrb[4].mxu1  ;;  %v881_v20 = vpop.f32.mrb[8].mxu0 }
 0x26e   :  { %v1887_v21 = vrot.slane %v840_v6, %v6690_v3  ;;  %v6820_v22 = vrot.slane %v881_v20, %v6690_v3  ;;  %v842_v24 = vpop.f32.mrb[5].mxu1  ;;  %v883_v26 = vpop.f32.mrb[9].mxu0 }
 0x26f   :  { %v1907_v13 = vrot.slane %v842_v24, %v6690_v3  ;;  %v6824_v14 = vrot.slane %v883_v26, %v6690_v3  ;;  %v844_v28 = vpop.f32.mrb[6].mxu1  ;;  %v885_v23 = vpop.f32.mrb[10].mxu0 }
 0x270   :  { %v845_v31 = vpop.f32.mrb[7].mxu1  ;;  %v886_v32 = vpop.f32.mrb[11].mxu0  ;;  %v1888_v33 = vmul.f32 %v1887_v21, %v6579_v43  ;;  %v1889_v25 = vmul.f32 %v1887_v21, %v6584_v44  ;;  %v1890_v27 = vmul.f32 %v1887_v21, %v6589_v45  ;;  %v1928_v34 = vmul.f32 %v6820_v22, %v6692_v7 }
 0x271   :  { %v1908_v35 = vmul.f32 %v1907_v13, %v6710_v18  ;;  %v1909_v37 = vmul.f32 %v1907_v13, %v6719_v29  ;;  %v1929_v38 = vmul.f32 %v6820_v22, %v6694_v8  ;;  %v1948_v40 = vmul.f32 %v6824_v14, %v6584_v44  ;;  %v1810_v32 = vld [vmem:[#allocation2 + $0x82] sm:$0xff] }
 0x272   :  { %v1896_v42 = vadd.f32 %v1888_v33, %v6756_v1  ;;  %v1897_v43 = vadd.f32 %v1889_v25, %v6758_v2  ;;  %v1949_v48 = vmul.f32 %v6824_v14, %v6589_v45  ;;  %v1891_v9 = vmul.f32 %v1887_v21, %v6597_v46 }
 0x273   :  { %v1898_v7 = vadd.f32 %v1890_v27, %v6766_v11  ;;  %v1910_v18 = vmul.f32 %v1907_v13, %v6721_v30  ;;  %v1911_v49 = vmul.f32 %v1907_v13, %v6748_v57  ;;  %v1930_v8 = vmul.f32 %v6820_v22, %v6734_v36 }
 0x274   :  { %v1916_v50 = vadd.f32 %v1908_v35, %v1896_v42  ;;  %v1917_v44 = vadd.f32 %v1909_v37, %v1897_v43  ;;  %v1899_v1 = vadd.f32 %v1891_v9, %v6768_v15  ;;  %v1931_v2 = vmul.f32 %v6820_v22, %v6736_v41  ;;  %v1801_v9 = vld [vmem:[#allocation2 + $0x91] sm:$0xff] }
 0x275   :  { %v1918_v55 = vadd.f32 %v1910_v18, %v1898_v7  ;;  %v1950_v45 = vmul.f32 %v6824_v14, %v6597_v46  ;;  %v1951_v11 = vmul.f32 %v6824_v14, %v6602_v47  ;;  %v1892_v56 = vmul.f32 %v1887_v21, %v6602_v47 }
 0x276   :  { %v1936_v60 = vadd.f32 %v1928_v34, %v1916_v50  ;;  %v1937_v61 = vadd.f32 %v1929_v38, %v1917_v44  ;;  %v1919_v63 = vadd.f32 %v1911_v49, %v1899_v1  ;;  %v1893_v36 = vmul.f32 %v1887_v21, %v6609_v52  ;;  %v1676_v38 = vld [vmem:[%s7456_s6 + $0x30] sm:$0xff] }
 0x277   :  { %v1938_v6 = vadd.f32 %v1930_v8, %v1918_v55  ;;  %v1900_v20 = vadd.f32 %v1892_v56, %v1880_v51  ;;  %v1912_v15 = vmul.f32 %v1907_v13, %v6750_v58  ;;  %v1913_v41 = vmul.f32 %v1907_v13, %v6770_v16 }
 0x278   :  { %v1956_v24 = vadd.f32 %v1948_v40, %v1936_v60  ;;  %v1957_v26 = vadd.f32 %v1949_v48, %v1937_v61  ;;  %v1939_v28 = vadd.f32 %v1931_v2, %v1919_v63  ;;  %v1901_v46 = vadd.f32 %v1893_v36, %v1881_v54 }
 0x279   :  { %v1958_v23 = vadd.f32 %v1950_v45, %v1938_v6  ;;  %v1920_v31 = vadd.f32 %v1912_v15, %v1900_v20  ;;  %v1932_v47 = vmul.f32 %v6820_v22, %v6760_v4  ;;  %v1933_v27 = vmul.f32 %v6820_v22, %v6762_v5  ;;  %v1674_v4 = vld [vmem:[%s7456_s6 + $0x20] sm:$0xff] }
 0x27a   :  { %v1959_v33 = vadd.f32 %v1951_v11, %v1939_v28  ;;  %v1921_v25 = vadd.f32 %v1913_v41, %v1901_v46  ;;  %v1952_v51 = vmul.f32 %v6824_v14, %v6609_v52  ;;  %v1894_v35 = vmul.f32 %v1887_v21, %v6614_v53 }
 0x27b   :  { %v1940_v34 = vadd.f32 %v1932_v47, %v1920_v31  ;;  %v1895_v37 = vmul.f32 %v1887_v21, %v6621_v62  ;;  %v1914_v54 = vmul.f32 %v1907_v13, %v6772_v19  ;;  %v1953_v5 = vmul.f32 %v6824_v14, %v6614_v53 }
 0x27c   :  { %v1941_v40 = vadd.f32 %v1933_v27, %v1921_v25  ;;  %v1915_v52 = vmul.f32 %v1907_v13, %v1810_v32  ;;  %v1902_v43 = vadd.f32 %v1894_v35, %v6814_v0  ;;  %v5739_v7 = vpack.c.bf16 %v1676_v38, %v1674_v4 }
 0x27d   :  { %v1960_v42 = vadd.f32 %v1952_v51, %v1940_v34  ;;  %v1903_v21 = vadd.f32 %v1895_v37, %v6816_v10  ;;  %v1934_v8 = vmul.f32 %v6820_v22, %v6804_v39  ;;  %v1935_v50 = vmul.f32 %v6552_v59, %v6820_v22  ;;  %v1811_v39 = vld [vmem:[#allocation2 + $0x92] sm:$0xff] }
 0x27e   :  { %v1961_v48 = vadd.f32 %v1953_v5, %v1941_v40  ;;  %v1922_v18 = vadd.f32 %v1914_v54, %v1902_v43  ;;  %5740 = vmatpush1.bf16.msra.mxu0 %v5739_v7  ;;  %v1954_v13 = vmul.f32 %v6824_v14, %v6621_v62  ;;  %v1955_v0 = vmul.f32 %v6824_v14, %v1801_v9 }
 0x27f   :  { %v1923_v49 = vadd.f32 %v1915_v52, %v1903_v21 }
 0x280   :  { %v1942_v44 = vadd.f32 %v1934_v8, %v1922_v18 }
 0x281   :  { %v1943_v53 = vadd.f32 %v1935_v50, %v1923_v49 }
 0x282   :  { %v1962_v10 = vadd.f32 %v1954_v13, %v1942_v44 }
 0x283   :  { %v1963_v1 = vadd.f32 %v1955_v0, %v1943_v53  ;;  %v3305_v53 = vld [vmem:[#allocation2 + $0x2] sm:$0xff] }
 0x28d   :  { %v922_v2 = vpop.f32.mrb[8].mxu1  ;;  %v1411_v55 = vpop.f32.mrb[12].mxu0 }
 0x28e   :  { %v1967_v45 = vrot.slane %v922_v2, %v6690_v3  ;;  %v5524_v11 = vpop.f32.mrb[9].mxu1  ;;  %v1413_v56 = vpop.f32.mrb[13].mxu0  ;;  %v6886_v60 = vrot.slane %v1411_v55, %v6690_v3 }
 0x28f   :  { %v6889_v22 = vrot.slane %v1413_v56, %v6690_v3  ;;  %v925_v61 = vpop.f32.mrb[10].mxu1  ;;  %v1415_v63 = vpop.f32.mrb[14].mxu0 }
 0x290   :  { %v5525_v36 = vpop.f32.mrb[11].mxu1  ;;  %v1416_v6 = vpop.f32.mrb[15].mxu0  ;;  %v1968_v14 = vmul.f32 %v1967_v45, %v6719_v29  ;;  %v1969_v20 = vmul.f32 %v1967_v45, %v6721_v30  ;;  %v1970_v15 = vmul.f32 %v1967_v45, %v6748_v57  ;;  %v1971_v41 = vmul.f32 %v1967_v45, %v6750_v58 }
 0x291   :  { %v1972_v28 = vmul.f32 %v1967_v45, %v6770_v16  ;;  %v1973_v46 = vmul.f32 %v1967_v45, %v6772_v19  ;;  %v1974_v31 = vmul.f32 %v1967_v45, %v1810_v32  ;;  %v1975_v47 = vmul.f32 %v1967_v45, %v1811_v39 }
 0x292   :  { %v1976_v25 = vadd.f32 %v1968_v14, %v1956_v24  ;;  %v1977_v27 = vadd.f32 %v1969_v20, %v1957_v26  ;;  %v1978_v51 = vadd.f32 %v1970_v15, %v1958_v23  ;;  %v1979_v34 = vadd.f32 %v1971_v41, %v1959_v33  ;;  %v3295_v33 = vld [vmem:[#allocation2 + $0x1] sm:$0xff] }
 0x293   :  { %v1980_v35 = vadd.f32 %v1972_v28, %v1960_v42  ;;  %v1981_v37 = vadd.f32 %v1973_v46, %v1961_v48  ;;  %v1982_v54 = vadd.f32 %v1974_v31, %v1962_v10  ;;  %v1983_v29 = vadd.f32 %v1975_v47, %v1963_v1  ;;  %v5977_v31 = vld [vmem:[#allocation13 + $0x40] sm:$0xff]  }
 0x294   :  { %vm1984_vm3 = vcmp.gt.f32.partialorder %v1976_v25, 0.0  ;;  %vm1985_vm4 = vcmp.gt.f32.partialorder %v1977_v27, 0.0  ;;  %v1992_v30 = vmul.f32 0.1, %v1976_v25  ;;  %v1993_v57 = vmul.f32 0.1, %v1977_v27  ;;  %5150 = vmatprep.subr.bf16.mxu0 %v5977_v31 }
 0x295   :  { %vm1986_vm5 = vcmp.gt.f32.partialorder %v1978_v51, 0.0  ;;  %vm1987_vm6 = vcmp.gt.f32.partialorder %v1979_v34, 0.0  ;;  %v1994_v58 = vmul.f32 0.1, %v1978_v51  ;;  %v1995_v16 = vmul.f32 0.1, %v1979_v34 }
 0x296   :  { %v2000_v4 = vsel %vm1984_vm3, %v1976_v25, %v1992_v30  ;;  %v2001_v19 = vsel %vm1985_vm4, %v1977_v27, %v1993_v57  ;;  %vm1988_vm7 = vcmp.gt.f32.partialorder %v1980_v35, 0.0  ;;  %vm1989_vm8 = vcmp.gt.f32.partialorder %v1981_v37, 0.0  ;;  %v5978_v47 = vld [vmem:[#allocation13] sm:$0xff]   ;;  %v5987_v30 = vld [vmem:[#allocation13 + $0xd0] sm:$0xff]  }
 0x297   :  { %v2008_v24 = vpack.c.bf16 %v2001_v19, %v2000_v4  ;;  %v2002_v26 = vsel %vm1986_vm5, %v1978_v51, %v1994_v58  ;;  %v2003_v23 = vsel %vm1987_vm6, %v1979_v34, %v1995_v16  ;;  %v1996_v32 = vmul.f32 0.1, %v1980_v35  ;;  %v5979_v25 = vld [vmem:[#allocation13 + $0xc0] sm:$0xff]   ;;  %v5981_v51 = vld [vmem:[#allocation13 + $0x48] sm:$0xff]   ;;  %v5988_v57 = vld [vmem:[#allocation13 + $0x90] sm:$0xff]  }
 0x298   :  { %v2009_v38 = vpack.c.bf16 %v2003_v23, %v2002_v26  ;;  %v1997_v40 = vmul.f32 0.1, %v1981_v37  ;;  %vm1990_vm9 = vcmp.gt.f32.partialorder %v1982_v54, 0.0  ;;  %vm1991_vm10 = vcmp.gt.f32.partialorder %v1983_v29, 0.0  ;;  %v5980_v27 = vld [vmem:[#allocation13 + $0x80] sm:$0xff]   ;;  %5190 = vmatprep.subr.bf16.mxu1 %v5979_v25  ;;  %v5982_v34 = vld [vmem:[#allocation13 + $0x8] sm:$0xff]  }
 0x299   :  { %5597 = vmatprep.mubr.bf16.mxu1 %v2008_v24  ;;  %v2004_v5 = vsel %vm1988_vm7, %v1980_v35, %v1996_v32  ;;  %v1998_v52 = vmul.f32 0.1, %v1982_v54  ;;  %v1999_v42 = vmul.f32 0.1, %v1983_v29  ;;  %v3319_v43 = vmul.f32 %v6552_v59, %v6886_v60  ;;  %v5983_v35 = vld [vmem:[#allocation13 + $0xc8] sm:$0xff]   ;;  %v5989_v58 = vld [vmem:[#allocation13 + $0x58] sm:$0xff]  }
 0x29a   :  { %5598 = vmatmul.mubr.bf16.vlgmr.msra.gmra.mrb[24].mxu1 %v2009_v38  ;;  %v2005_v21 = vsel %vm1989_vm8, %v1981_v37, %v1997_v40  ;;  %v3331_v48 = vmul.f32 %v6889_v22, %v3295_v33  ;;  %v5984_v37 = vld [vmem:[#allocation13 + $0x88] sm:$0xff]   ;;  %v5991_v16 = vld [vmem:[#allocation13 + $0xd8] sm:$0xff]   ;;  %v5993_v24 = vld [vmem:[#allocation13 + $0x60] sm:$0xff]  }
 0x29b   :  { %v2010_v9 = vpack.c.bf16 %v2005_v21, %v2004_v5  ;;  %v2006_v7 = vsel %vm1990_vm9, %v1982_v54, %v1998_v52  ;;  %v2007_v18 = vsel %vm1991_vm10, %v1983_v29, %v1999_v42  ;;  %5191 = vmatpush3.bf16.msra.mxu1 %v5980_v27  ;;  %v5985_v54 = vld [vmem:[#allocation13 + $0x50] sm:$0xff]   ;;  %v5990_v4 = vld [vmem:[#allocation13 + $0x18] sm:$0xff]   ;;  %v5995_v26 = vld [vmem:[#allocation13 + $0xe0] sm:$0xff]  }
 0x29c   :  { %v2011_v49 = vpack.c.bf16 %v2007_v18, %v2006_v7  ;;  %v3339_v8 = vadd.f32 %v3331_v48, %v3319_v43  ;;  %5192 = vmatprep.subr.bf16.mxu1 %v5983_v35  ;;  %v5986_v29 = vld [vmem:[#allocation13 + $0x10] sm:$0xff]   ;;  %v5992_v19 = vld [vmem:[#allocation13 + $0x98] sm:$0xff]   ;;  %v5994_v23 = vld [vmem:[#allocation13 + $0x20] sm:$0xff]  }
 0x29d   :  { %5601 = vmatprep.mubr.bf16.mxu1 %v2010_v9  ;;  %v5996_v33 = vld [vmem:[#allocation13 + $0xa0] sm:$0xff]   ;;  %v5997_v38 = vld [vmem:[#allocation13 + $0x68] sm:$0xff]   ;;  %v6001_v48 = vld [vmem:[#allocation13 + $0x70] sm:$0xff]  }
 0x29e   :  { %v5999_v5 = vld [vmem:[#allocation13 + $0xe8] sm:$0xff]   ;;  %v6003_v9 = vld [vmem:[#allocation13 + $0xf0] sm:$0xff]  }
 0x29f   :  { %5193 = vmatpush3.bf16.msra.mxu1 %v5984_v37  ;;  %v5998_v43 = vld [vmem:[#allocation13 + $0x28] sm:$0xff]   ;;  %v6002_v7 = vld [vmem:[#allocation13 + $0x30] sm:$0xff]  }
 0x2a0   :  { %5194 = vmatprep.subr.bf16.mxu1 %v5987_v30  ;;  %v6000_v21 = vld [vmem:[#allocation13 + $0xa8] sm:$0xff]   ;;  %v6928_v30 = vld [vmem:[#allocation2 + $0x21] sm:$0xff] }
 0x2a2   :  { %5602 = vmatmul.mubr.bf16.gmra.mrb[28].mxu1 %v2011_v49  ;;  %v6004_v49 = vld [vmem:[#allocation13 + $0xb0] sm:$0xff]  }
 0x2a3   :  { %5195 = vmatpush3.bf16.msra.mxu1 %v5988_v57 }
 0x2a4   :  { %5196 = vmatprep.subr.bf16.mxu1 %v5991_v16 }
 0x2a7   :  { %5197 = vmatpush3.bf16.msra.mxu1 %v5992_v19 }
 0x2a8   :  { %5198 = vmatprep.subr.bf16.mxu1 %v5995_v26 }
 0x2ab   :  { %5199 = vmatpush3.bf16.msra.mxu1 %v5996_v33  ;;  %v6943_v33 = vld [vmem:[#allocation2 + $0x71] sm:$0xff] }
 0x2ac   :  { %5200 = vmatprep.subr.bf16.mxu1 %v5999_v5 }
 0x2ad   :  { %v1452_v50 = vpop.f32.mrb[12].mxu1  ;;  %v6901_v44 = vpop.f32.mrb[16].mxu0 }
 0x2ae   :  { %v6904_v13 = vrot.slane %v1452_v50, %v6690_v3  ;;  %v6906_v59 = vpop.f32.mrb[13].mxu1  ;;  %v6908_v0 = vpop.f32.mrb[17].mxu0 }
 0x2af   :  { %v1456_v10 = vpop.f32.mrb[14].mxu1  ;;  %v1497_v1 = vpop.f32.mrb[18].mxu0  ;;  %5201 = vmatpush3.bf16.msra.mxu1 %v6000_v21 }
 0x2b0   :  { %v1457_v2 = vpop.f32.mrb[15].mxu1  ;;  %v1498_v55 = vpop.f32.mrb[19].mxu0  ;;  %v3351_v45 = vmul.f32 %v6904_v13, %v3305_v53  ;;  %5202 = vmatprep.subr.bf16.mxu1 %v6003_v9  ;;  %v6007_v53 = vld [vmem:[#allocation13 + $0xf8] sm:$0xff]  }
 0x2b1   :  { %v6006_v2 = vld [vmem:[#allocation13 + $0x38] sm:$0xff]  }
 0x2b2   :  { %v6911_v11 = vadd.f32 %v3351_v45, %v3339_v8  ;;  %v6005_v8 = vld [vmem:[#allocation13 + $0x78] sm:$0xff]   ;;  %v6009_v45 = vld [vmem:[#allocation13 + $0x140] sm:$0xff]  }
 0x2b3   :  { %5203 = vmatpush3.bf16.msra.mxu1 %v6004_v49  ;;  %v6008_v55 = vld [vmem:[#allocation13 + $0xb8] sm:$0xff]  }
 0x2b4   :  { %5204 = vmatprep.subr.bf16.mxu1 %v6007_v53 }
 0x2b7   :  { %5205 = vmatpush3.bf16.msra.mxu1 %v6008_v55 }
 0x2cd   :  { %v6913_v56 = vpop.f32.mrb[16].mxu1  ;;  %v6915_v39 = vpop.f32.mrb[20].mxu0 }
 0x2ce   :  { %v6917_v61 = vpop.f32.mrb[17].mxu1  ;;  %v5544_v63 = vpop.f32.mrb[21].mxu0 }
 0x2cf   :  { %v1538_v36 = vpop.f32.mrb[18].mxu1  ;;  %v1578_v6 = vpop.f32.mrb[22].mxu0  ;;  %v6011_v63 = vld [vmem:[#allocation13 + $0x1c0] sm:$0xff]  }
 0x2d0   :  { %v1539_v14 = vpop.f32.mrb[19].mxu1  ;;  %v5545_v20 = vpop.f32.mrb[23].mxu0  ;;  %5270 = vmatprep.subr.bf16.mxu1 %v6011_v63 }
 0x2ed   :  { %v1663_v15 = vpop.f32.mrb[20].mxu1 }
 0x2ee   :  { %vm1667_vm11 = vcmp.gt.f32.partialorder %v1663_v15, 0.0  ;;  %v1668_v41 = vmul.f32 0.1, %v1663_v15  ;;  %v5580_v28 = vpop.f32.mrb[21].mxu1 }
 0x2f0   :  { %v1669_v46 = vsel %vm1667_vm11, %v1663_v15, %v1668_v41  ;;  %v4947_v41 = vld [vmem:[%s7458_s8] ss:$0 sm:$0xff] }
 0x2f1   :  { %4936 = vmatmul.mubr.msk.f32.vlgmr.msra.gmra.mrb[2].mxu0 %vm1678_vm12, %v1669_v46 }
 0x2f2   :  { %5151 = vmatpush3.bf16.msra.mxu0 %v5978_v47 }
 0x2f3   :  { %5152 = vmatprep.subr.bf16.mxu0 %v5981_v51 }
 0x2f6   :  { %5153 = vmatpush3.bf16.msra.mxu0 %v5982_v34 }
 0x2f7   :  { %5154 = vmatprep.subr.bf16.mxu0 %v5985_v54  ;;  %v6925_v54 = vld [vmem:[#allocation2 + $0x11] sm:$0xff] }
 0x2fa   :  { %5155 = vmatpush3.bf16.msra.mxu0 %v5986_v29 }
 0x2fb   :  { %5156 = vmatprep.subr.bf16.mxu0 %v5989_v58  ;;  %v6931_v58 = vld [vmem:[#allocation2 + $0x31] sm:$0xff] }
 0x2fe   :  { %5157 = vmatpush3.bf16.msra.mxu0 %v5990_v4  ;;  %v6934_v4 = vld [vmem:[#allocation2 + $0x41] sm:$0xff] }
 0x2ff   :  { %5158 = vmatprep.subr.bf16.mxu0 %v5993_v24  ;;  %v6937_v24 = vld [vmem:[#allocation2 + $0x51] sm:$0xff] }
 0x302   :  { %5159 = vmatpush3.bf16.msra.mxu0 %v5994_v23  ;;  %v6940_v23 = vld [vmem:[#allocation2 + $0x61] sm:$0xff] }
 0x303   :  { %5160 = vmatprep.subr.bf16.mxu0 %v5997_v38  ;;  %7469 = vst [vmem:[#allocation23_spill] sm:$0xff] %v6940_v23 }
 0x306   :  { %5161 = vmatpush3.bf16.msra.mxu0 %v5998_v43 }
 0x307   :  { %5162 = vmatprep.subr.bf16.mxu0 %v6001_v48 }
 0x30a   :  { %5163 = vmatpush3.bf16.msra.mxu0 %v6002_v7 }
 0x30b   :  { %5164 = vmatprep.subr.bf16.mxu0 %v6005_v8 }
 0x30e   :  { %5165 = vmatpush3.bf16.msra.mxu0 %v6006_v2 }
 0x30f   :  { %5230 = vmatprep.subr.bf16.mxu0 %v6009_v45 }
 0x36d   :  { %v5599_v32 = vpop.f32.mrb[24].mxu1 }
 0x36e   :  { %v2110_v40 = vpop.f32.mrb[25].mxu1  ;;  %v2150_v46 = vadd.f32 %v5599_v32, %v4947_v41 }
 0x36f   :  { %v5600_v52 = vpop.f32.mrb[26].mxu1  ;;  %v2148_v31 = vadd.f32 %v4947_v41, %v2110_v40 }
 0x370   :  { %v2113_v42 = vpop.f32.mrb[27].mxu1  ;;  %v2151_v47 = vadd.f32 %v5600_v52, %v4947_v41 }
 0x371   :  { %v2149_v25 = vadd.f32 %v4947_v41, %v2113_v42 }
 0x375   :  { %v5603_v18 = vpop.f32.mrb[28].mxu1 }
 0x376   :  { %v2126_v50 = vpop.f32.mrb[29].mxu1  ;;  %v2154_v51 = vadd.f32 %v5603_v18, %v4947_v41 }
 0x377   :  { %v5604_v10 = vpop.f32.mrb[30].mxu1  ;;  %v2152_v34 = vadd.f32 %v4947_v41, %v2126_v50 }
 0x378   :  { %v2129_v1 = vpop.f32.mrb[31].mxu1  ;;  %v2155_v35 = vadd.f32 %v5604_v10, %v4947_v41 }
 0x379   :  { %v2153_v37 = vadd.f32 %v4947_v41, %v2129_v1 }
 0x3c4   :  { %v1748_v36 = vpop.f32.mrb[2].mxu0 }
 0x3c5   :  { %v4937_v6 = vmul.f32 -1.442695, %v1748_v36  ;;  %v6919_v14 = vpop.f32.mrb[3].mxu0 }
 0x3c7   :  { %6129 = vpow2.f32 %v4937_v6 }
 0x3d1   :  { %v6130_v20 = vpop.eup %6129 }
 0x3d2   :  { %v1759_v15 = vadd.f32 1.0, %v6130_v20 }
 0x3d4   :  { %6131 = vrcp.f32 %v1759_v15 }
 0x3de   :  { %v6132_v28 = vpop.eup %6131 }
 0x3df   :  { %v2159_v27 = vrot.slane %v6132_v28, %v6690_v3 }
 0x3e1   :  { %v2160_v29 = vmul.f32 %v6925_v54, %v2159_v27  ;;  %v2161_v57 = vmul.f32 %v6928_v30, %v2159_v27  ;;  %v2162_v16 = vmul.f32 %v6931_v58, %v2159_v27  ;;  %v2163_v19 = vmul.f32 %v6934_v4, %v2159_v27 }
 0x3e2   :  { %v2164_v26 = vmul.f32 %v6937_v24, %v2159_v27  ;;  %v2165_v32 = vmul.f32 %v6940_v23, %v2159_v27  ;;  %v2166_v38 = vmul.f32 %v6943_v33, %v2159_v27  ;;  %v2167_v40 = vmul.f32 %v2159_v27, %v6621_v62 }
 0x3e3   :  { %v2168_v5 = vadd.f32 %v2160_v29, %v2148_v31  ;;  %v2169_v52 = vadd.f32 %v2161_v57, %v2149_v25  ;;  %v2170_v42 = vadd.f32 %v2162_v16, %v2150_v46  ;;  %v2171_v43 = vadd.f32 %v2163_v19, %v2151_v47  ;;  %v6995_v16 = vld [vmem:[#allocation2] sm:$0xff] }
 0x3e4   :  { %v2172_v21 = vadd.f32 %v2164_v26, %v2152_v34  ;;  %v2173_v48 = vadd.f32 %v2165_v32, %v2153_v37  ;;  %v2174_v9 = vadd.f32 %v2166_v38, %v2154_v51  ;;  %v2175_v7 = vadd.f32 %v2167_v40, %v2155_v35  ;;  %v6010_v51 = vld [vmem:[#allocation13 + $0x100] sm:$0xff]  }
 0x3e5   :  { %vm2176_vm13 = vcmp.gt.f32.partialorder %v2168_v5, 0.0  ;;  %v2184_v18 = vmul.f32 0.1, %v2168_v5  ;;  %vm2177_vm14 = vcmp.gt.f32.partialorder %v2169_v52, 0.0  ;;  %v2185_v49 = vmul.f32 0.1, %v2169_v52 }
 0x3e6   :  { %vm2178_vm15 = vcmp.gt.f32.partialorder %v2170_v42, 0.0  ;;  %v2186_v8 = vmul.f32 0.1, %v2170_v42  ;;  %vm2179_vm0 = vcmp.gt.f32.partialorder %v2171_v43, 0.0  ;;  %v2187_v50 = vmul.f32 0.1, %v2171_v43 }
 0x3e7   :  { %v6947_v53 = vsel %vm2176_vm13, %v2168_v5, %v2184_v18  ;;  %v6949_v10 = vsel %vm2177_vm14, %v2169_v52, %v2185_v49  ;;  %vm2180_vm1 = vcmp.gt.f32.partialorder %v2172_v21, 0.0  ;;  %v2188_v1 = vmul.f32 0.1, %v2172_v21  ;;  %v6012_v40 = vld [vmem:[#allocation13 + $0x180] sm:$0xff]   ;;  %v6013_v5 = vld [vmem:[#allocation13 + $0x148] sm:$0xff]   ;;  %v6018_v18 = vld [vmem:[#allocation13 + $0x110] sm:$0xff]  }
 0x3e8   :  { %2200 = vst [vmem:[#allocation2 + $0x11] sm:$0xff] %v6947_v53  ;;  %v2246_v2 = vpack.c.bf16 %v6947_v53, %v6702_v12  ;;  %2201 = vst [vmem:[#allocation2 + $0x21] sm:$0xff] %v6949_v10  ;;  %v6955_v55 = vsel %vm2178_vm15, %v2170_v42, %v2186_v8  ;;  %v2270_v45 = vpack.c.bf16 %v6949_v10, %v6947_v53  ;;  %vm2181_vm2 = vcmp.gt.f32.partialorder %v2173_v48, 0.0  ;;  %v6015_v42 = vld [vmem:[#allocation13 + $0x1c8] sm:$0xff]   ;;  %v6045_v53 = vld [vmem:[#allocation13 + $0x220] sm:$0xff]  }
 0x3e9   :  { %v6959_v63 = vsel %vm2179_vm0, %v2171_v43, %v2187_v50  ;;  %2202 = vst [vmem:[#allocation2 + $0x31] sm:$0xff] %v6955_v55  ;;  %v6964_v36 = vpack.c.bf16 %v6955_v55, %v6949_v10  ;;  %v6967_v6 = vsel %vm2180_vm1, %v2172_v21, %v2188_v1  ;;  %v2189_v12 = vmul.f32 0.1, %v2173_v48  ;;  %v6014_v43 = vld [vmem:[#allocation13 + $0x108] sm:$0xff]   ;;  %v6017_v21 = vld [vmem:[#allocation13 + $0x150] sm:$0xff]  }
 0x3ea   :  { %2203 = vst [vmem:[#allocation2 + $0x41] sm:$0xff] %v6959_v63  ;;  %2945 = vmatprep.mubr.bf16.mxu0 %v2246_v2  ;;  %2204 = vst [vmem:[#allocation2 + $0x51] sm:$0xff] %v6967_v6  ;;  %v6972_v20 = vpack.c.bf16 %v6967_v6, %v6959_v63  ;;  %vm2182_vm3 = vcmp.gt.f32.partialorder %v2174_v9, 0.0  ;;  %v2190_v15 = vmul.f32 0.1, %v2174_v9  ;;  %vm2183_vm4 = vcmp.gt.f32.partialorder %v2175_v7, 0.0 }
 0x3eb   :  { %v6974_v41 = vsel %vm2181_vm2, %v2173_v48, %v2189_v12  ;;  %v2191_v28 = vmul.f32 0.1, %v2175_v7  ;;  %v2271_v46 = vpack.c.bf16 %v6959_v63, %v6955_v55  ;;  %v6016_v48 = vld [vmem:[#allocation13 + $0x188] sm:$0xff]   ;;  %v6020_v2 = vld [vmem:[#allocation13 + $0x190] sm:$0xff]   ;;  %v6021_v12 = vld [vmem:[#allocation13 + $0x158] sm:$0xff]  }
 0x3ec   :  { %2205 = vst [vmem:[#allocation2 + $0x61] sm:$0xff] %v6974_v41  ;;  %v6979_v31 = vsel %vm2182_vm3, %v2174_v9, %v2190_v15  ;;  %v2272_v47 = vpack.c.bf16 %v6974_v41, %v6967_v6  ;;  %v6047_v63 = vld [vmem:[#allocation13 + $0x230] sm:$0xff]  }
 0x3ed   :  { %2206 = vst [vmem:[#allocation2 + $0x71] sm:$0xff] %v6979_v31  ;;  %v6986_v25 = vpack.c.bf16 %v6979_v31, %v6974_v41  ;;  %v6988_v27 = vsel %vm2183_vm4, %v2175_v7, %v2191_v28  ;;  %v6019_v7 = vld [vmem:[#allocation13 + $0x1d0] sm:$0xff]   ;;  %v6023_v28 = vld [vmem:[#allocation13 + $0x1d8] sm:$0xff]  }
 0x3ee   :  { %2207 = vst [vmem:[#allocation2 + $0x81] sm:$0xff] %v6988_v27  ;;  %v2273_v34 = vpack.c.bf16 %v6988_v27, %v6979_v31  ;;  %v7056_v41 = vld [vmem:[#allocation2 + $0x92] sm:$0xff]  ;;  %v6049_v31 = vld [vmem:[%s7459_s9] sm:$0xff]  }
 0x3ef   :  { %v2209_v35 = vld [vmem:[#allocation2 + $0x10] sm:$0xff]  ;;  %v2210_v37 = vld [vmem:[#allocation2 + $0x20] sm:$0xff] }
 0x3f0   :  { %v6993_v29 = vld [vmem:[#allocation2 + $0x12] sm:$0xff]  ;;  %v2262_v57 = vpack.c.bf16 %v2210_v37, %v2209_v35  ;;  %v2238_v19 = vpack.c.bf16 %v2209_v35, %v6995_v16  ;;  %v6025_v35 = vld [vmem:[#allocation13 + $0x160] sm:$0xff]  }
 0x3f1   :  { %v2254_v26 = vpack.c.bf16 %v6993_v29, %v6708_v17  ;;  %v2211_v32 = vld [vmem:[#allocation2 + $0x30] sm:$0xff]  ;;  %v2212_v38 = vld [vmem:[#allocation2 + $0x40] sm:$0xff] }
 0x3f2   :  { %3010 = vmatprep.mubr.bf16.mxu1 %v2262_v57  ;;  %2946 = vmatmul.mubr.bf16.vlgmr.msra.gmra.mrb[24].mxu0 %v2238_v19  ;;  %v2263_v52 = vpack.c.bf16 %v2212_v38, %v2211_v32  ;;  %v7001_v17 = vld [vmem:[#allocation2 + $0x22] sm:$0xff]  ;;  %v7003_v9 = vld [vmem:[#allocation2 + $0x32] sm:$0xff]  ;;  %v7005_v50 = vpack.c.bf16 %v2211_v32, %v2210_v37 }
 0x3f3   :  { %3011 = vmatmul.mubr.bf16.vlgmr.msra.gmra.mrb[32].mxu1 %v2254_v26  ;;  %5231 = vmatpush3.bf16.msra.mxu0 %v6010_v51  ;;  %v2213_v49 = vld [vmem:[#allocation2 + $0x50] sm:$0xff]  ;;  %v2214_v8 = vld [vmem:[#allocation2 + $0x60] sm:$0xff]  ;;  %v7009_v1 = vpack.c.bf16 %v7003_v9, %v7001_v17  ;;  %v6027_v26 = vld [vmem:[#allocation13 + $0x1e0] sm:$0xff]  }
 0x3f4   :  { %2953 = vmatprep.mubr.bf16.mxu0 %v6964_v36  ;;  %3018 = vmatprep.mubr.bf16.mxu1 %v2263_v52  ;;  %v2264_v15 = vpack.c.bf16 %v2214_v8, %v2213_v49  ;;  %v6022_v51 = vld [vmem:[#allocation13 + $0x118] sm:$0xff]   ;;  %v7014_v19 = vld [vmem:[#allocation2 + $0x52] sm:$0xff]  ;;  %v6026_v32 = vld [vmem:[#allocation13 + $0x120] sm:$0xff]   ;;  %v2240_v52 = vpack.c.bf16 %v2213_v49, %v2212_v38 }
 0x3f5   :  { %5271 = vmatpush3.bf16.msra.mxu1 %v6012_v40  ;;  %5232 = vmatprep.subr.bf16.mxu0 %v6013_v5  ;;  %v6024_v37 = vld [vmem:[#allocation13 + $0x198] sm:$0xff]   ;;  %v2215_v40 = vld [vmem:[#allocation2 + $0x70] sm:$0xff] }
 0x3f6   :  { %5272 = vmatprep.subr.bf16.mxu1 %v6015_v42  ;;  %v2232_v57 = vld [vmem:[#allocation2 + $0x42] sm:$0xff]  ;;  %v6032_v38 = vld [vmem:[#allocation13 + $0x1a8] sm:$0xff]  }
 0x3f7   :  { %5233 = vmatpush3.bf16.msra.mxu0 %v6014_v43  ;;  %v7016_v5 = vld [vmem:[#allocation2 + $0x80] sm:$0xff]  ;;  %v7019_v42 = vpack.c.bf16 %v7014_v19, %v2232_v57  ;;  %v6028_v43 = vld [vmem:[#allocation13 + $0x1a0] sm:$0xff]  }
 0x3f8   :  { %5234 = vmatprep.subr.bf16.mxu0 %v6017_v21  ;;  %v6029_v21 = vld [vmem:[#allocation13 + $0x168] sm:$0xff]   ;;  %v2234_v49 = vld [vmem:[#allocation2 + $0x62] sm:$0xff]  ;;  %v2286_v6 = vpack.c.bf16 %v6995_v16, %v7016_v5 }
 0x3f9   :  { %5273 = vmatpush3.bf16.msra.mxu1 %v6016_v48  ;;  %v2265_v48 = vpack.c.bf16 %v7016_v5, %v2215_v40  ;;  %v2236_v10 = vld [vmem:[#allocation2 + $0x82] sm:$0xff] }
 0x3fa   :  { %2954 = vmatmul.mubr.bf16.gmra.mrb[28].mxu0 %v7005_v50  ;;  %5274 = vmatprep.subr.bf16.mxu1 %v6019_v7  ;;  %v6031_v7 = vld [vmem:[#allocation13 + $0x1e8] sm:$0xff]   ;;  %v6053_v16 = vld [vmem:[%s7459_s9 + $0x20] sm:$0xff]   ;;  %v6057_v5 = vld [vmem:[#allocation15 + $0x40] sm:$0xff]  }
 0x3fb   :  { %3019 = vmatmul.mubr.bf16.gmra.mrb[36].mxu1 %v7009_v1  ;;  %5235 = vmatpush3.bf16.msra.mxu0 %v6018_v18  ;;  %v6030_v18 = vld [vmem:[#allocation13 + $0x128] sm:$0xff]  }
 0x3fc   :  { %2961 = vmatprep.mubr.bf16.mxu0 %v6972_v20  ;;  %3026 = vmatprep.mubr.bf16.mxu1 %v2264_v15  ;;  %v6035_v15 = vld [vmem:[#allocation13 + $0x1f0] sm:$0xff]  }
 0x3fd   :  { %5275 = vmatpush3.bf16.msra.mxu1 %v6020_v2  ;;  %5236 = vmatprep.subr.bf16.mxu0 %v6021_v12  ;;  %v6033_v2 = vld [vmem:[#allocation13 + $0x170] sm:$0xff]  }
 0x3fe   :  { %5276 = vmatprep.subr.bf16.mxu1 %v6023_v28  ;;  %v2235_v12 = vld [vmem:[#allocation2 + $0x72] sm:$0xff] }
 0x3ff   :  { %5237 = vmatpush3.bf16.msra.mxu0 %v6022_v51  ;;  %v6034_v28 = vld [vmem:[#allocation13 + $0x130] sm:$0xff]   ;;  %v2241_v51 = vpack.c.bf16 %v2215_v40, %v2214_v8  ;;  %v6040_v8 = vld [vmem:[#allocation13 + $0x1b8] sm:$0xff]   ;;  %v6042_v40 = vld [vmem:[#allocation13 + $0x208] sm:$0xff]  }
 0x400   :  { %5238 = vmatprep.subr.bf16.mxu0 %v6025_v35  ;;  %v7024_v35 = vpack.c.bf16 %v2235_v12, %v2234_v49 }
 0x401   :  { %5277 = vmatpush3.bf16.msra.mxu1 %v6024_v37  ;;  %v6036_v37 = vld [vmem:[#allocation13 + $0x1b0] sm:$0xff]  }
 0x402   :  { %2962 = vmatmul.mubr.bf16.gmra.mrb[32].mxu0 %v2240_v52  ;;  %5278 = vmatprep.subr.bf16.mxu1 %v6027_v26  ;;  %v6037_v26 = vld [vmem:[#allocation13 + $0x178] sm:$0xff]  }
 0x403   :  { %3027 = vmatmul.mubr.bf16.gmra.mrb[40].mxu1 %v7019_v42  ;;  %5239 = vmatpush3.bf16.msra.mxu0 %v6026_v32  ;;  %v2278_v32 = vpack.c.bf16 %v7001_v17, %v6993_v29  ;;  %v6044_v29 = vld [vmem:[#allocation13 + $0x218] sm:$0xff]   ;;  %v2280_v17 = vpack.c.bf16 %v2234_v49, %v7014_v19 }
 0x404   :  { %2969 = vmatprep.mubr.bf16.mxu0 %v6986_v25  ;;  %3034 = vmatprep.mubr.bf16.mxu1 %v2265_v48  ;;  %v6041_v48 = vld [vmem:[#allocation13 + $0x200] sm:$0xff]  }
 0x405   :  { %5279 = vmatpush3.bf16.msra.mxu1 %v6028_v43  ;;  %5240 = vmatprep.subr.bf16.mxu0 %v6029_v21  ;;  %v6039_v43 = vld [vmem:[#allocation13 + $0x1f8] sm:$0xff]  }
 0x406   :  { %5280 = vmatprep.subr.bf16.mxu1 %v6031_v7  ;;  %v6038_v21 = vld [vmem:[#allocation13 + $0x138] sm:$0xff]   ;;  %v2279_v7 = vpack.c.bf16 %v2232_v57, %v7003_v9  ;;  %v7044_v9 = vld [vmem:[#allocation2 + $0x91] sm:$0xff] }
 0x407   :  { %5241 = vmatpush3.bf16.msra.mxu0 %v6030_v18  ;;  %v2291_v55 = vpack.c.bf16 %v7044_v9, %v6988_v27  ;;  %v6051_v27 = vld [vmem:[%s7459_s9 + $0x10] sm:$0xff]   ;;  %v6056_v57 = vld [vmem:[%s7459_s9 + $0x38] sm:$0xff]  }
 0x408   :  { %5242 = vmatprep.subr.bf16.mxu0 %v6033_v2 }
 0x409   :  { %5281 = vmatpush3.bf16.msra.mxu1 %v6032_v38  ;;  %v6060_v38 = vld [vmem:[#allocation15 + $0x48] sm:$0xff]  }
 0x40a   :  { %2970 = vmatmul.mubr.bf16.gmra.mrb[36].mxu0 %v2241_v51  ;;  %5282 = vmatprep.subr.bf16.mxu1 %v6035_v15 }
 0x40b   :  { %3035 = vmatmul.mubr.bf16.gmra.mrb[44].mxu1 %v7024_v35  ;;  %5243 = vmatpush3.bf16.msra.mxu0 %v6034_v28 }
 0x40c   :  { %3075 = vmatprep.mubr.bf16.mxu0 %v2278_v32  ;;  %3140 = vmatprep.mubr.bf16.mxu1 %v6964_v36  ;;  %v6043_v36 = vld [vmem:[#allocation13 + $0x210] sm:$0xff]  }
 0x40d   :  { %5283 = vmatpush3.bf16.msra.mxu1 %v6036_v37  ;;  %5244 = vmatprep.subr.bf16.mxu0 %v6037_v26  ;;  %v6062_v37 = vld [vmem:[#allocation15 + $0x8] sm:$0xff]  }
 0x40e   :  { %5284 = vmatprep.subr.bf16.mxu1 %v6039_v43  ;;  %v6064_v43 = vld [vmem:[#allocation15 + $0x50] sm:$0xff]  }
 0x40f   :  { %5245 = vmatpush3.bf16.msra.mxu0 %v6038_v21 }
 0x410   :  { %5605 = vmatprep.subr.bf16.mxu0 %v6041_v48 }
 0x411   :  { %5285 = vmatpush3.bf16.msra.mxu1 %v6040_v8 }
 0x412   :  { %3076 = vmatmul.mubr.bf16.vlgmr.msra.gmra.mrb[40].mxu0 %v2270_v45  ;;  %v6046_v45 = vld [vmem:[#allocation13 + $0x228] sm:$0xff]   ;;  %5629 = vmatprep.subr.bf16.mxu1 %v6049_v31 }
 0x413   :  { %5606 = vmatpush3.bf16.msra.mxu0 %v6041_v48  ;;  %3083 = vmatprep.mubr.bf16.mxu0 %v2279_v7 }
 0x414   :  { %3141 = vmatmul.mubr.bf16.vlgmr.msra.gmra.mrb[48].mxu1 %v7005_v50  ;;  %5607 = vmatprep.subr.bf16.mxu0 %v6042_v40  ;;  %v6054_v50 = vld [vmem:[%s7459_s9 + $0x28] sm:$0xff]  }
 0x415   :  { %3148 = vmatprep.mubr.bf16.mxu1 %v6972_v20  ;;  %v2281_v20 = vpack.c.bf16 %v2236_v10, %v2235_v12  ;;  %5630 = vmatpush3.bf16.msra.mxu1 %v6049_v31 }
 0x417   :  { %5608 = vmatpush3.bf16.msra.mxu0 %v6042_v40  ;;  %v6066_v40 = vld [vmem:[#allocation15 + $0x10] sm:$0xff]  }
 0x418   :  { %5609 = vmatprep.subr.bf16.mxu0 %v6043_v36 }
 0x41a   :  { %3084 = vmatmul.mubr.bf16.gmra.mrb[44].mxu0 %v2271_v46  ;;  %v6048_v46 = vld [vmem:[#allocation13 + $0x238] sm:$0xff]  }
 0x41b   :  { %5610 = vmatpush3.bf16.msra.mxu0 %v6043_v36  ;;  %3091 = vmatprep.mubr.bf16.mxu0 %v2280_v17  ;;  %v6068_v36 = vld [vmem:[#allocation15 + $0x58] sm:$0xff]  }
 0x41c   :  { %3149 = vmatmul.mubr.bf16.gmra.mrb[52].mxu1 %v2240_v52  ;;  %5611 = vmatprep.subr.bf16.mxu0 %v6044_v29  ;;  %v6058_v52 = vld [vmem:[#allocation15] sm:$0xff]  }
 0x41d   :  { %3156 = vmatprep.mubr.bf16.mxu1 %v6986_v25  ;;  %v6050_v25 = vld [vmem:[%s7459_s9 + $0x8] sm:$0xff]  }
 0x41e   :  { %5631 = vmatprep.subr.bf16.mxu1 %v6050_v25 }
 0x41f   :  { %5612 = vmatpush3.bf16.msra.mxu0 %v6044_v29  ;;  %5632 = vmatpush3.bf16.msra.mxu1 %v6050_v25 }
 0x420   :  { %5613 = vmatprep.subr.bf16.mxu0 %v6045_v53  ;;  %5633 = vmatprep.subr.bf16.mxu1 %v6051_v27 }
 0x422   :  { %3092 = vmatmul.mubr.bf16.gmra.mrb[48].mxu0 %v2272_v47  ;;  %v2296_v47 = vpack.c.bf16 %v7056_v41, %v2236_v10 }
 0x423   :  { %5614 = vmatpush3.bf16.msra.mxu0 %v6045_v53  ;;  %3099 = vmatprep.mubr.bf16.mxu0 %v2281_v20 }
 0x424   :  { %3157 = vmatmul.mubr.bf16.gmra.mrb[56].mxu1 %v2241_v51  ;;  %5615 = vmatprep.subr.bf16.mxu0 %v6046_v45 }
 0x425   :  { %3164 = vmatprep.mubr.bf16.mxu1 %v2291_v55  ;;  %5634 = vmatpush3.bf16.msra.mxu1 %v6051_v27 }
 0x427   :  { %5616 = vmatpush3.bf16.msra.mxu0 %v6046_v45 }
 0x428   :  { %5617 = vmatprep.subr.bf16.mxu0 %v6047_v63 }
 0x42a   :  { %3100 = vmatmul.mubr.bf16.gmra.mrb[52].mxu0 %v2273_v34  ;;  %v6052_v34 = vld [vmem:[%s7459_s9 + $0x18] sm:$0xff]  }
 0x42b   :  { %5618 = vmatpush3.bf16.msra.mxu0 %v6047_v63  ;;  %5621 = vmatprep.mubr.bf16.mxu0 %v7009_v1  ;;  %v6055_v1 = vld [vmem:[%s7459_s9 + $0x30] sm:$0xff]  }
 0x42c   :  { %3165 = vmatmul.mubr.bf16.gmra.mrb[60].mxu1 %v2286_v6  ;;  %5619 = vmatprep.subr.bf16.mxu0 %v6048_v46 }
 0x42d   :  { %5635 = vmatprep.subr.bf16.mxu1 %v6052_v34 }
 0x42e   :  { %5636 = vmatpush3.bf16.msra.mxu1 %v6052_v34 }
 0x42f   :  { %5620 = vmatpush3.bf16.msra.mxu0 %v6048_v46  ;;  %5637 = vmatprep.subr.bf16.mxu1 %v6053_v16 }
 0x430   :  { %5334 = vmatprep.subr.bf16.mxu0 %v6057_v5 }
 0x432   :  { %5622 = vmatmul.mubr.bf16.vlgmr.msra.gmra.mrb[56].mxu0 %v7019_v42  ;;  %5638 = vmatpush3.bf16.msra.mxu1 %v6053_v16  ;;  %v6059_v42 = vld [vmem:[#allocation15 + $0xc0] sm:$0xff]  }
 0x433   :  { %5625 = vmatprep.mubr.bf16.mxu0 %v7024_v35  ;;  %5639 = vmatprep.subr.bf16.mxu1 %v6054_v50 }
 0x434   :  { %5335 = vmatpush3.bf16.msra.mxu0 %v6058_v52 }
 0x435   :  { %5336 = vmatprep.subr.bf16.mxu0 %v6060_v38 }
 0x436   :  { %5640 = vmatpush3.bf16.msra.mxu1 %v6054_v50 }
 0x437   :  { %5641 = vmatprep.subr.bf16.mxu1 %v6055_v1 }
 0x438   :  { %5337 = vmatpush3.bf16.msra.mxu0 %v6062_v37 }
 0x439   :  { %5338 = vmatprep.subr.bf16.mxu0 %v6064_v43 }
 0x43a   :  { %5626 = vmatmul.mubr.bf16.gmra.mrb[60].mxu0 %v2296_v47  ;;  %5642 = vmatpush3.bf16.msra.mxu1 %v6055_v1 }
 0x43b   :  { %5643 = vmatprep.subr.bf16.mxu1 %v6056_v57 }
 0x43c   :  { %5339 = vmatpush3.bf16.msra.mxu0 %v6066_v40 }
 0x43d   :  { %5340 = vmatprep.subr.bf16.mxu0 %v6068_v36 }
 0x43e   :  { %5644 = vmatpush3.bf16.msra.mxu1 %v6056_v57 }
 0x43f   :  { %5374 = vmatprep.subr.bf16.mxu1 %v6059_v42 }
 0x4c5   :  { %v5166_v19 = vpop.f32.mrb[24].mxu0 }
 0x4c6   :  { %v5206_v18 = vpop.f32.mrb[32].mxu1  ;;  %v5167_v2 = vpop.f32.mrb[25].mxu0 }
 0x4c7   :  { %v5168_v49 = vadd.f32 %v5167_v2, %v5166_v19  ;;  %v5207_v12 = vpop.f32.mrb[33].mxu1  ;;  %v5169_v15 = vpop.f32.mrb[26].mxu0 }
 0x4c8   :  { %v5208_v28 = vadd.f32 %v5207_v12, %v5206_v18  ;;  %v5209_v51 = vpop.f32.mrb[34].mxu1  ;;  %v5170_v35 = vpop.f32.mrb[27].mxu0 }
 0x4c9   :  { %v5171_v26 = vadd.f32 %v5170_v35, %v5169_v15  ;;  %v5210_v32 = vpop.f32.mrb[35].mxu1 }
 0x4ca   :  { %v3013_v21 = vadd.f32 %v5208_v28, %v5168_v49  ;;  %v5211_v48 = vadd.f32 %v5210_v32, %v5209_v51 }
 0x4cc   :  { %v3016_v8 = vadd.f32 %v5211_v48, %v5171_v26 }
 0x4cd   :  { %v5172_v7 = vpop.f32.mrb[28].mxu0 }
 0x4ce   :  { %v5212_v29 = vpop.f32.mrb[36].mxu1  ;;  %v5173_v17 = vpop.f32.mrb[29].mxu0 }
 0x4cf   :  { %v5174_v53 = vadd.f32 %v5173_v17, %v5172_v7  ;;  %v5213_v10 = vpop.f32.mrb[37].mxu1  ;;  %v5175_v45 = vpop.f32.mrb[30].mxu0 }
 0x4d0   :  { %v5214_v20 = vadd.f32 %v5213_v10, %v5212_v29  ;;  %v5215_v55 = vpop.f32.mrb[38].mxu1  ;;  %v5176_v63 = vpop.f32.mrb[31].mxu0 }
 0x4d1   :  { %v5177_v46 = vadd.f32 %v5176_v63, %v5175_v45  ;;  %v5216_v6 = vpop.f32.mrb[39].mxu1 }
 0x4d2   :  { %v3021_v47 = vadd.f32 %v5214_v20, %v5174_v53  ;;  %v5217_v31 = vadd.f32 %v5216_v6, %v5215_v55 }
 0x4d4   :  { %v3024_v25 = vadd.f32 %v5217_v31, %v5177_v46 }
 0x4d5   :  { %v5178_v27 = vpop.f32.mrb[32].mxu0 }
 0x4d6   :  { %v5218_v34 = vpop.f32.mrb[40].mxu1  ;;  %v5179_v16 = vpop.f32.mrb[33].mxu0 }
 0x4d7   :  { %v5180_v50 = vadd.f32 %v5179_v16, %v5178_v27  ;;  %v5219_v1 = vpop.f32.mrb[41].mxu1  ;;  %v5181_v57 = vpop.f32.mrb[34].mxu0 }
 0x4d8   :  { %v5220_v19 = vadd.f32 %v5219_v1, %v5218_v34  ;;  %v5221_v5 = vpop.f32.mrb[42].mxu1  ;;  %v5182_v52 = vpop.f32.mrb[35].mxu0  ;;  %v4938_v34 = vmul.f32 -1.442695, %v6919_v14 }
 0x4d9   :  { %v5183_v42 = vadd.f32 %v5182_v52, %v5181_v57  ;;  %v5222_v18 = vpop.f32.mrb[43].mxu1 }
 0x4da   :  { %v3029_v2 = vadd.f32 %v5220_v19, %v5180_v50  ;;  %v5223_v38 = vadd.f32 %v5222_v18, %v5221_v5  ;;  %6133 = vpow2.f32 %v4938_v34 }
 0x4dc   :  { %v7083_v49 = vadd.f32 %v5223_v38, %v5183_v42 }
 0x4dd   :  { %v5184_v12 = vpop.f32.mrb[36].mxu0 }
 0x4de   :  { %v5224_v15 = vpop.f32.mrb[44].mxu1  ;;  %v5185_v28 = vpop.f32.mrb[37].mxu0 }
 0x4df   :  { %v5186_v51 = vadd.f32 %v5185_v28, %v5184_v12  ;;  %v5225_v35 = vpop.f32.mrb[45].mxu1  ;;  %v5187_v37 = vpop.f32.mrb[38].mxu0 }
 0x4e0   :  { %v5226_v26 = vadd.f32 %v5225_v35, %v5224_v15  ;;  %v5227_v32 = vpop.f32.mrb[46].mxu1  ;;  %v5188_v43 = vpop.f32.mrb[39].mxu0 }
 0x4e1   :  { %v5189_v48 = vadd.f32 %v5188_v43, %v5187_v37  ;;  %v5228_v40 = vpop.f32.mrb[47].mxu1 }
 0x4e2   :  { %v7085_v7 = vadd.f32 %v5226_v26, %v5186_v51  ;;  %v5229_v36 = vadd.f32 %v5228_v40, %v5227_v32 }
 0x4e4   :  { %v7087_v29 = vadd.f32 %v5229_v36, %v5189_v48 }
 0x4e5   :  { %v5246_v17 = vpop.f32.mrb[40].mxu0 }
 0x4e6   :  { %v5247_v53 = vpop.f32.mrb[41].mxu0 }
 0x4e7   :  { %v5286_v10 = vpop.f32.mrb[48].mxu1  ;;  %v5248_v45 = vadd.f32 %v5247_v53, %v5246_v17  ;;  %v5249_v20 = vpop.f32.mrb[42].mxu0 }
 0x4e8   :  { %v5287_v55 = vpop.f32.mrb[49].mxu1  ;;  %v5250_v63 = vpop.f32.mrb[43].mxu0 }
 0x4e9   :  { %v3078_v46 = vadd.f32 %v5248_v45, %v3013_v21  ;;  %v5288_v6 = vadd.f32 %v5287_v55, %v5286_v10  ;;  %v5289_v31 = vpop.f32.mrb[50].mxu1  ;;  %v5251_v27 = vadd.f32 %v5250_v63, %v5249_v20  ;;  %v6134_v53 = vpop.eup %6133 }
 0x4ea   :  { %v5290_v16 = vpop.f32.mrb[51].mxu1 }
 0x4eb   :  { %v3081_v50 = vadd.f32 %v5251_v27, %v3016_v8  ;;  %v5291_v1 = vadd.f32 %v5290_v16, %v5289_v31  ;;  %v3143_v57 = vadd.f32 %v5288_v6, %v3078_v46  ;;  %v1760_v6 = vadd.f32 1.0, %v6134_v53 }
 0x4ed   :  { %v5252_v19 = vpop.f32.mrb[44].mxu0  ;;  %v7090_v5 = vadd.f32 %v5291_v1, %v3081_v50  ;;  %6135 = vrcp.f32 %v1760_v6 }
 0x4ee   :  { %v5253_v52 = vpop.f32.mrb[45].mxu0 }
 0x4ef   :  { %v5292_v42 = vpop.f32.mrb[52].mxu1  ;;  %v5254_v18 = vadd.f32 %v5253_v52, %v5252_v19  ;;  %v5255_v38 = vpop.f32.mrb[46].mxu0 }
 0x4f0   :  { %v5293_v12 = vpop.f32.mrb[53].mxu1  ;;  %v5256_v15 = vpop.f32.mrb[47].mxu0 }
 0x4f1   :  { %v3086_v21 = vadd.f32 %v5254_v18, %v3021_v47  ;;  %v5294_v28 = vadd.f32 %v5293_v12, %v5292_v42  ;;  %v5295_v51 = vpop.f32.mrb[54].mxu1  ;;  %v5257_v35 = vadd.f32 %v5256_v15, %v5255_v38 }
 0x4f2   :  { %v5296_v37 = vpop.f32.mrb[55].mxu1 }
 0x4f3   :  { %v3089_v14 = vadd.f32 %v5257_v35, %v3024_v25  ;;  %v5297_v26 = vadd.f32 %v5296_v37, %v5295_v51  ;;  %v3151_v8 = vadd.f32 %v5294_v28, %v3086_v21  ;;  %v5020_v37 = vld [vmem:[%s7462_s12] ss:$0 sm:$0xff] }
 0x4f5   :  { %v5258_v32 = vpop.f32.mrb[48].mxu0  ;;  %v3154_v43 = vadd.f32 %v5297_v26, %v3089_v14 }
 0x4f6   :  { %v5259_v48 = vpop.f32.mrb[49].mxu0 }
 0x4f7   :  { %v5298_v40 = vpop.f32.mrb[56].mxu1  ;;  %v5260_v36 = vadd.f32 %v5259_v48, %v5258_v32  ;;  %v5261_v17 = vpop.f32.mrb[50].mxu0 }
 0x4f8   :  { %v5299_v10 = vpop.f32.mrb[57].mxu1  ;;  %v5262_v45 = vpop.f32.mrb[51].mxu0 }
 0x4f9   :  { %v3094_v20 = vadd.f32 %v5260_v36, %v3029_v2  ;;  %v5300_v55 = vadd.f32 %v5299_v10, %v5298_v40  ;;  %v5301_v63 = vpop.f32.mrb[58].mxu1  ;;  %v5263_v47 = vadd.f32 %v5262_v45, %v5261_v17  ;;  %v7106_v10 = vrot.slane %v6906_v59, %v6690_v3 }
 0x4fa   :  { %v5302_v46 = vpop.f32.mrb[59].mxu1  ;;  %v7110_v45 = vrot.slane %v6908_v0, %v6690_v3 }
 0x4fb   :  { %v3097_v31 = vadd.f32 %v5263_v47, %v7083_v49  ;;  %v5303_v25 = vadd.f32 %v5302_v46, %v5301_v63  ;;  %v3159_v27 = vadd.f32 %v5300_v55, %v3094_v20  ;;  %v7115_v20 = vrot.slane %v6913_v56, %v6690_v3 }
 0x4fc   :  { %v7119_v55 = vrot.slane %v6917_v61, %v6690_v3 }
 0x4fd   :  { %v5264_v34 = vpop.f32.mrb[52].mxu0  ;;  %v7093_v16 = vadd.f32 %v5303_v25, %v3097_v31 }
 0x4fe   :  { %v5265_v50 = vpop.f32.mrb[53].mxu0 }
 0x4ff   :  { %v5304_v1 = vpop.f32.mrb[60].mxu1  ;;  %v5266_v19 = vadd.f32 %v5265_v50, %v5264_v34  ;;  %v5267_v52 = vpop.f32.mrb[54].mxu0 }
 0x500   :  { %v5305_v42 = vpop.f32.mrb[61].mxu1  ;;  %v5268_v18 = vpop.f32.mrb[55].mxu0 }
 0x501   :  { %v3102_v2 = vadd.f32 %v5266_v19, %v7085_v7  ;;  %v5306_v38 = vadd.f32 %v5305_v42, %v5304_v1  ;;  %v5307_v12 = vpop.f32.mrb[62].mxu1  ;;  %v5269_v15 = vadd.f32 %v5268_v18, %v5267_v52  ;;  %v7102_v7 = vrot.slane %v6901_v44, %v6690_v3 }
 0x502   :  { %v5308_v21 = vpop.f32.mrb[63].mxu1 }
 0x503   :  { %v3105_v49 = vadd.f32 %v5269_v15, %v7087_v29  ;;  %v5309_v28 = vadd.f32 %v5308_v21, %v5307_v12  ;;  %v3167_v51 = vadd.f32 %v5306_v38, %v3102_v2  ;;  %v6136_v29 = vpop.eup %6135 }
 0x504   :  { %v7122_v0 = vrot.slane %v6136_v29, %v6690_v3 }
 0x505   :  { %v5623_v35 = vpop.f32.mrb[56].mxu0  ;;  %v3170_v14 = vadd.f32 %v5309_v28, %v3105_v49 }
 0x506   :  { %v3216_v26 = vadd.f32 %v5623_v35, %v3151_v8  ;;  %v3207_v32 = vpop.f32.mrb[57].mxu0 }
 0x507   :  { %v3208_v48 = vadd.f32 %v3207_v32, %v3143_v57  ;;  %v5624_v40 = vpop.f32.mrb[58].mxu0 }
 0x508   :  { %v3247_v36 = vadd.f32 %v5020_v37, %v3216_v26  ;;  %v3219_v17 = vadd.f32 %v5624_v40, %v3154_v43  ;;  %v3210_v53 = vpop.f32.mrb[59].mxu0 }
 0x509   :  { %v3245_v8 = vadd.f32 %v5020_v37, %v3208_v48  ;;  %v3211_v57 = vadd.f32 %v3210_v53, %v7090_v5 }
 0x50a   :  { %vm3255_vm5 = vcmp.gt.f32.partialorder %v3247_v36, 0.0  ;;  %v3263_v44 = vmul.f32 0.1, %v3247_v36  ;;  %v3248_v43 = vadd.f32 %v5020_v37, %v3219_v17 }
 0x50b   :  { %vm3253_vm6 = vcmp.gt.f32.partialorder %v3245_v8, 0.0  ;;  %v3261_v59 = vmul.f32 0.1, %v3245_v8  ;;  %v3246_v63 = vadd.f32 %v5020_v37, %v3211_v57 }
 0x50c   :  { %v3271_v47 = vsel %vm3255_vm5, %v3247_v36, %v3263_v44  ;;  %vm3256_vm7 = vcmp.gt.f32.partialorder %v3248_v43, 0.0  ;;  %v3264_v5 = vmul.f32 0.1, %v3248_v43 }
 0x50d   :  { %3279 = vst [vmem:[#allocation2 + $0x31] sm:$0xff] %v3271_v47  ;;  %v7124_v46 = vsel %vm3253_vm6, %v3245_v8, %v3261_v59  ;;  %vm3254_vm8 = vcmp.gt.f32.partialorder %v3246_v63, 0.0  ;;  %v3262_v56 = vmul.f32 0.1, %v3246_v63  ;;  %v5627_v6 = vpop.f32.mrb[60].mxu0  ;;  %v3334_v31 = vmul.f32 %v6889_v22, %v3271_v47 }
 0x50e   :  { %3277 = vst [vmem:[#allocation2 + $0x11] sm:$0xff] %v7124_v46  ;;  %v7128_v61 = vsel %vm3256_vm7, %v3248_v43, %v3264_v5  ;;  %v3232_v25 = vadd.f32 %v5627_v6, %v3167_v51  ;;  %v3223_v34 = vpop.f32.mrb[61].mxu0  ;;  %v3332_v50 = vmul.f32 %v6889_v22, %v7124_v46  ;;  %v7134_v1 = vmul.f32 %v7102_v7, %v7124_v46 }
 0x50f   :  { %3280 = vst [vmem:[#allocation2 + $0x41] sm:$0xff] %v7128_v61  ;;  %v7137_v19 = vsel %vm3254_vm8, %v3246_v63, %v3262_v56  ;;  %v3224_v52 = vadd.f32 %v3223_v34, %v3159_v27  ;;  %v5628_v42 = vpop.f32.mrb[62].mxu0  ;;  %v7140_v18 = vmul.f32 %v7102_v7, %v3271_v47  ;;  %v7143_v2 = vmul.f32 %v7119_v55, %v3271_v47 }
 0x510   :  { %3278 = vst [vmem:[#allocation2 + $0x21] sm:$0xff] %v7137_v19  ;;  %v3251_v38 = vadd.f32 %v5020_v37, %v3232_v25  ;;  %v3235_v12 = vadd.f32 %v5628_v42, %v3170_v14  ;;  %v3226_v15 = vpop.f32.mrb[63].mxu0  ;;  %v3333_v21 = vmul.f32 %v6889_v22, %v7137_v19  ;;  %v7150_v49 = vmul.f32 %v7102_v7, %v7137_v19 }
 0x511   :  { %v3249_v27 = vadd.f32 %v5020_v37, %v3224_v52  ;;  %v3227_v28 = vadd.f32 %v3226_v15, %v7093_v16  ;;  %v7155_v51 = vmul.f32 %v7119_v55, %v7137_v19  ;;  %v3394_v35 = vmul.f32 %v7102_v7, %v7128_v61 }
 0x512   :  { %vm3259_vm9 = vcmp.gt.f32.partialorder %v3251_v38, 0.0  ;;  %v3267_v14 = vmul.f32 0.1, %v3251_v38  ;;  %v3252_v26 = vadd.f32 %v5020_v37, %v3235_v12  ;;  %v7161_v32 = vmul.f32 %v7119_v55, %v7128_v61 }
 0x513   :  { %vm3257_vm10 = vcmp.gt.f32.partialorder %v3249_v27, 0.0  ;;  %v3265_v48 = vmul.f32 0.1, %v3249_v27  ;;  %v3250_v40 = vadd.f32 %v5020_v37, %v3227_v28  ;;  %v7165_v16 = vmul.f32 %v6889_v22, %v7128_v61 }
 0x514   :  { %v7167_v36 = vsel %vm3259_vm9, %v3251_v38, %v3267_v14  ;;  %vm3260_vm11 = vcmp.gt.f32.partialorder %v3252_v26, 0.0  ;;  %v3268_v17 = vmul.f32 0.1, %v3252_v26  ;;  %v3288_v53 = vld [vmem:[#allocation2 + $0x30] sm:$0xff]  ;;  %v7170_v8 = vmul.f32 %v7122_v0, %v3271_v47 }
 0x515   :  { %v3308_v29 = vld [vmem:[#allocation2 + $0x32] sm:$0xff]  ;;  %3283 = vst [vmem:[#allocation2 + $0x71] sm:$0xff] %v7167_v36  ;;  %v7173_v57 = vsel %vm3257_vm10, %v3249_v27, %v3265_v48  ;;  %vm3258_vm12 = vcmp.gt.f32.partialorder %v3250_v40, 0.0  ;;  %v3266_v44 = vmul.f32 0.1, %v3250_v40  ;;  %v3322_v59 = vmul.f32 %v6886_v60, %v3288_v53 }
 0x516   :  { %v3286_v37 = vld [vmem:[#allocation2 + $0x10] sm:$0xff]  ;;  %v7178_v63 = vrot.slane %v6915_v39, %v6690_v3  ;;  %3281 = vst [vmem:[#allocation2 + $0x51] sm:$0xff] %v7173_v57  ;;  %v7181_v5 = vsel %vm3260_vm11, %v3252_v26, %v3268_v17  ;;  %v3289_v47 = vld [vmem:[#allocation2 + $0x40] sm:$0xff]  ;;  %v3354_v38 = vmul.f32 %v6904_v13, %v3308_v29  ;;  %v3373_v27 = vmul.f32 %v7106_v10, %v3288_v53 }
 0x517   :  { %v3306_v43 = vld [vmem:[#allocation2 + $0x12] sm:$0xff]  ;;  %v3320_v56 = vmul.f32 %v6886_v60, %v3286_v37  ;;  %3284 = vst [vmem:[#allocation2 + $0x81] sm:$0xff] %v7181_v5  ;;  %v7186_v25 = vsel %vm3258_vm12, %v3250_v40, %v3266_v44  ;;  %v3287_v34 = vld [vmem:[#allocation2 + $0x20] sm:$0xff]  ;;  %v3342_v42 = vadd.f32 %v3334_v31, %v3322_v59  ;;  %v3371_v3 = vmul.f32 %v7106_v10, %v3286_v37 }
 0x518   :  { %v3352_v6 = vmul.f32 %v6904_v13, %v3306_v43  ;;  %v3307_v52 = vld [vmem:[#allocation2 + $0x22] sm:$0xff]  ;;  %3282 = vst [vmem:[#allocation2 + $0x61] sm:$0xff] %v7186_v25  ;;  %v3321_v39 = vmul.f32 %v6886_v60, %v3287_v34  ;;  %v3372_v14 = vmul.f32 %v7106_v10, %v3287_v34  ;;  %v3374_v26 = vmul.f32 %v7106_v10, %v3289_v47 }
 0x519   :  { %v3340_v12 = vadd.f32 %v3332_v50, %v3320_v56  ;;  %v3353_v15 = vmul.f32 %v6904_v13, %v3307_v52  ;;  %v3362_v28 = vadd.f32 %v3354_v38, %v3342_v42  ;;  %v3379_v31 = vadd.f32 %v3371_v3, %v6911_v11  ;;  %v3309_v37 = vld [vmem:[#allocation2 + $0x42] sm:$0xff] }
 0x51a   :  { %v3341_v48 = vadd.f32 %v3333_v21, %v3321_v39  ;;  %v3411_v17 = vmul.f32 %v7110_v45, %v3306_v43  ;;  %v3412_v44 = vmul.f32 %v7110_v45, %v3307_v52  ;;  %v3413_v56 = vmul.f32 %v7110_v45, %v3308_v29 }
 0x51b   :  { %v3360_v40 = vadd.f32 %v3352_v6, %v3340_v12  ;;  %v3382_v59 = vadd.f32 %v3374_v26, %v3362_v28  ;;  %v3399_v50 = vadd.f32 %v7134_v1, %v3379_v31  ;;  %v3431_v42 = vmul.f32 %v7115_v20, %v3287_v34 }
 0x51c   :  { %v3361_v38 = vadd.f32 %v3353_v15, %v3341_v48  ;;  %v3432_v62 = vmul.f32 %v7115_v20, %v3288_v53  ;;  %v3471_v11 = vmul.f32 %v7178_v63, %v3307_v52  ;;  %v3472_v6 = vmul.f32 %v7178_v63, %v3308_v29 }
 0x51d   :  { %v3380_v23 = vadd.f32 %v3372_v14, %v3360_v40  ;;  %v3419_v21 = vadd.f32 %v3411_v17, %v3399_v50  ;;  %v3290_v43 = vld [vmem:[#allocation2 + $0x50] sm:$0xff]  ;;  %v3402_v3 = vadd.f32 %v3394_v35, %v3382_v59  ;;  %v3414_v39 = vmul.f32 %v7110_v45, %v3309_v37 }
 0x51e   :  { %v3381_v12 = vadd.f32 %v3373_v27, %v3361_v38  ;;  %v3310_v28 = vld [vmem:[#allocation2 + $0x52] sm:$0xff]  ;;  %v3434_v26 = vmul.f32 %v7115_v20, %v3290_v43  ;;  %v3454_v34 = vmul.f32 %v7119_v55, %v7173_v57  ;;  %v3433_v52 = vmul.f32 %v7115_v20, %v3289_v47 }
 0x51f   :  { %v3400_v1 = vadd.f32 %v7150_v49, %v3380_v23  ;;  %v3439_v15 = vadd.f32 %v3431_v42, %v3419_v21  ;;  %v3422_v53 = vadd.f32 %v3414_v39, %v3402_v3  ;;  %v3473_v14 = vmul.f32 %v7178_v63, %v3309_v37  ;;  %v3291_v29 = vld [vmem:[#allocation2 + $0x60] sm:$0xff]  ;;  %v7217_v17 = vld [vmem:[#allocation2 + $0x70] sm:$0xff] }
 0x520   :  { %v3401_v35 = vadd.f32 %v7140_v18, %v3381_v12  ;;  %v3323_v27 = vmul.f32 %v6886_v60, %v3289_v47  ;;  %v3324_v23 = vmul.f32 %v6886_v60, %v3290_v43  ;;  %v3474_v40 = vmul.f32 %v7178_v63, %v3310_v28  ;;  %v3311_v21 = vld [vmem:[#allocation2 + $0x62] sm:$0xff] }
 0x521   :  { %v3420_v31 = vadd.f32 %v3412_v44, %v3400_v1  ;;  %v3459_v49 = vadd.f32 %v7155_v51, %v3439_v15  ;;  %v3442_v48 = vadd.f32 %v3434_v26, %v3422_v53  ;;  %v3325_v59 = vmul.f32 %v6886_v60, %v3291_v29  ;;  %v7228_v1 = vld [vmem:[#allocation2 + $0x72] sm:$0xff] }
 0x522   :  { %v3421_v50 = vadd.f32 %v3413_v56, %v3401_v35  ;;  %v3336_v38 = vmul.f32 %v6889_v22, %v7173_v57  ;;  %v3337_v18 = vmul.f32 %v6889_v22, %v7186_v25  ;;  %v3338_v51 = vmul.f32 %v6889_v22, %v7167_v36 }
 0x523   :  { %v3440_v42 = vadd.f32 %v3432_v62, %v3420_v31  ;;  %v3479_v47 = vadd.f32 %v3471_v11, %v3459_v49  ;;  %v3462_v44 = vadd.f32 %v3454_v34, %v3442_v48  ;;  %v3343_v3 = vadd.f32 %v7165_v16, %v3323_v27 }
 0x524   :  { %v3441_v12 = vadd.f32 %v3433_v52, %v3421_v50  ;;  %v3326_v62 = vmul.f32 %v6886_v60, %v7217_v17  ;;  %v3344_v56 = vadd.f32 %v3336_v38, %v3324_v23  ;;  %v3355_v11 = vmul.f32 %v6904_v13, %v3309_v37 }
 0x525   :  { %v3460_v39 = vadd.f32 %v7143_v2, %v3440_v42  ;;  %vm3487_vm13 = vcmp.gt.f32.partialorder %v3479_v47, 0.0  ;;  %v3495_v26 = vmul.f32 0.1, %v3479_v47  ;;  %v3482_v15 = vadd.f32 %v3474_v40, %v3462_v44 }
 0x526   :  { %v3461_v53 = vadd.f32 %v7161_v32, %v3441_v12  ;;  %v3356_v22 = vmul.f32 %v6904_v13, %v3310_v28  ;;  %v3357_v16 = vmul.f32 %v6904_v13, %v3311_v21  ;;  %v3358_v52 = vmul.f32 %v6904_v13, %v7228_v1 }
 0x527   :  { %v3480_v34 = vadd.f32 %v3472_v6, %v3460_v39  ;;  %vm3490_vm14 = vcmp.gt.f32.partialorder %v3482_v15, 0.0  ;;  %v3498_v2 = vmul.f32 0.1, %v3482_v15  ;;  %v3363_v35 = vadd.f32 %v3355_v11, %v3343_v3  ;;  %v6061_v3 = vld [vmem:[#allocation15 + $0x80] sm:$0xff]   ;;  %v6063_v11 = vld [vmem:[#allocation15 + $0xc8] sm:$0xff]  }
 0x528   :  { %v3481_v31 = vadd.f32 %v3473_v14, %v3461_v53  ;;  %v3364_v27 = vadd.f32 %v3356_v22, %v3344_v56  ;;  %v3503_v23 = vsel %vm3487_vm13, %v3479_v47, %v3495_v26  ;;  %v3375_v37 = vmul.f32 %v7106_v10, %v3290_v43  ;;  %v3293_v53 = vld [vmem:[#allocation2 + $0x80] sm:$0xff] }
 0x529   :  { %vm3488_vm15 = vcmp.gt.f32.partialorder %v3480_v34, 0.0  ;;  %v3496_v60 = vmul.f32 0.1, %v3480_v34  ;;  %v3376_v32 = vmul.f32 %v7106_v10, %v3291_v29  ;;  %v3395_v6 = vmul.f32 %v7102_v7, %v7173_v57 }
 0x52a   :  { %vm3489_vm0 = vcmp.gt.f32.partialorder %v3481_v31, 0.0  ;;  %v3497_v48 = vmul.f32 0.1, %v3481_v31  ;;  %v3396_v13 = vmul.f32 %v7102_v7, %v7186_v25  ;;  %v3506_v50 = vsel %vm3490_vm14, %v3482_v15, %v3498_v2 }
 0x52b   :  { %v3504_v49 = vsel %vm3488_vm15, %v3480_v34, %v3496_v60  ;;  %v3383_v14 = vadd.f32 %v3375_v37, %v3363_v35  ;;  %v3384_v42 = vadd.f32 %v3376_v32, %v3364_v27  ;;  %v3415_v47 = vmul.f32 %v7110_v45, %v3310_v28  ;;  %v3313_v60 = vld [vmem:[#allocation2 + $0x82] sm:$0xff] }
 0x52c   :  { %v3511_v40 = vpack.c.bf16 %v3504_v49, %v3503_v23  ;;  %v3505_v38 = vsel %vm3489_vm0, %v3481_v31, %v3497_v48  ;;  %v3416_v43 = vmul.f32 %v7110_v45, %v3311_v21  ;;  %v3435_v44 = vmul.f32 %v7115_v20, %v3291_v29  ;;  %v6067_v48 = vld [vmem:[#allocation15 + $0xd0] sm:$0xff]  }
 0x52d   :  { %v3512_v39 = vpack.c.bf16 %v3506_v50, %v3505_v38  ;;  %v3403_v12 = vadd.f32 %v3395_v6, %v3383_v14  ;;  %v3404_v56 = vadd.f32 %v3396_v13, %v3384_v42  ;;  %v3455_v26 = vmul.f32 %v7119_v55, %v7186_v25 }
 0x52e   :  { %5645 = vmatprep.mubr.bf16.mxu1 %v3511_v40  ;;  %v3436_v15 = vmul.f32 %v7115_v20, %v7217_v17  ;;  %v3456_v34 = vmul.f32 %v7119_v55, %v7167_v36  ;;  %v3475_v28 = vmul.f32 %v7178_v63, %v3311_v21  ;;  %v3345_v22 = vadd.f32 %v3337_v18, %v3325_v59  ;;  %v6065_v59 = vld [vmem:[#allocation15 + $0x88] sm:$0xff]  }
 0x52f   :  { %5646 = vmatmul.mubr.bf16.vlgmr.msra.gmra.mrb[64].mxu1 %v3512_v39  ;;  %v3423_v29 = vadd.f32 %v3415_v47, %v3403_v12  ;;  %v3424_v2 = vadd.f32 %v3416_v43, %v3404_v56  ;;  %v3476_v35 = vmul.f32 %v7178_v63, %v7228_v1  ;;  %v3346_v31 = vadd.f32 %v3338_v51, %v3326_v62 }
 0x530   :  { %v3365_v27 = vadd.f32 %v3357_v16, %v3345_v22  ;;  %v3377_v23 = vmul.f32 %v7106_v10, %v7217_v17  ;;  %v3397_v37 = vmul.f32 %v7102_v7, %v7167_v36  ;;  %v3398_v21 = vmul.f32 %v7102_v7, %v7181_v5  ;;  %5375 = vmatpush3.bf16.msra.mxu1 %v6061_v3 }
 0x531   :  { %v3443_v18 = vadd.f32 %v3435_v44, %v3423_v29  ;;  %v3444_v32 = vadd.f32 %v3436_v15, %v3424_v2  ;;  %v3366_v6 = vadd.f32 %v3358_v52, %v3346_v31  ;;  %v3378_v49 = vmul.f32 %v7106_v10, %v3293_v53  ;;  %5376 = vmatprep.subr.bf16.mxu1 %v6063_v11  ;;  %v6069_v52 = vld [vmem:[#allocation15 + $0x90] sm:$0xff]  }
 0x532   :  { %v3385_v51 = vadd.f32 %v3377_v23, %v3365_v27  ;;  %v3417_v62 = vmul.f32 %v7110_v45, %v7228_v1  ;;  %v3418_v17 = vmul.f32 %v7110_v45, %v3313_v60  ;;  %v3457_v16 = vmul.f32 %v7119_v55, %v7181_v5  ;;  %v6072_v23 = vld [vmem:[#allocation15 + $0x60] sm:$0xff]  }
 0x533   :  { %v3463_v13 = vadd.f32 %v3455_v26, %v3443_v18  ;;  %v3464_v7 = vadd.f32 %v3456_v34, %v3444_v32  ;;  %v3386_v40 = vadd.f32 %v3378_v49, %v3366_v6  ;;  %v3437_v50 = vmul.f32 %v7115_v20, %v3293_v53  ;;  %v6079_v18 = vld [vmem:[#allocation15 + $0xe8] sm:$0xff]   ;;  %v6080_v32 = vld [vmem:[#allocation15 + $0x70] sm:$0xff]  }
 0x534   :  { %v3405_v14 = vadd.f32 %v3397_v37, %v3385_v51  ;;  %5377 = vmatpush3.bf16.msra.mxu1 %v6065_v59  ;;  %v7273_v10 = vmul.f32 %v7122_v0, %v7124_v46  ;;  %v7277_v1 = vmul.f32 %v7122_v0, %v7128_v61  ;;  %v7281_v45 = vmul.f32 %v7122_v0, %v7137_v19  ;;  %v6074_v37 = vld [vmem:[#allocation15 + $0x20] sm:$0xff]   ;;  %v6076_v59 = vld [vmem:[#allocation15 + $0x68] sm:$0xff]   ;;  %v6082_v49 = vld [vmem:[#allocation15 + $0x30] sm:$0xff]  }
 0x535   :  { %v3483_v42 = vadd.f32 %v3475_v28, %v3463_v13  ;;  %v3484_v38 = vadd.f32 %v3476_v35, %v3464_v7  ;;  %v3406_v47 = vadd.f32 %v3398_v21, %v3386_v40  ;;  %5378 = vmatprep.subr.bf16.mxu1 %v6067_v48  ;;  %v7285_v43 = vmul.f32 %v7122_v0, %v7167_v36  ;;  %v7299_v36 = vld [vmem:[#allocation2] sm:$0xff]  ;;  %v6075_v21 = vld [vmem:[#allocation15 + $0xe0] sm:$0xff]   ;;  %v6081_v6 = vld [vmem:[#allocation15 + $0xa8] sm:$0xff]  }
 0x536   :  { %v3425_v44 = vadd.f32 %v3417_v62, %v3405_v14  ;;  %v7289_v46 = vmul.f32 %v7122_v0, %v7173_v57  ;;  %v7293_v61 = vmul.f32 %v7122_v0, %v7181_v5  ;;  %v7297_v19 = vmul.f32 %v7122_v0, %v7186_v25  ;;  %v6083_v48 = vld [vmem:[#allocation15 + $0xf0] sm:$0xff]   ;;  %v6084_v51 = vld [vmem:[#allocation15 + $0x78] sm:$0xff]   ;;  %v6089_v13 = vld [vmem:[#allocation15 + $0x140] sm:$0xff]  }
 0x537   :  { %vm3491_vm1 = vcmp.gt.f32.partialorder %v3483_v42, 0.0  ;;  %vm3492_vm2 = vcmp.gt.f32.partialorder %v3484_v38, 0.0  ;;  %v3499_v3 = vmul.f32 0.1, %v3483_v42  ;;  %v3500_v39 = vmul.f32 0.1, %v3484_v38 }
 0x538   :  { %v3426_v12 = vadd.f32 %v3418_v17, %v3406_v47  ;;  %v3438_v56 = vmul.f32 %v7299_v36, %v7115_v20  ;;  %v3445_v57 = vadd.f32 %v3437_v50, %v3425_v44  ;;  %5379 = vmatpush3.bf16.msra.mxu1 %v6069_v52  ;;  %v3458_v5 = vmul.f32 %v7119_v55, %v7044_v9  ;;  %v6070_v9 = vld [vmem:[#allocation15 + $0x18] sm:$0xff]   ;;  %v6085_v62 = vld [vmem:[#allocation15 + $0xb0] sm:$0xff]   ;;  %v6091_v40 = vld [vmem:[#allocation15 + $0x1c0] sm:$0xff]  }
 0x539   :  { %v3507_v26 = vsel %vm3491_vm1, %v3483_v42, %v3499_v3  ;;  %v3508_v11 = vsel %vm3492_vm2, %v3484_v38, %v3500_v39  ;;  %v3477_v34 = vmul.f32 %v7178_v63, %v3313_v60  ;;  %v3478_v53 = vmul.f32 %v7178_v63, %v7056_v41  ;;  %5341 = vmatpush3.bf16.msra.mxu0 %v6070_v9  ;;  %v6071_v55 = vld [vmem:[#allocation15 + $0xd8] sm:$0xff]   ;;  %v6077_v41 = vld [vmem:[#allocation15 + $0xa0] sm:$0xff]   ;;  %v6078_v63 = vld [vmem:[#allocation15 + $0x28] sm:$0xff]  }
 0x53a   :  { %v3513_v15 = vpack.c.bf16 %v3508_v11, %v3507_v26  ;;  %v3446_v0 = vadd.f32 %v3438_v56, %v3426_v12  ;;  %v3465_v25 = vadd.f32 %v3457_v16, %v3445_v57  ;;  %v6073_v60 = vld [vmem:[#allocation15 + $0x98] sm:$0xff]   ;;  %5380 = vmatprep.subr.bf16.mxu1 %v6071_v55  ;;  %5342 = vmatprep.subr.bf16.mxu0 %v6072_v23  ;;  %v6093_v23 = vld [vmem:[#allocation15 + $0x180] sm:$0xff]  }
 0x53b   :  { %v6086_v17 = vld [vmem:[#allocation15 + $0x38] sm:$0xff]  }
 0x53c   :  { %5649 = vmatprep.mubr.bf16.mxu1 %v3513_v15  ;;  %v3466_v28 = vadd.f32 %v3458_v5, %v3446_v0  ;;  %v3485_v22 = vadd.f32 %v3477_v34, %v3465_v25  ;;  %5381 = vmatpush3.bf16.msra.mxu1 %v6073_v60  ;;  %v6087_v16 = vld [vmem:[#allocation15 + $0xf8] sm:$0xff]  }
 0x53d   :  { %5343 = vmatpush3.bf16.msra.mxu0 %v6074_v37  ;;  %5382 = vmatprep.subr.bf16.mxu1 %v6075_v21  ;;  %v6088_v7 = vld [vmem:[#allocation15 + $0xb8] sm:$0xff]  }
 0x53e   :  { %v3486_v29 = vadd.f32 %v3478_v53, %v3466_v28  ;;  %vm3493_vm3 = vcmp.gt.f32.partialorder %v3485_v22, 0.0  ;;  %v3501_v20 = vmul.f32 0.1, %v3485_v22  ;;  %5344 = vmatprep.subr.bf16.mxu0 %v6076_v59  ;;  %v7311_v50 = vld [vmem:[%s7460_s10] ss:$0 sm:$0xff]  ;;  %v6148_v34 = vld [vmem:[#allocation2 + $0x1] sm:$0xff] }
 0x53f   :  { %v6149_v60 = vld [vmem:[#allocation2 + $0x2] sm:$0xff]  ;;  %v6094_v59 = vld [vmem:[#allocation15 + $0x108] sm:$0xff]  }
 0x540   :  { %vm3494_vm4 = vcmp.gt.f32.partialorder %v3486_v29, 0.0  ;;  %v3502_v2 = vmul.f32 0.1, %v3486_v29  ;;  %v3509_v35 = vsel %vm3493_vm3, %v3485_v22, %v3501_v20  ;;  %5383 = vmatpush3.bf16.msra.mxu1 %v6077_v41  ;;  %v6090_v20 = vld [vmem:[#allocation15 + $0x100] sm:$0xff]   ;;  %v6095_v41 = vld [vmem:[#allocation15 + $0x1c8] sm:$0xff]  }
 0x541   :  { %5345 = vmatpush3.bf16.msra.mxu0 %v6078_v63  ;;  %5384 = vmatprep.subr.bf16.mxu1 %v6079_v18  ;;  %v6096_v18 = vld [vmem:[#allocation15 + $0x150] sm:$0xff]  }
 0x542   :  { %v3510_v31 = vsel %vm3494_vm4, %v3486_v29, %v3502_v2  ;;  %5346 = vmatprep.subr.bf16.mxu0 %v6080_v32 }
 0x543   :  { %v3514_v27 = vpack.c.bf16 %v3510_v31, %v3509_v35  ;;  %v6092_v31 = vld [vmem:[#allocation15 + $0x148] sm:$0xff]  }
 0x544   :  { %5385 = vmatpush3.bf16.msra.mxu1 %v6081_v6 }
 0x545   :  { %5650 = vmatmul.mubr.bf16.gmra.mrb[68].mxu1 %v3514_v27  ;;  %5347 = vmatpush3.bf16.msra.mxu0 %v6082_v49 }
 0x546   :  { %5386 = vmatprep.subr.bf16.mxu1 %v6083_v48  ;;  %5348 = vmatprep.subr.bf16.mxu0 %v6084_v51  ;;  %v6097_v48 = vld [vmem:[#allocation15 + $0x188] sm:$0xff]  }
 0x548   :  { %5387 = vmatpush3.bf16.msra.mxu1 %v6085_v62 }
 0x549   :  { %5349 = vmatpush3.bf16.msra.mxu0 %v6086_v17  ;;  %5388 = vmatprep.subr.bf16.mxu1 %v6087_v16  ;;  %v6098_v17 = vld [vmem:[#allocation15 + $0x110] sm:$0xff]  }
 0x54a   :  { %5414 = vmatprep.subr.bf16.mxu0 %v6089_v13  ;;  %v6099_v16 = vld [vmem:[#allocation15 + $0x1d0] sm:$0xff]  }
 0x54c   :  { %5389 = vmatpush3.bf16.msra.mxu1 %v6088_v7 }
 0x54d   :  { %5454 = vmatprep.subr.bf16.mxu1 %v6091_v40 }
 0x602   :  { %v5647_v14 = vpop.f32.mrb[64].mxu1 }
 0x603   :  { %v3653_v52 = vadd.f32 %v5647_v14, %v7311_v50  ;;  %v3613_v42 = vpop.f32.mrb[65].mxu1 }
 0x604   :  { %v3651_v38 = vadd.f32 %v7311_v50, %v3613_v42  ;;  %v5648_v47 = vpop.f32.mrb[66].mxu1  ;;  %v6100_v42 = vld [vmem:[#allocation15 + $0x158] sm:$0xff]  }
 0x605   :  { %v3673_v44 = vadd.f32 %v7170_v8, %v3653_v52  ;;  %v3654_v3 = vadd.f32 %v5648_v47, %v7311_v50  ;;  %v3616_v39 = vpop.f32.mrb[67].mxu1 }
 0x606   :  { %v3671_v12 = vadd.f32 %v7273_v10, %v3651_v38  ;;  %v3652_v56 = vadd.f32 %v7311_v50, %v3616_v39  ;;  %v6101_v39 = vld [vmem:[#allocation15 + $0x190] sm:$0xff]  }
 0x607   :  { %vm3681_vm5 = vcmp.gt.f32.partialorder %v3673_v44, 0.0  ;;  %v3689_v57 = vmul.f32 0.1, %v3673_v44  ;;  %v3674_v26 = vadd.f32 %v7277_v1, %v3654_v3 }
 0x608   :  { %vm3679_vm6 = vcmp.gt.f32.partialorder %v3671_v12, 0.0  ;;  %v3687_v11 = vmul.f32 0.1, %v3671_v12  ;;  %v3672_v5 = vadd.f32 %v7281_v45, %v3652_v56 }
 0x609   :  { %v7321_v15 = vsel %vm3681_vm5, %v3673_v44, %v3689_v57  ;;  %vm3682_vm7 = vcmp.gt.f32.partialorder %v3674_v26, 0.0  ;;  %v3690_v0 = vmul.f32 0.1, %v3674_v26  ;;  %v6103_v57 = vld [vmem:[#allocation15 + $0x1d8] sm:$0xff]  }
 0x60a   :  { %3705 = vst [vmem:[#allocation2 + $0x31] sm:$0xff] %v7321_v15  ;;  %v7324_v8 = vsel %vm3679_vm6, %v3671_v12, %v3687_v11  ;;  %vm3680_vm8 = vcmp.gt.f32.partialorder %v3672_v5, 0.0  ;;  %v3688_v10 = vmul.f32 0.1, %v3672_v5  ;;  %v6104_v11 = vld [vmem:[#allocation15 + $0x160] sm:$0xff]  }
 0x60b   :  { %3703 = vst [vmem:[#allocation2 + $0x11] sm:$0xff] %v7324_v8  ;;  %v7327_v25 = vsel %vm3682_vm7, %v3674_v26, %v3690_v0  ;;  %v3749_v1 = vpack.c.bf16 %v7324_v8, %v6148_v34  ;;  %v6105_v34 = vld [vmem:[#allocation15 + $0x198] sm:$0xff]  }
 0x60c   :  { %3706 = vst [vmem:[#allocation2 + $0x41] sm:$0xff] %v7327_v25  ;;  %v7331_v45 = vsel %vm3680_vm8, %v3672_v5, %v3688_v10  ;;  %v3774_v28 = vpack.c.bf16 %v7327_v25, %v7321_v15 }
 0x60d   :  { %3704 = vst [vmem:[#allocation2 + $0x21] sm:$0xff] %v7331_v45  ;;  %4448 = vmatprep.mubr.bf16.mxu0 %v3749_v1  ;;  %v7338_v53 = vpack.c.bf16 %v7321_v15, %v7331_v45  ;;  %v3773_v22 = vpack.c.bf16 %v7331_v45, %v7324_v8  ;;  %v6125_v8 = vld [vmem:[#allocation15 + $0x220] sm:$0xff]  }
 0x611   :  { %v3714_v21 = vld [vmem:[#allocation2 + $0x30] sm:$0xff] }
 0x612   :  { %v3712_v29 = vld [vmem:[#allocation2 + $0x10] sm:$0xff] }
 0x613   :  { %v3741_v2 = vpack.c.bf16 %v3712_v29, %v7299_v36  ;;  %v7343_v35 = vld [vmem:[#allocation2 + $0x12] sm:$0xff]  ;;  %v7345_v9 = vld [vmem:[#allocation2 + $0x40] sm:$0xff] }
 0x614   :  { %v3713_v27 = vld [vmem:[#allocation2 + $0x20] sm:$0xff]  ;;  %v3757_v37 = vpack.c.bf16 %v7343_v35, %v6149_v60  ;;  %v3766_v63 = vpack.c.bf16 %v7345_v9, %v3714_v21  ;;  %v6110_v60 = vld [vmem:[#allocation15 + $0x128] sm:$0xff]  }
 0x615   :  { %4449 = vmatmul.mubr.bf16.vlgmr.msra.gmra.mrb[64].mxu0 %v3741_v2  ;;  %v3765_v55 = vpack.c.bf16 %v3713_v27, %v3712_v29  ;;  %v7354_v14 = vpack.c.bf16 %v3714_v21, %v3713_v27  ;;  %v7356_v52 = vld [vmem:[#allocation2 + $0x22] sm:$0xff]  ;;  %v6108_v27 = vld [vmem:[#allocation15 + $0x168] sm:$0xff]   ;;  %v6112_v21 = vld [vmem:[#allocation15 + $0x170] sm:$0xff]  }
 0x616   :  { %5415 = vmatpush3.bf16.msra.mxu0 %v6090_v20  ;;  %4456 = vmatprep.mubr.bf16.mxu0 %v7338_v53  ;;  %v6106_v29 = vld [vmem:[#allocation15 + $0x120] sm:$0xff]  }
 0x617   :  { %4513 = vmatprep.mubr.bf16.mxu1 %v3765_v55  ;;  %5416 = vmatprep.subr.bf16.mxu0 %v6092_v31  ;;  %v6107_v20 = vld [vmem:[#allocation15 + $0x1e0] sm:$0xff]  }
 0x618   :  { %v5651_v32 = vpop.f32.mrb[68].mxu1  ;;  %4514 = vmatmul.mubr.bf16.vlgmr.msra.gmra.mrb[72].mxu1 %v3757_v37  ;;  %v6111_v37 = vld [vmem:[#allocation15 + $0x1e8] sm:$0xff]  }
 0x619   :  { %v3657_v6 = vadd.f32 %v5651_v32, %v7311_v50  ;;  %v3629_v49 = vpop.f32.mrb[69].mxu1  ;;  %4521 = vmatprep.mubr.bf16.mxu1 %v3766_v63  ;;  %5455 = vmatpush3.bf16.msra.mxu1 %v6093_v23  ;;  %v6109_v23 = vld [vmem:[#allocation15 + $0x1a0] sm:$0xff]  }
 0x61a   :  { %v3655_v51 = vadd.f32 %v7311_v50, %v3629_v49  ;;  %v5652_v62 = vpop.f32.mrb[70].mxu1  ;;  %5417 = vmatpush3.bf16.msra.mxu0 %v6094_v59  ;;  %5456 = vmatprep.subr.bf16.mxu1 %v6095_v41  ;;  %v6114_v49 = vld [vmem:[#allocation15 + $0x130] sm:$0xff]  }
 0x61b   :  { %v3677_v13 = vadd.f32 %v7285_v43, %v3657_v6  ;;  %v3658_v7 = vadd.f32 %v5652_v62, %v7311_v50  ;;  %v3632_v40 = vpop.f32.mrb[71].mxu1  ;;  %5418 = vmatprep.subr.bf16.mxu0 %v6096_v18  ;;  %v7362_v43 = vld [vmem:[#allocation2 + $0x32] sm:$0xff] }
 0x61c   :  { %v3675_v38 = vadd.f32 %v7289_v46, %v3655_v51  ;;  %v3656_v47 = vadd.f32 %v7311_v50, %v3632_v40  ;;  %v7367_v46 = vpack.c.bf16 %v7362_v43, %v7356_v52  ;;  %v6102_v50 = vld [vmem:[#allocation15 + $0x118] sm:$0xff]   ;;  %v6113_v18 = vld [vmem:[#allocation15 + $0x1a8] sm:$0xff]   ;;  %v6115_v62 = vld [vmem:[#allocation15 + $0x1f0] sm:$0xff]  }
 0x61d   :  { %vm3685_vm9 = vcmp.gt.f32.partialorder %v3677_v13, 0.0  ;;  %v3693_v44 = vmul.f32 0.1, %v3677_v13  ;;  %v3678_v3 = vadd.f32 %v7293_v61, %v3658_v7  ;;  %5457 = vmatpush3.bf16.msra.mxu1 %v6097_v48  ;;  %4457 = vmatmul.mubr.bf16.gmra.mrb[68].mxu0 %v7354_v14  ;;  %v3735_v51 = vld [vmem:[#allocation2 + $0x42] sm:$0xff]  ;;  %v6117_v7 = vld [vmem:[#allocation15 + $0x1b0] sm:$0xff]  }
 0x61e   :  { %vm3683_vm10 = vcmp.gt.f32.partialorder %v3675_v38, 0.0  ;;  %v3691_v12 = vmul.f32 0.1, %v3675_v38  ;;  %v3676_v56 = vadd.f32 %v7297_v19, %v3656_v47  ;;  %5419 = vmatpush3.bf16.msra.mxu0 %v6098_v17  ;;  %5458 = vmatprep.subr.bf16.mxu1 %v6099_v16  ;;  %v6118_v40 = vld [vmem:[#allocation15 + $0x138] sm:$0xff]  }
 0x61f   :  { %v7369_v26 = vsel %vm3685_vm9, %v3677_v13, %v3693_v44  ;;  %vm3686_vm11 = vcmp.gt.f32.partialorder %v3678_v3, 0.0  ;;  %v3694_v61 = vmul.f32 0.1, %v3678_v3  ;;  %5420 = vmatprep.subr.bf16.mxu0 %v6100_v42  ;;  %v6119_v42 = vld [vmem:[#allocation15 + $0x1f8] sm:$0xff]  }
 0x620   :  { %3709 = vst [vmem:[#allocation2 + $0x71] sm:$0xff] %v7369_v26  ;;  %v7372_v5 = vsel %vm3683_vm10, %v3675_v38, %v3691_v12  ;;  %vm3684_vm12 = vcmp.gt.f32.partialorder %v3676_v56, 0.0  ;;  %v3692_v19 = vmul.f32 0.1, %v3676_v56  ;;  %4522 = vmatmul.mubr.bf16.gmra.mrb[76].mxu1 %v7367_v46  ;;  %v6121_v38 = vld [vmem:[#allocation15 + $0x200] sm:$0xff]  }
 0x621   :  { %3707 = vst [vmem:[#allocation2 + $0x51] sm:$0xff] %v7372_v5  ;;  %v7376_v0 = vsel %vm3686_vm11, %v3678_v3, %v3694_v61  ;;  %v7380_v10 = vpack.c.bf16 %v7372_v5, %v7327_v25  ;;  %5459 = vmatpush3.bf16.msra.mxu1 %v6101_v39  ;;  %v6120_v3 = vld [vmem:[#allocation15 + $0x1b8] sm:$0xff]   ;;  %v3781_v39 = vpack.c.bf16 %v7356_v52, %v7343_v35  ;;  %v6123_v35 = vld [vmem:[#allocation15 + $0x210] sm:$0xff]  }
 0x622   :  { %3710 = vst [vmem:[#allocation2 + $0x81] sm:$0xff] %v7376_v0  ;;  %v7383_v1 = vsel %vm3684_vm12, %v3676_v56, %v3692_v19  ;;  %5421 = vmatpush3.bf16.msra.mxu0 %v6102_v50  ;;  %5460 = vmatprep.subr.bf16.mxu1 %v6103_v57  ;;  %v3776_v2 = vpack.c.bf16 %v7376_v0, %v7369_v26  ;;  %v6122_v50 = vld [vmem:[#allocation15 + $0x208] sm:$0xff]   ;;  %v6124_v52 = vld [vmem:[#allocation15 + $0x218] sm:$0xff]   ;;  %v6127_v25 = vld [vmem:[#allocation15 + $0x230] sm:$0xff]  }
 0x623   :  { %3708 = vst [vmem:[#allocation2 + $0x61] sm:$0xff] %v7383_v1  ;;  %4464 = vmatprep.mubr.bf16.mxu0 %v7380_v10  ;;  %5422 = vmatprep.subr.bf16.mxu0 %v6104_v11  ;;  %v7391_v31 = vpack.c.bf16 %v7369_v26, %v7383_v1  ;;  %v3775_v55 = vpack.c.bf16 %v7383_v1, %v7372_v5  ;;  %v3740_v11 = vld [vmem:[#allocation2 + $0x92] sm:$0xff] }
 0x624   :  { %v3782_v57 = vpack.c.bf16 %v3735_v51, %v7362_v43 }
 0x625   :  { %5461 = vmatpush3.bf16.msra.mxu1 %v6105_v34 }
 0x626   :  { %5423 = vmatpush3.bf16.msra.mxu0 %v6106_v29  ;;  %5462 = vmatprep.subr.bf16.mxu1 %v6107_v20 }
 0x627   :  { %5424 = vmatprep.subr.bf16.mxu0 %v6108_v27  ;;  %v3718_v16 = vld [vmem:[#allocation2 + $0x70] sm:$0xff] }
 0x628   :  { %v3716_v59 = vld [vmem:[#allocation2 + $0x50] sm:$0xff] }
 0x629   :  { %v3743_v41 = vpack.c.bf16 %v3716_v59, %v7345_v9  ;;  %v3736_v63 = vld [vmem:[#allocation2 + $0x52] sm:$0xff]  ;;  %5463 = vmatpush3.bf16.msra.mxu1 %v6109_v23  ;;  %v7396_v6 = vld [vmem:[#allocation2 + $0x80] sm:$0xff] }
 0x62a   :  { %v3717_v32 = vld [vmem:[#allocation2 + $0x60] sm:$0xff]  ;;  %5425 = vmatpush3.bf16.msra.mxu0 %v6110_v60  ;;  %5464 = vmatprep.subr.bf16.mxu1 %v6111_v37  ;;  %v7399_v17 = vpack.c.bf16 %v3736_v63, %v3735_v51  ;;  %v3768_v13 = vpack.c.bf16 %v7396_v6, %v3718_v16  ;;  %v3738_v12 = vld [vmem:[#allocation2 + $0x72] sm:$0xff]  ;;  %v3789_v43 = vpack.c.bf16 %v7299_v36, %v7396_v6 }
 0x62b   :  { %v3767_v48 = vpack.c.bf16 %v3717_v32, %v3716_v59  ;;  %4465 = vmatmul.mubr.bf16.gmra.mrb[72].mxu0 %v3743_v41  ;;  %5426 = vmatprep.subr.bf16.mxu0 %v6112_v21  ;;  %v6116_v9 = vld [vmem:[#allocation15 + $0x178] sm:$0xff]   ;;  %v3744_v47 = vpack.c.bf16 %v3718_v16, %v3717_v32 }
 0x62c   :  { %4472 = vmatprep.mubr.bf16.mxu0 %v7391_v31  ;;  %v3737_v44 = vld [vmem:[#allocation2 + $0x62] sm:$0xff] }
 0x62d   :  { %4529 = vmatprep.mubr.bf16.mxu1 %v3767_v48  ;;  %5465 = vmatpush3.bf16.msra.mxu1 %v6113_v18  ;;  %v3760_v56 = vpack.c.bf16 %v3738_v12, %v3737_v44  ;;  %v3783_v61 = vpack.c.bf16 %v3737_v44, %v3736_v63  ;;  %v3739_v45 = vld [vmem:[#allocation2 + $0x82] sm:$0xff] }
 0x62e   :  { %4530 = vmatmul.mubr.bf16.gmra.mrb[80].mxu1 %v7399_v17  ;;  %5427 = vmatpush3.bf16.msra.mxu0 %v6114_v49  ;;  %v3799_v5 = vpack.c.bf16 %v3740_v11, %v3739_v45 }
 0x62f   :  { %4537 = vmatprep.mubr.bf16.mxu1 %v3768_v13  ;;  %5466 = vmatprep.subr.bf16.mxu1 %v6115_v62 }
 0x630   :  { %5428 = vmatprep.subr.bf16.mxu0 %v6116_v9 }
 0x631   :  { %5467 = vmatpush3.bf16.msra.mxu1 %v6117_v7 }
 0x632   :  { %5429 = vmatpush3.bf16.msra.mxu0 %v6118_v40  ;;  %5468 = vmatprep.subr.bf16.mxu1 %v6119_v42 }
 0x633   :  { %4473 = vmatmul.mubr.bf16.gmra.mrb[76].mxu0 %v3744_v47  ;;  %5653 = vmatprep.subr.bf16.mxu0 %v6121_v38 }
 0x634   :  { %4578 = vmatprep.mubr.bf16.mxu0 %v3781_v39 }
 0x635   :  { %5469 = vmatpush3.bf16.msra.mxu1 %v6120_v3 }
 0x636   :  { %4538 = vmatmul.mubr.bf16.gmra.mrb[84].mxu1 %v3760_v56 }
 0x637   :  { %4643 = vmatprep.mubr.bf16.mxu1 %v7338_v53  ;;  %v6126_v53 = vld [vmem:[#allocation15 + $0x228] sm:$0xff]  }
 0x63b   :  { %4579 = vmatmul.mubr.bf16.vlgmr.msra.gmra.mrb[80].mxu0 %v3773_v22  ;;  %v3784_v22 = vpack.c.bf16 %v3739_v45, %v3738_v12 }
 0x63c   :  { %5654 = vmatpush3.bf16.msra.mxu0 %v6121_v38  ;;  %4586 = vmatprep.mubr.bf16.mxu0 %v3782_v57 }
 0x63d   :  { %5655 = vmatprep.subr.bf16.mxu0 %v6122_v50 }
 0x63e   :  { %4644 = vmatmul.mubr.bf16.vlgmr.msra.gmra.mrb[88].mxu1 %v7354_v14  ;;  %v3730_v14 = vld [vmem:[#allocation2 + $0x91] sm:$0xff] }
 0x63f   :  { %4651 = vmatprep.mubr.bf16.mxu1 %v7380_v10  ;;  %v3794_v15 = vpack.c.bf16 %v3730_v14, %v7376_v0 }
 0x640   :  { %5656 = vmatpush3.bf16.msra.mxu0 %v6122_v50 }
 0x641   :  { %5657 = vmatprep.subr.bf16.mxu0 %v6123_v35 }
 0x643   :  { %4587 = vmatmul.mubr.bf16.gmra.mrb[84].mxu0 %v3774_v28  ;;  %v6128_v28 = vld [vmem:[#allocation15 + $0x238] sm:$0xff]  }
 0x644   :  { %5658 = vmatpush3.bf16.msra.mxu0 %v6123_v35  ;;  %4594 = vmatprep.mubr.bf16.mxu0 %v3783_v61 }
 0x645   :  { %5659 = vmatprep.subr.bf16.mxu0 %v6124_v52 }
 0x646   :  { %4652 = vmatmul.mubr.bf16.gmra.mrb[92].mxu1 %v3743_v41 }
 0x647   :  { %4659 = vmatprep.mubr.bf16.mxu1 %v7391_v31 }
 0x648   :  { %5660 = vmatpush3.bf16.msra.mxu0 %v6124_v52 }
 0x649   :  { %5661 = vmatprep.subr.bf16.mxu0 %v6125_v8 }
 0x64b   :  { %4595 = vmatmul.mubr.bf16.gmra.mrb[88].mxu0 %v3775_v55 }
 0x64c   :  { %5662 = vmatpush3.bf16.msra.mxu0 %v6125_v8  ;;  %4602 = vmatprep.mubr.bf16.mxu0 %v3784_v22 }
 0x64d   :  { %5663 = vmatprep.subr.bf16.mxu0 %v6126_v53 }
 0x64e   :  { %4660 = vmatmul.mubr.bf16.gmra.mrb[96].mxu1 %v3744_v47 }
 0x64f   :  { %4667 = vmatprep.mubr.bf16.mxu1 %v3794_v15 }
 0x650   :  { %5664 = vmatpush3.bf16.msra.mxu0 %v6126_v53 }
 0x651   :  { %5665 = vmatprep.subr.bf16.mxu0 %v6127_v25 }
 0x653   :  { %4603 = vmatmul.mubr.bf16.gmra.mrb[92].mxu0 %v3776_v2 }
 0x654   :  { %5666 = vmatpush3.bf16.msra.mxu0 %v6127_v25  ;;  %5669 = vmatprep.mubr.bf16.mxu0 %v7367_v46 }
 0x655   :  { %5667 = vmatprep.subr.bf16.mxu0 %v6128_v28 }
 0x656   :  { %4668 = vmatmul.mubr.bf16.gmra.mrb[100].mxu1 %v3789_v43 }
 0x658   :  { %5668 = vmatpush3.bf16.msra.mxu0 %v6128_v28 }
 0x65b   :  { %5670 = vmatmul.mubr.bf16.vlgmr.msra.gmra.mrb[96].mxu0 %v7399_v17 }
 0x65c   :  { %5673 = vmatprep.mubr.bf16.mxu0 %v3760_v56 }
 0x663   :  { %5674 = vmatmul.mubr.bf16.gmra.mrb[100].mxu0 %v3799_v5 }
 0x6e8   :  { %v5350_v19 = vpop.f32.mrb[64].mxu0 }
 0x6e9   :  { %v5351_v10 = vpop.f32.mrb[65].mxu0 }
 0x6ea   :  { %v5352_v34 = vadd.f32 %v5351_v10, %v5350_v19  ;;  %v5353_v26 = vpop.f32.mrb[66].mxu0 }
 0x6eb   :  { %v5390_v0 = vpop.f32.mrb[72].mxu1  ;;  %v5354_v1 = vpop.f32.mrb[67].mxu0 }
 0x6ec   :  { %v5355_v29 = vadd.f32 %v5354_v1, %v5353_v26  ;;  %v5391_v46 = vpop.f32.mrb[73].mxu1 }
 0x6ed   :  { %v5392_v20 = vadd.f32 %v5391_v46, %v5390_v0  ;;  %v5393_v2 = vpop.f32.mrb[74].mxu1 }
 0x6ee   :  { %v5394_v36 = vpop.f32.mrb[75].mxu1 }
 0x6ef   :  { %v4516_v31 = vadd.f32 %v5392_v20, %v5352_v34  ;;  %v5395_v27 = vadd.f32 %v5394_v36, %v5393_v2 }
 0x6f0   :  { %v5356_v55 = vpop.f32.mrb[68].mxu0 }
 0x6f1   :  { %v4519_v23 = vadd.f32 %v5395_v27, %v5355_v29  ;;  %v5357_v60 = vpop.f32.mrb[69].mxu0 }
 0x6f2   :  { %v5358_v37 = vadd.f32 %v5357_v60, %v5356_v55  ;;  %v5359_v21 = vpop.f32.mrb[70].mxu0 }
 0x6f3   :  { %v5396_v59 = vpop.f32.mrb[76].mxu1  ;;  %v5360_v41 = vpop.f32.mrb[71].mxu0 }
 0x6f4   :  { %v5361_v63 = vadd.f32 %v5360_v41, %v5359_v21  ;;  %v5397_v18 = vpop.f32.mrb[77].mxu1 }
 0x6f5   :  { %v5398_v32 = vadd.f32 %v5397_v18, %v5396_v59  ;;  %v5399_v6 = vpop.f32.mrb[78].mxu1 }
 0x6f6   :  { %v5400_v49 = vpop.f32.mrb[79].mxu1 }
 0x6f7   :  { %v4524_v48 = vadd.f32 %v5398_v32, %v5358_v37  ;;  %v5401_v51 = vadd.f32 %v5400_v49, %v5399_v6 }
 0x6f9   :  { %v4527_v62 = vadd.f32 %v5401_v51, %v5361_v63 }
 0x6fe   :  { %v5362_v17 = vpop.f32.mrb[72].mxu0 }
 0x6ff   :  { %v5363_v16 = vpop.f32.mrb[73].mxu0 }
 0x700   :  { %v5364_v9 = vadd.f32 %v5363_v16, %v5362_v17  ;;  %v5365_v13 = vpop.f32.mrb[74].mxu0 }
 0x701   :  { %v5402_v7 = vpop.f32.mrb[80].mxu1  ;;  %v5366_v40 = vpop.f32.mrb[75].mxu0 }
 0x702   :  { %v5367_v42 = vadd.f32 %v5366_v40, %v5365_v13  ;;  %v5403_v38 = vpop.f32.mrb[81].mxu1 }
 0x703   :  { %v5404_v47 = vadd.f32 %v5403_v38, %v5402_v7  ;;  %v5405_v44 = vpop.f32.mrb[82].mxu1 }
 0x704   :  { %v5406_v3 = vpop.f32.mrb[83].mxu1 }
 0x705   :  { %v4532_v39 = vadd.f32 %v5404_v47, %v5364_v9  ;;  %v5407_v12 = vadd.f32 %v5406_v3, %v5405_v44 }
 0x706   :  { %v5368_v56 = vpop.f32.mrb[76].mxu0 }
 0x707   :  { %v4535_v50 = vadd.f32 %v5407_v12, %v5367_v42  ;;  %v5369_v57 = vpop.f32.mrb[77].mxu0 }
 0x708   :  { %v5370_v35 = vadd.f32 %v5369_v57, %v5368_v56  ;;  %v5371_v52 = vpop.f32.mrb[78].mxu0 }
 0x709   :  { %v5408_v61 = vpop.f32.mrb[84].mxu1  ;;  %v5372_v8 = vpop.f32.mrb[79].mxu0 }
 0x70a   :  { %v5373_v45 = vadd.f32 %v5372_v8, %v5371_v52  ;;  %v5409_v53 = vpop.f32.mrb[85].mxu1 }
 0x70b   :  { %v5410_v22 = vadd.f32 %v5409_v53, %v5408_v61  ;;  %v5411_v14 = vpop.f32.mrb[86].mxu1 }
 0x70c   :  { %v5412_v15 = vpop.f32.mrb[87].mxu1 }
 0x70d   :  { %v4540_v25 = vadd.f32 %v5410_v22, %v5370_v35  ;;  %v5413_v28 = vadd.f32 %v5412_v15, %v5411_v14 }
 0x70e   :  { %v5430_v43 = vpop.f32.mrb[80].mxu0 }
 0x70f   :  { %v4543_v11 = vadd.f32 %v5413_v28, %v5373_v45  ;;  %v5431_v5 = vpop.f32.mrb[81].mxu0 }
 0x710   :  { %v5432_v19 = vadd.f32 %v5431_v5, %v5430_v43  ;;  %v5433_v10 = vpop.f32.mrb[82].mxu0 }
 0x711   :  { %v5470_v34 = vpop.f32.mrb[88].mxu1  ;;  %v5434_v26 = vpop.f32.mrb[83].mxu0 }
 0x712   :  { %v4581_v0 = vadd.f32 %v5432_v19, %v4516_v31  ;;  %v5435_v1 = vadd.f32 %v5434_v26, %v5433_v10  ;;  %v5471_v29 = vpop.f32.mrb[89].mxu1 }
 0x713   :  { %v5472_v46 = vadd.f32 %v5471_v29, %v5470_v34  ;;  %v5473_v20 = vpop.f32.mrb[90].mxu1  ;;  %v5102_v29 = vld [vmem:[%s7464_s14] ss:$0 sm:$0xff]  ;;  %s6353_s14 = smov [#allocation16]  }
 0x714   :  { %v4584_v2 = vadd.f32 %v5435_v1, %v4519_v23  ;;  %v5474_v36 = vpop.f32.mrb[91].mxu1  ;;  %s4777_s26 = sshll.u32 %s6353_s14, 4  ;;  %s4778_s26 = int_to_ptr.vmem [resolvable:$true] %s4777_s26 }
 0x715   :  { %v5475_v27 = vadd.f32 %v5474_v36, %v5473_v20  ;;  %v4646_v55 = vadd.f32 %v5472_v46, %v4581_v0  ;;  %s6304_s27 = scalar_lea.vmem %s4778_s26, 1024  ;;  %p6309_p1 = scmp.lt.s32.totalorder %s4778_s26, %s4778_s26 }
 0x716   :  { %v5436_v60 = vpop.f32.mrb[84].mxu0  ;;  %p6305_p0 = scmp.ne.s32.totalorder %s4778_s26, %s6304_s27  ;;  %p6310_p2 = scmp.lt.s32.totalorder %s6304_s27, %s6304_s27 }
 0x717   :  { %v5437_v37 = vpop.f32.mrb[85].mxu0  ;;  %v4649_v21 = vadd.f32 %v5475_v27, %v4584_v2 }
 0x718   :  { %v5438_v59 = vadd.f32 %v5437_v37, %v5436_v60  ;;  %v5439_v41 = vpop.f32.mrb[86].mxu0  ;;  %p6311_p3 = por %p6310_p2, %p6309_p1 }
 0x719   :  { %v5476_v63 = vpop.f32.mrb[92].mxu1  ;;  %v5440_v18 = vpop.f32.mrb[87].mxu0 }
 0x71a   :  { %v4589_v32 = vadd.f32 %v5438_v59, %v4524_v48  ;;  %v5441_v6 = vadd.f32 %v5440_v18, %v5439_v41  ;;  %v5477_v49 = vpop.f32.mrb[93].mxu1  ;;  %p6312_p4 = pnand %p6311_p3, %p6305_p0 }
 0x71b   :  { %v5478_v51 = vadd.f32 %v5477_v49, %v5476_v63  ;;  %v5479_v31 = vpop.f32.mrb[94].mxu1 }
 0x71c   :  { %v4592_v17 = vadd.f32 %v5441_v6, %v4527_v62  ;;  %v5480_v16 = vpop.f32.mrb[95].mxu1 }
 0x71d   :  { %v5481_v9 = vadd.f32 %v5480_v16, %v5479_v31  ;;  %v4654_v13 = vadd.f32 %v5478_v51, %v4589_v32 }
 0x71e   :  { %v5442_v23 = vpop.f32.mrb[88].mxu0 }
 0x71f   :  { %v5443_v7 = vpop.f32.mrb[89].mxu0  ;;  %v4657_v40 = vadd.f32 %v5481_v9, %v4592_v17 }
 0x720   :  { %v5444_v42 = vadd.f32 %v5443_v7, %v5442_v23  ;;  %v5445_v38 = vpop.f32.mrb[90].mxu0 }
 0x721   :  { %v5482_v47 = vpop.f32.mrb[96].mxu1  ;;  %v5446_v44 = vpop.f32.mrb[91].mxu0 }
 0x722   :  { %v4597_v3 = vadd.f32 %v5444_v42, %v4532_v39  ;;  %v5447_v12 = vadd.f32 %v5446_v44, %v5445_v38  ;;  %v5483_v56 = vpop.f32.mrb[97].mxu1  ;;  %v7471_v38 = vld [vmem:[#allocation23_spill] sm:$0xff] }
 0x723   :  { %v5484_v57 = vadd.f32 %v5483_v56, %v5482_v47  ;;  %v5485_v48 = vpop.f32.mrb[98].mxu1 }
 0x724   :  { %v4600_v35 = vadd.f32 %v5447_v12, %v4535_v50  ;;  %v5486_v52 = vpop.f32.mrb[99].mxu1 }
 0x725   :  { %v5487_v61 = vadd.f32 %v5486_v52, %v5485_v48  ;;  %v4662_v8 = vadd.f32 %v5484_v57, %v4597_v3 }
 0x726   :  { %v5448_v62 = vpop.f32.mrb[92].mxu0 }
 0x727   :  { %v5449_v45 = vpop.f32.mrb[93].mxu0  ;;  %v4665_v53 = vadd.f32 %v5487_v61, %v4600_v35 }
 0x728   :  { %v5450_v22 = vadd.f32 %v5449_v45, %v5448_v62  ;;  %v5451_v14 = vpop.f32.mrb[94].mxu0 }
 0x729   :  { %v5488_v15 = vpop.f32.mrb[100].mxu1  ;;  %v5452_v28 = vpop.f32.mrb[95].mxu0 }
 0x72a   :  { %v4605_v43 = vadd.f32 %v5450_v22, %v4540_v25  ;;  %v5453_v5 = vadd.f32 %v5452_v28, %v5451_v14  ;;  %v5489_v19 = vpop.f32.mrb[101].mxu1 }
 0x72b   :  { %v5490_v10 = vadd.f32 %v5489_v19, %v5488_v15  ;;  %v5491_v39 = vpop.f32.mrb[102].mxu1 }
 0x72c   :  { %v4608_v34 = vadd.f32 %v5453_v5, %v4543_v11  ;;  %v5492_v26 = vpop.f32.mrb[103].mxu1 }
 0x72d   :  { %v5493_v0 = vadd.f32 %v5492_v26, %v5491_v39  ;;  %v4670_v1 = vadd.f32 %v5490_v10, %v4605_v43 }
 0x72e   :  { %v5671_v50 = vpop.f32.mrb[96].mxu0 }
 0x72f   :  { %v4719_v46 = vadd.f32 %v5671_v50, %v4654_v13  ;;  %v4710_v20 = vpop.f32.mrb[97].mxu0  ;;  %v4673_v2 = vadd.f32 %v5493_v0, %v4608_v34 }
 0x730   :  { %v4711_v36 = vadd.f32 %v4710_v20, %v4646_v55  ;;  %v5672_v27 = vpop.f32.mrb[98].mxu0 }
 0x731   :  { %v4750_v60 = vadd.f32 %v5102_v29, %v4719_v46  ;;  %v4722_v25 = vadd.f32 %v5672_v27, %v4657_v40  ;;  %v4713_v37 = vpop.f32.mrb[99].mxu0  ;;  %v7470_v40 = vld [vmem:[#allocation22_spill] sm:$0xff] }
 0x732   :  { %v4748_v59 = vadd.f32 %v5102_v29, %v4711_v36  ;;  %v4714_v41 = vadd.f32 %v4713_v37, %v4649_v21 }
 0x733   :  { %v4758_v11 = vadd.f32 %v6931_v58, %v4750_v60  ;;  %v4751_v63 = vadd.f32 %v5102_v29, %v4722_v25 }
 0x734   :  { %v4756_v18 = vadd.f32 %v6925_v54, %v4748_v59  ;;  %v4749_v32 = vadd.f32 %v5102_v29, %v4714_v41 }
 0x735   :  { %4766 = vst [vmem:[#allocation16 + $0x10] sm:$0xff] %v4758_v11  ;;  %v4759_v6 = vadd.f32 %v6934_v4, %v4751_v63 }
 0x736   :  { %4764 = vst [vmem:[#allocation16] sm:$0xff] %v4756_v18  ;;  %v4757_v49 = vadd.f32 %v6928_v30, %v4749_v32  ;;  %v5675_v51 = vpop.f32.mrb[100].mxu0 }
 0x737   :  { %4767 = vst [vmem:[#allocation16 + $0x18] sm:$0xff] %v4759_v6  ;;  %v4735_v55 = vadd.f32 %v5675_v51, %v4670_v1  ;;  %v4726_v31 = vpop.f32.mrb[101].mxu0 }
 0x738   :  { %4765 = vst [vmem:[#allocation16 + $0x8] sm:$0xff] %v4757_v49  ;;  %v4727_v17 = vadd.f32 %v4726_v31, %v4662_v8  ;;  %v5676_v16 = vpop.f32.mrb[102].mxu0 }
 0x739   :  { %v4754_v21 = vadd.f32 %v5102_v29, %v4735_v55  ;;  %v4738_v9 = vadd.f32 %v5676_v16, %v4673_v2  ;;  %v4729_v58 = vpop.f32.mrb[103].mxu0 }
 0x73a   :  { %v4752_v13 = vadd.f32 %v5102_v29, %v4727_v17  ;;  %v4730_v23 = vadd.f32 %v4729_v58, %v4665_v53 }
 0x73b   :  { %v4762_v54 = vadd.f32 %v6943_v33, %v4754_v21  ;;  %v4755_v7 = vadd.f32 %v5102_v29, %v4738_v9 }
 0x73c   :  { %v4760_v4 = vadd.f32 %v6937_v24, %v4752_v13  ;;  %v4753_v30 = vadd.f32 %v5102_v29, %v4730_v23 }
 0x73d   :  { %4770 = vst [vmem:[#allocation16 + $0x30] sm:$0xff] %v4762_v54  ;;  %v4763_v42 = vadd.f32 %v4755_v7, %v7470_v40 }
 0x73e   :  { %4768 = vst [vmem:[#allocation16 + $0x20] sm:$0xff] %v4760_v4  ;;  %v4761_v47 = vadd.f32 %v7471_v38, %v4753_v30 }
 0x73f   :  { %4771 = vst [vmem:[#allocation16 + $0x38] sm:$0xff] %v4763_v42 }
 0x740   :  { %4769 = vst [vmem:[#allocation16 + $0x28] sm:$0xff] %v4761_v47 }
 0x741   :  { %6315 = shalt.err (!%p6312_p4)
}
 0x742   :  { %s6316_s0 = scalar_lea.hbm %s7465_s15, 1024 }
 0x743   :  { %p6317_p5 = scmp.ne.s32.totalorder %s7465_s15, %s6316_s0  ;;  %p6320_p6 = scmp.lt.u32.totalorder %s6316_s0, %s7465_s15 }
 0x745   :  { %p6322_p7 = pnand %p6320_p6, %p6317_p5 }
 0x747   :  { %6325 = shalt.err (!%p6322_p7)
}
 0x748   :  { %s6354_s4 = smov 128   ;;  %s6355_s30 = smov 8  }
 0x749   :  { %4783 = dma.vmem_to_hbm [thread:$0]  %s4778_s26, 1024, %s7465_s15, [#allocation6], %s6354_s4, %s6354_s4, %s6355_s30  }
 0x74a   :  { %6334 = dma.done.wait [#allocation6], 1024  }
 0x74b   :  { %6335 = vsyncadd [#allocation6], 4294966272 }
 0x74c   :  { %4787 = vsyncpa [#allocation5], 1 }
 0x74d   :  { %4788 = vsyncpa [#allocation8], 1 }
 0x74e   :  { %4789 = vsyncpa [#allocation11], 1 }
 0x74f   :  { %4790 = vsyncpa [#allocation14], 1 }
 0x750   :  { %4791 = vsyncpa [#allocation6], 1 }

</bundles_post_ra>
